<compile_context>
chip_gen: v7x
topology: tpu7x:2x2x1
jax: 0.10.0
libtpu: 0.0.40
codegen_flags: <defaults>
</compile_context>

<pallas_src>
import jax
import jax.numpy as jnp
import numpy as np
from jax import lax
from jax.experimental import pallas as pl
from jax.experimental.pallas import tpu as pltpu


# --------------------------------- kernel ------------------------------------

def resblock_kernel(x_ref, g1_ref, b1_ref, w1_ref, g2_ref, b2_ref, w2_ref,
                    p_ref, o_ref, pad_ref, patch_ref, *, eps=1e-5):
    _, H, W, C = x_ref.shape
    HW = H * W

    # Zero the padded conv scratch each grid step (tiny); only its interior is
    # rewritten per conv, so the zero border is shared by both convs.  Done
    # unconditionally so it stays correct when the "parallel" batch axis is
    # sharded across TensorCores, each with its own scratch copy.
    pad_ref[...] = jnp.zeros_like(pad_ref)

    x = x_ref[...].reshape(HW, C).astype(jnp.float32)       # (HW, C) f32
    p = p_ref[...]                                           # (C, C) group-avg

    def gn_relu(h, gamma, beta):
        # One-pass stats, one folded MXU matmul, fused scale/shift + ReLU.
        s = jnp.sum(h, axis=0, keepdims=True)                # (1, C)  sum h
        ss = jnp.sum(h * h, axis=0, keepdims=True)           # (1, C)  sum h^2
        stats = jnp.concatenate([s, ss], axis=0)             # (2, C)
        avg = jnp.dot(stats, p, preferred_element_type=jnp.float32)  # (2, C)
        mean = avg[0:1, :]                                    # per-chan group mean
        var = jnp.maximum(avg[1:2, :] - mean * mean, 0.0)     # E[h^2]-mean^2 >= 0
        scale = gamma * lax.rsqrt(var + eps)                  # (1, C)
        shift = beta - mean * scale                           # (1, C)
        return jnp.maximum(h * scale + shift, 0.0)            # norm+affine+relu

    def conv3x3(h, w_ref):
        # h: (HW, C) f32.  Write interior of zero-bordered, sublane-aligned
        # scratch, scatter the 9 taps straight into the persistent (HW, 9C)
        # im2col scratch, then one bf16 MXU matmul with f32 accumulation.
        pad_ref[:, 1:H + 1, 1:W + 1, :] = (
            h.reshape(1, H, W, C).astype(jnp.bfloat16))
        for ky in range(3):
            for kx in range(3):
                t = ky * 3 + kx
                patch_ref[:, t * C:(t + 1) * C] = (
                    pad_ref[:, ky:ky + H, kx:kx + W, :].reshape(HW, C))
        return jnp.dot(patch_ref[...], w_ref[...],
                       preferred_element_type=jnp.float32)    # (HW, C) f32

    # norm1 -> relu -> conv1 -> norm2 -> relu -> conv2 -> + shortcut
    h = gn_relu(x, g1_ref[...], b1_ref[...])
    y = conv3x3(h, w1_ref)
    h2 = gn_relu(y, g2_ref[...], b2_ref[...])
    y2 = conv3x3(h2, w2_ref)

    o_ref[...] = (y2 + x).reshape(1, HW, C).astype(o_ref.dtype)


# --------------------------------- wrapper -----------------------------------

def resblock_pallas(x_nchw, params, groups):
    """x_nchw: (N, C, H, W) -> (N, C, H, W); matches ResBlock.forward (no downsample)."""
    g1, b1, w1, g2, b2, w2 = params              # w*: HWIO (3, 3, C, C) f32
    N, C, H, W = x_nchw.shape
    HW = H * W
    cs = C // groups

    x = jnp.transpose(x_nchw, (0, 2, 3, 1))      # NHWC (layout plumbing)

    # Free layout plumbing outside the kernel.
    w1_2d = w1.reshape(9 * C, C).astype(jnp.bfloat16)
    w2_2d = w2.reshape(9 * C, C).astype(jnp.bfloat16)
    g1r, b1r = g1.reshape(1, C), b1.reshape(1, C)
    g2r, b2r = g2.reshape(1, C), b2.reshape(1, C)

    # Group-averaging matrix: (s @ P)[c] = mean over the group containing c.
    gid = jnp.arange(C) // cs
    p = (gid[:, None] == gid[None, :]).astype(jnp.float32) / float(HW * cs)

    wpad = max(8, ((W + 2 + 7) // 8) * 8)        # sublane-aligned padded width

    full0 = lambda shape: pl.BlockSpec(shape, lambda n: (0,) * len(shape))

    cost = pl.CostEstimate(
        flops=2 * 2 * (N * HW) * (9 * C) * C,            # two im2col matmuls
        transcendentals=2 * N * C,                       # rsqrt per norm/chan
        bytes_accessed=2 * N * HW * C * 4 + 2 * 9 * C * C * 2
                       + C * C * 4 + 4 * C * 4)

    out = pl.pallas_call(
        resblock_kernel,
        out_shape=jax.ShapeDtypeStruct((N, HW, C), x.dtype),
        grid=(N,),
        in_specs=[
            pl.BlockSpec((1, H, W, C), lambda n: (n, 0, 0, 0)),   # x (per image)
            full0((1, C)), full0((1, C)), full0((9 * C, C)),      # gn1 g/b, conv1 w
            full0((1, C)), full0((1, C)), full0((9 * C, C)),      # gn2 g/b, conv2 w
            full0((C, C)),                                        # group-avg P
        ],
        out_specs=pl.BlockSpec((1, HW, C), lambda n: (n, 0, 0)),
        scratch_shapes=[
            pltpu.VMEM((1, H + 2, wpad, C), jnp.bfloat16),   # zero-bordered pad
            pltpu.VMEM((HW, 9 * C), jnp.bfloat16),           # persistent im2col
        ],
        compiler_params=pltpu.CompilerParams(
            dimension_semantics=("parallel",)),
        cost_estimate=cost,
    )(x, g1r, b1r, w1_2d, g2r, b2r, w2_2d, p)

    return out.reshape(N, H, W, C).transpose(0, 3, 1, 2)


# ------------------------------ pure-JAX reference ----------------------------

def _group_norm_ref(x, gamma, beta, groups, eps=1e-5):
    N, H, W, C = x.shape
    xg = x.reshape(N, H, W, groups, C // groups)
    mean = xg.mean(axis=(1, 2, 4), keepdims=True)
    var = ((xg - mean) ** 2).mean(axis=(1, 2, 4), keepdims=True)
    xn = ((xg - mean) / jnp.sqrt(var + eps)).reshape(N, H, W, C)
    return xn * gamma + beta


def _conv3x3_ref(x, w):
    return lax.conv_general_dilated(
        x, w, window_strides=(1, 1), padding="SAME",
        dimension_numbers=("NHWC", "HWIO", "NHWC"))


def resblock_ref(x_nchw, params, groups):
    g1, b1, w1, g2, b2, w2 = params
    x = jnp.transpose(x_nchw, (0, 2, 3, 1)).astype(jnp.float32)
    shortcut = x
    out = jax.nn.relu(_group_norm_ref(x, g1, b1, groups))
    out = _conv3x3_ref(out, w1)
    out = jax.nn.relu(_group_norm_ref(out, g2, b2, groups))
    out = _conv3x3_ref(out, w2)
    return jnp.transpose(out + shortcut, (0, 3, 1, 2))


# ----------------------------------- main -------------------------------------

if __name__ == "__main__":
    # ResBlock(inplanes=64, planes=64, stride=1, downsample=None)
    N, C, H, W = 2, 64, 8, 8
    groups = min(32, C)                 # GroupNorm(min(32, dim), dim)

    key = jax.random.PRNGKey(0)
    kx, kw1, kw2 = jax.random.split(key, 3)

    x = jax.random.normal(kx, (N, C, H, W), dtype=jnp.float32)

    # Deterministic synthetic parameters (GroupNorm affine init: weight=1, bias=0).
    fan_in = C * 3 * 3
    w1 = jax.random.normal(kw1, (3, 3, C, C), dtype=jnp.float32) / np.sqrt(fan_in)
    w2 = jax.random.normal(kw2, (3, 3, C, C), dtype=jnp.float32) / np.sqrt(fan_in)
    g1 = jnp.ones((C,), jnp.float32)
    b1 = jnp.zeros((C,), jnp.float32)
    g2 = jnp.ones((C,), jnp.float32)
    b2 = jnp.zeros((C,), jnp.float32)
    params = (g1, b1, w1, g2, b2, w2)

    resblock_jit = jax.jit(resblock_pallas, static_argnums=(2,))
    out = jax.block_until_ready(resblock_jit(x, params, groups))
    ref = jax.block_until_ready(resblock_ref(x, params, groups))

    # bf16 matmul inputs (f32 accumulation) -> relaxed tolerance vs f32 reference.
    np.testing.assert_allclose(np.asarray(out), np.asarray(ref),
                               rtol=5e-2, atol=5e-2)

    print("KERNEL_OK")
</pallas_src>

<mosaic_0001>
module attributes {stable_mosaic.version = 11 : i64} {
  func.func @resblock_kernel(%arg0: i32, %arg1: memref<1x8x8x64xf32, #tpu.memory_space<vmem>>, %arg2: memref<1x64xf32, #tpu.memory_space<vmem>>, %arg3: memref<1x64xf32, #tpu.memory_space<vmem>>, %arg4: memref<576x64xbf16, #tpu.memory_space<vmem>>, %arg5: memref<1x64xf32, #tpu.memory_space<vmem>>, %arg6: memref<1x64xf32, #tpu.memory_space<vmem>>, %arg7: memref<576x64xbf16, #tpu.memory_space<vmem>>, %arg8: memref<64x64xf32, #tpu.memory_space<vmem>>, %arg9: memref<1x64x64xf32, #tpu.memory_space<vmem>>, %arg10: memref<1x10x16x64xbf16, #tpu.memory_space<vmem>>, %arg11: memref<64x576xbf16, #tpu.memory_space<vmem>>) attributes {dimension_semantics = [#tpu.dimension_semantics<parallel>], iteration_bounds = array<i64: 2>, scalar_prefetch = 0 : i64, scratch_operands = 2 : i64, tpu.core_type = #tpu.core_type<tc>, window_params = [{transform_indices = @transform_0, window_bounds = array<i64: 1, 8, 8, 64>}, {pipeline_mode = #tpu.pipeline_mode<synchronous>, transform_indices = @transform_1, window_bounds = array<i64: 1, 64>}, {pipeline_mode = #tpu.pipeline_mode<synchronous>, transform_indices = @transform_2, window_bounds = array<i64: 1, 64>}, {pipeline_mode = #tpu.pipeline_mode<synchronous>, transform_indices = @transform_3, window_bounds = array<i64: 576, 64>}, {pipeline_mode = #tpu.pipeline_mode<synchronous>, transform_indices = @transform_4, window_bounds = array<i64: 1, 64>}, {pipeline_mode = #tpu.pipeline_mode<synchronous>, transform_indices = @transform_5, window_bounds = array<i64: 1, 64>}, {pipeline_mode = #tpu.pipeline_mode<synchronous>, transform_indices = @transform_6, window_bounds = array<i64: 576, 64>}, {pipeline_mode = #tpu.pipeline_mode<synchronous>, transform_indices = @transform_7, window_bounds = array<i64: 64, 64>}, {transform_indices = @transform_8, window_bounds = array<i64: 1, 64, 64>}]} {
    %cst = arith.constant 0.000000e+00 : bf16
    %0 = vector.broadcast %cst : bf16 to vector<1x10x16x64xbf16>
    %c0 = arith.constant 0 : index
    %c0_0 = arith.constant 0 : index
    %c0_1 = arith.constant 0 : index
    %c0_2 = arith.constant 0 : index
    %1 = vector.load %arg10[%c0, %c0_0, %c0_1, %c0_2] : memref<1x10x16x64xbf16, #tpu.memory_space<vmem>>, vector<1x10x16x64xbf16>
    tpu.vector_store %arg10[%c0, %c0_0, %c0_1, %c0_2], %0 {strides = array<i32>} : memref<1x10x16x64xbf16, #tpu.memory_space<vmem>>, vector<1x10x16x64xbf16>,
    %c0_3 = arith.constant 0 : index
    %c0_4 = arith.constant 0 : index
    %c0_5 = arith.constant 0 : index
    %c0_6 = arith.constant 0 : index
    %2 = vector.load %arg1[%c0_3, %c0_4, %c0_5, %c0_6] : memref<1x8x8x64xf32, #tpu.memory_space<vmem>>, vector<1x8x8x64xf32>
    %3 = vector.shape_cast %2 : vector<1x8x8x64xf32> to vector<64x64xf32>
    %c0_7 = arith.constant 0 : index
    %c0_8 = arith.constant 0 : index
    %4 = vector.load %arg8[%c0_7, %c0_8] : memref<64x64xf32, #tpu.memory_space<vmem>>, vector<64x64xf32>
    %c0_9 = arith.constant 0 : index
    %c0_10 = arith.constant 0 : index
    %5 = vector.load %arg2[%c0_9, %c0_10] : memref<1x64xf32, #tpu.memory_space<vmem>>, vector<1x64xf32>
    %c0_11 = arith.constant 0 : index
    %c0_12 = arith.constant 0 : index
    %6 = vector.load %arg3[%c0_11, %c0_12] : memref<1x64xf32, #tpu.memory_space<vmem>>, vector<1x64xf32>
    %cst_13 = arith.constant dense<0.000000e+00> : vector<64xf32>
    %7 = vector.multi_reduction <add>, %3, %cst_13 [0] : vector<64x64xf32> to vector<64xf32>
    %8 = vector.shape_cast %7 : vector<64xf32> to vector<1x64xf32>
    %9 = arith.mulf %3, %3 : vector<64x64xf32>
    %cst_14 = arith.constant dense<0.000000e+00> : vector<64xf32>
    %10 = vector.multi_reduction <add>, %9, %cst_14 [0] : vector<64x64xf32> to vector<64xf32>
    %11 = vector.shape_cast %10 : vector<64xf32> to vector<1x64xf32>
    %12 = tpu.concatenate %8, %11 in 0 : vector<1x64xf32>, vector<1x64xf32> -> vector<2x64xf32>
    %cst_15 = arith.constant dense<0.000000e+00> : vector<2x64xf32>
    %13 = tpu.matmul %12, %4, %cst_15 {dimension_numbers = #tpu.dot_dimension_numbers<[1], [0], [0], [1], [0, 0, 1, 1], [], []>} : vector<2x64xf32>, vector<64x64xf32>, vector<2x64xf32> -> vector<2x64xf32>
    %14 = vector.extract_strided_slice %13 {offsets = [0, 0], sizes = [1, 64], strides = [1, 1]} : vector<2x64xf32> to vector<1x64xf32>
    %15 = vector.extract_strided_slice %13 {offsets = [1, 0], sizes = [1, 64], strides = [1, 1]} : vector<2x64xf32> to vector<1x64xf32>
    %16 = arith.mulf %14, %14 : vector<1x64xf32>
    %17 = arith.subf %15, %16 : vector<1x64xf32>
    %cst_16 = arith.constant 0.000000e+00 : f32
    %18 = vector.broadcast %cst_16 : f32 to vector<1x64xf32>
    %19 = arith.maximumf %17, %18 : vector<1x64xf32>
    %cst_17 = arith.constant 9.99999974E-6 : f32
    %20 = vector.broadcast %cst_17 : f32 to vector<1x64xf32>
    %21 = arith.addf %19, %20 : vector<1x64xf32>
    %22 = math.rsqrt %21 : vector<1x64xf32>
    %23 = arith.mulf %5, %22 : vector<1x64xf32>
    %24 = arith.mulf %14, %23 : vector<1x64xf32>
    %25 = arith.subf %6, %24 : vector<1x64xf32>
    %26 = vector.broadcast %23 : vector<1x64xf32> to vector<64x64xf32>
    %27 = arith.mulf %3, %26 : vector<64x64xf32>
    %28 = vector.broadcast %25 : vector<1x64xf32> to vector<64x64xf32>
    %29 = arith.addf %27, %28 : vector<64x64xf32>
    %cst_18 = arith.constant 0.000000e+00 : f32
    %30 = vector.broadcast %cst_18 : f32 to vector<64x64xf32>
    %31 = arith.maximumf %29, %30 : vector<64x64xf32>
    %32 = vector.shape_cast %31 : vector<64x64xf32> to vector<1x8x8x64xf32>
    %33 = arith.truncf %32 : vector<1x8x8x64xf32> to vector<1x8x8x64xbf16>
    %c0_19 = arith.constant 0 : index
    %c1 = arith.constant 1 : index
    %c1_20 = arith.constant 1 : index
    %c0_21 = arith.constant 0 : index
    %34 = vector.load %arg10[%c0_19, %c1, %c1_20, %c0_21] : memref<1x10x16x64xbf16, #tpu.memory_space<vmem>>, vector<1x8x8x64xbf16>
    tpu.vector_store %arg10[%c0_19, %c1, %c1_20, %c0_21], %33 {strides = array<i32>} : memref<1x10x16x64xbf16, #tpu.memory_space<vmem>>, vector<1x8x8x64xbf16>,
    %c0_22 = arith.constant 0 : index
    %c0_23 = arith.constant 0 : index
    %c0_24 = arith.constant 0 : index
    %c0_25 = arith.constant 0 : index
    %35 = vector.load %arg10[%c0_22, %c0_23, %c0_24, %c0_25] : memref<1x10x16x64xbf16, #tpu.memory_space<vmem>>, vector<1x8x8x64xbf16>
    %36 = vector.shape_cast %35 : vector<1x8x8x64xbf16> to vector<64x64xbf16>
    %c0_26 = arith.constant 0 : index
    %c0_27 = arith.constant 0 : index
    %37 = vector.load %arg11[%c0_26, %c0_27] : memref<64x576xbf16, #tpu.memory_space<vmem>>, vector<64x64xbf16>
    tpu.vector_store %arg11[%c0_26, %c0_27], %36 {strides = array<i32>} : memref<64x576xbf16, #tpu.memory_space<vmem>>, vector<64x64xbf16>,
    %c0_28 = arith.constant 0 : index
    %c0_29 = arith.constant 0 : index
    %c1_30 = arith.constant 1 : index
    %c0_31 = arith.constant 0 : index
    %38 = vector.load %arg10[%c0_28, %c0_29, %c1_30, %c0_31] : memref<1x10x16x64xbf16, #tpu.memory_space<vmem>>, vector<1x8x8x64xbf16>
    %39 = vector.shape_cast %38 : vector<1x8x8x64xbf16> to vector<64x64xbf16>
    %c0_32 = arith.constant 0 : index
    %c64 = arith.constant 64 : index
    %40 = vector.load %arg11[%c0_32, %c64] : memref<64x576xbf16, #tpu.memory_space<vmem>>, vector<64x64xbf16>
    tpu.vector_store %arg11[%c0_32, %c64], %39 {strides = array<i32>} : memref<64x576xbf16, #tpu.memory_space<vmem>>, vector<64x64xbf16>,
    %c0_33 = arith.constant 0 : index
    %c0_34 = arith.constant 0 : index
    %c2 = arith.constant 2 : index
    %c0_35 = arith.constant 0 : index
    %41 = vector.load %arg10[%c0_33, %c0_34, %c2, %c0_35] : memref<1x10x16x64xbf16, #tpu.memory_space<vmem>>, vector<1x8x8x64xbf16>
    %42 = vector.shape_cast %41 : vector<1x8x8x64xbf16> to vector<64x64xbf16>
    %c0_36 = arith.constant 0 : index
    %c128 = arith.constant 128 : index
    %43 = vector.load %arg11[%c0_36, %c128] : memref<64x576xbf16, #tpu.memory_space<vmem>>, vector<64x64xbf16>
    tpu.vector_store %arg11[%c0_36, %c128], %42 {strides = array<i32>} : memref<64x576xbf16, #tpu.memory_space<vmem>>, vector<64x64xbf16>,
    %c0_37 = arith.constant 0 : index
    %c1_38 = arith.constant 1 : index
    %c0_39 = arith.constant 0 : index
    %c0_40 = arith.constant 0 : index
    %44 = vector.load %arg10[%c0_37, %c1_38, %c0_39, %c0_40] : memref<1x10x16x64xbf16, #tpu.memory_space<vmem>>, vector<1x8x8x64xbf16>
    %45 = vector.shape_cast %44 : vector<1x8x8x64xbf16> to vector<64x64xbf16>
    %c0_41 = arith.constant 0 : index
    %c192 = arith.constant 192 : index
    %46 = vector.load %arg11[%c0_41, %c192] : memref<64x576xbf16, #tpu.memory_space<vmem>>, vector<64x64xbf16>
    tpu.vector_store %arg11[%c0_41, %c192], %45 {strides = array<i32>} : memref<64x576xbf16, #tpu.memory_space<vmem>>, vector<64x64xbf16>,
    %c0_42 = arith.constant 0 : index
    %c1_43 = arith.constant 1 : index
    %c1_44 = arith.constant 1 : index
    %c0_45 = arith.constant 0 : index
    %47 = vector.load %arg10[%c0_42, %c1_43, %c1_44, %c0_45] : memref<1x10x16x64xbf16, #tpu.memory_space<vmem>>, vector<1x8x8x64xbf16>
    %48 = vector.shape_cast %47 : vector<1x8x8x64xbf16> to vector<64x64xbf16>
    %c0_46 = arith.constant 0 : index
    %c256 = arith.constant 256 : index
    %49 = vector.load %arg11[%c0_46, %c256] : memref<64x576xbf16, #tpu.memory_space<vmem>>, vector<64x64xbf16>
    tpu.vector_store %arg11[%c0_46, %c256], %48 {strides = array<i32>} : memref<64x576xbf16, #tpu.memory_space<vmem>>, vector<64x64xbf16>,
    %c0_47 = arith.constant 0 : index
    %c1_48 = arith.constant 1 : index
    %c2_49 = arith.constant 2 : index
    %c0_50 = arith.constant 0 : index
    %50 = vector.load %arg10[%c0_47, %c1_48, %c2_49, %c0_50] : memref<1x10x16x64xbf16, #tpu.memory_space<vmem>>, vector<1x8x8x64xbf16>
    %51 = vector.shape_cast %50 : vector<1x8x8x64xbf16> to vector<64x64xbf16>
    %c0_51 = arith.constant 0 : index
    %c320 = arith.constant 320 : index
    %52 = vector.load %arg11[%c0_51, %c320] : memref<64x576xbf16, #tpu.memory_space<vmem>>, vector<64x64xbf16>
    tpu.vector_store %arg11[%c0_51, %c320], %51 {strides = array<i32>} : memref<64x576xbf16, #tpu.memory_space<vmem>>, vector<64x64xbf16>,
    %c0_52 = arith.constant 0 : index
    %c2_53 = arith.constant 2 : index
    %c0_54 = arith.constant 0 : index
    %c0_55 = arith.constant 0 : index
    %53 = vector.load %arg10[%c0_52, %c2_53, %c0_54, %c0_55] : memref<1x10x16x64xbf16, #tpu.memory_space<vmem>>, vector<1x8x8x64xbf16>
    %54 = vector.shape_cast %53 : vector<1x8x8x64xbf16> to vector<64x64xbf16>
    %c0_56 = arith.constant 0 : index
    %c384 = arith.constant 384 : index
    %55 = vector.load %arg11[%c0_56, %c384] : memref<64x576xbf16, #tpu.memory_space<vmem>>, vector<64x64xbf16>
    tpu.vector_store %arg11[%c0_56, %c384], %54 {strides = array<i32>} : memref<64x576xbf16, #tpu.memory_space<vmem>>, vector<64x64xbf16>,
    %c0_57 = arith.constant 0 : index
    %c2_58 = arith.constant 2 : index
    %c1_59 = arith.constant 1 : index
    %c0_60 = arith.constant 0 : index
    %56 = vector.load %arg10[%c0_57, %c2_58, %c1_59, %c0_60] : memref<1x10x16x64xbf16, #tpu.memory_space<vmem>>, vector<1x8x8x64xbf16>
    %57 = vector.shape_cast %56 : vector<1x8x8x64xbf16> to vector<64x64xbf16>
    %c0_61 = arith.constant 0 : index
    %c448 = arith.constant 448 : index
    %58 = vector.load %arg11[%c0_61, %c448] : memref<64x576xbf16, #tpu.memory_space<vmem>>, vector<64x64xbf16>
    tpu.vector_store %arg11[%c0_61, %c448], %57 {strides = array<i32>} : memref<64x576xbf16, #tpu.memory_space<vmem>>, vector<64x64xbf16>,
    %c0_62 = arith.constant 0 : index
    %c2_63 = arith.constant 2 : index
    %c2_64 = arith.constant 2 : index
    %c0_65 = arith.constant 0 : index
    %59 = vector.load %arg10[%c0_62, %c2_63, %c2_64, %c0_65] : memref<1x10x16x64xbf16, #tpu.memory_space<vmem>>, vector<1x8x8x64xbf16>
    %60 = vector.shape_cast %59 : vector<1x8x8x64xbf16> to vector<64x64xbf16>
    %c0_66 = arith.constant 0 : index
    %c512 = arith.constant 512 : index
    %61 = vector.load %arg11[%c0_66, %c512] : memref<64x576xbf16, #tpu.memory_space<vmem>>, vector<64x64xbf16>
    tpu.vector_store %arg11[%c0_66, %c512], %60 {strides = array<i32>} : memref<64x576xbf16, #tpu.memory_space<vmem>>, vector<64x64xbf16>,
    %c0_67 = arith.constant 0 : index
    %c0_68 = arith.constant 0 : index
    %62 = vector.load %arg11[%c0_67, %c0_68] : memref<64x576xbf16, #tpu.memory_space<vmem>>, vector<64x576xbf16>
    %c0_69 = arith.constant 0 : index
    %c0_70 = arith.constant 0 : index
    %63 = vector.load %arg4[%c0_69, %c0_70] : memref<576x64xbf16, #tpu.memory_space<vmem>>, vector<576x64xbf16>
    %cst_71 = arith.constant dense<0.000000e+00> : vector<64x64xf32>
    %64 = tpu.matmul %62, %63, %cst_71 {dimension_numbers = #tpu.dot_dimension_numbers<[1], [0], [0], [1], [0, 0, 1, 1], [], []>} : vector<64x576xbf16>, vector<576x64xbf16>, vector<64x64xf32> -> vector<64x64xf32>
    %c0_72 = arith.constant 0 : index
    %c0_73 = arith.constant 0 : index
    %65 = vector.load %arg5[%c0_72, %c0_73] : memref<1x64xf32, #tpu.memory_space<vmem>>, vector<1x64xf32>
    %c0_74 = arith.constant 0 : index
    %c0_75 = arith.constant 0 : index
    %66 = vector.load %arg6[%c0_74, %c0_75] : memref<1x64xf32, #tpu.memory_space<vmem>>, vector<1x64xf32>
    %cst_76 = arith.constant dense<0.000000e+00> : vector<64xf32>
    %67 = vector.multi_reduction <add>, %64, %cst_76 [0] : vector<64x64xf32> to vector<64xf32>
    %68 = vector.shape_cast %67 : vector<64xf32> to vector<1x64xf32>
    %69 = arith.mulf %64, %64 : vector<64x64xf32>
    %cst_77 = arith.constant dense<0.000000e+00> : vector<64xf32>
    %70 = vector.multi_reduction <add>, %69, %cst_77 [0] : vector<64x64xf32> to vector<64xf32>
    %71 = vector.shape_cast %70 : vector<64xf32> to vector<1x64xf32>
    %72 = tpu.concatenate %68, %71 in 0 : vector<1x64xf32>, vector<1x64xf32> -> vector<2x64xf32>
    %cst_78 = arith.constant dense<0.000000e+00> : vector<2x64xf32>
    %73 = tpu.matmul %72, %4, %cst_78 {dimension_numbers = #tpu.dot_dimension_numbers<[1], [0], [0], [1], [0, 0, 1, 1], [], []>} : vector<2x64xf32>, vector<64x64xf32>, vector<2x64xf32> -> vector<2x64xf32>
    %74 = vector.extract_strided_slice %73 {offsets = [0, 0], sizes = [1, 64], strides = [1, 1]} : vector<2x64xf32> to vector<1x64xf32>
    %75 = vector.extract_strided_slice %73 {offsets = [1, 0], sizes = [1, 64], strides = [1, 1]} : vector<2x64xf32> to vector<1x64xf32>
    %76 = arith.mulf %74, %74 : vector<1x64xf32>
    %77 = arith.subf %75, %76 : vector<1x64xf32>
    %cst_79 = arith.constant 0.000000e+00 : f32
    %78 = vector.broadcast %cst_79 : f32 to vector<1x64xf32>
    %79 = arith.maximumf %77, %78 : vector<1x64xf32>
    %cst_80 = arith.constant 9.99999974E-6 : f32
    %80 = vector.broadcast %cst_80 : f32 to vector<1x64xf32>
    %81 = arith.addf %79, %80 : vector<1x64xf32>
    %82 = math.rsqrt %81 : vector<1x64xf32>
    %83 = arith.mulf %65, %82 : vector<1x64xf32>
    %84 = arith.mulf %74, %83 : vector<1x64xf32>
    %85 = arith.subf %66, %84 : vector<1x64xf32>
    %86 = vector.broadcast %83 : vector<1x64xf32> to vector<64x64xf32>
    %87 = arith.mulf %64, %86 : vector<64x64xf32>
    %88 = vector.broadcast %85 : vector<1x64xf32> to vector<64x64xf32>
    %89 = arith.addf %87, %88 : vector<64x64xf32>
    %cst_81 = arith.constant 0.000000e+00 : f32
    %90 = vector.broadcast %cst_81 : f32 to vector<64x64xf32>
    %91 = arith.maximumf %89, %90 : vector<64x64xf32>
    %92 = vector.shape_cast %91 : vector<64x64xf32> to vector<1x8x8x64xf32>
    %93 = arith.truncf %92 : vector<1x8x8x64xf32> to vector<1x8x8x64xbf16>
    %c0_82 = arith.constant 0 : index
    %c1_83 = arith.constant 1 : index
    %c1_84 = arith.constant 1 : index
    %c0_85 = arith.constant 0 : index
    %94 = vector.load %arg10[%c0_82, %c1_83, %c1_84, %c0_85] : memref<1x10x16x64xbf16, #tpu.memory_space<vmem>>, vector<1x8x8x64xbf16>
    tpu.vector_store %arg10[%c0_82, %c1_83, %c1_84, %c0_85], %93 {strides = array<i32>} : memref<1x10x16x64xbf16, #tpu.memory_space<vmem>>, vector<1x8x8x64xbf16>,
    %c0_86 = arith.constant 0 : index
    %c0_87 = arith.constant 0 : index
    %c0_88 = arith.constant 0 : index
    %c0_89 = arith.constant 0 : index
    %95 = vector.load %arg10[%c0_86, %c0_87, %c0_88, %c0_89] : memref<1x10x16x64xbf16, #tpu.memory_space<vmem>>, vector<1x8x8x64xbf16>
    %96 = vector.shape_cast %95 : vector<1x8x8x64xbf16> to vector<64x64xbf16>
    %c0_90 = arith.constant 0 : index
    %c0_91 = arith.constant 0 : index
    %97 = vector.load %arg11[%c0_90, %c0_91] : memref<64x576xbf16, #tpu.memory_space<vmem>>, vector<64x64xbf16>
    tpu.vector_store %arg11[%c0_90, %c0_91], %96 {strides = array<i32>} : memref<64x576xbf16, #tpu.memory_space<vmem>>, vector<64x64xbf16>,
    %c0_92 = arith.constant 0 : index
    %c0_93 = arith.constant 0 : index
    %c1_94 = arith.constant 1 : index
    %c0_95 = arith.constant 0 : index
    %98 = vector.load %arg10[%c0_92, %c0_93, %c1_94, %c0_95] : memref<1x10x16x64xbf16, #tpu.memory_space<vmem>>, vector<1x8x8x64xbf16>
    %99 = vector.shape_cast %98 : vector<1x8x8x64xbf16> to vector<64x64xbf16>
    %c0_96 = arith.constant 0 : index
    %c64_97 = arith.constant 64 : index
    %100 = vector.load %arg11[%c0_96, %c64_97] : memref<64x576xbf16, #tpu.memory_space<vmem>>, vector<64x64xbf16>
    tpu.vector_store %arg11[%c0_96, %c64_97], %99 {strides = array<i32>} : memref<64x576xbf16, #tpu.memory_space<vmem>>, vector<64x64xbf16>,
    %c0_98 = arith.constant 0 : index
    %c0_99 = arith.constant 0 : index
    %c2_100 = arith.constant 2 : index
    %c0_101 = arith.constant 0 : index
    %101 = vector.load %arg10[%c0_98, %c0_99, %c2_100, %c0_101] : memref<1x10x16x64xbf16, #tpu.memory_space<vmem>>, vector<1x8x8x64xbf16>
    %102 = vector.shape_cast %101 : vector<1x8x8x64xbf16> to vector<64x64xbf16>
    %c0_102 = arith.constant 0 : index
    %c128_103 = arith.constant 128 : index
    %103 = vector.load %arg11[%c0_102, %c128_103] : memref<64x576xbf16, #tpu.memory_space<vmem>>, vector<64x64xbf16>
    tpu.vector_store %arg11[%c0_102, %c128_103], %102 {strides = array<i32>} : memref<64x576xbf16, #tpu.memory_space<vmem>>, vector<64x64xbf16>,
    %c0_104 = arith.constant 0 : index
    %c1_105 = arith.constant 1 : index
    %c0_106 = arith.constant 0 : index
    %c0_107 = arith.constant 0 : index
    %104 = vector.load %arg10[%c0_104, %c1_105, %c0_106, %c0_107] : memref<1x10x16x64xbf16, #tpu.memory_space<vmem>>, vector<1x8x8x64xbf16>
    %105 = vector.shape_cast %104 : vector<1x8x8x64xbf16> to vector<64x64xbf16>
    %c0_108 = arith.constant 0 : index
    %c192_109 = arith.constant 192 : index
    %106 = vector.load %arg11[%c0_108, %c192_109] : memref<64x576xbf16, #tpu.memory_space<vmem>>, vector<64x64xbf16>
    tpu.vector_store %arg11[%c0_108, %c192_109], %105 {strides = array<i32>} : memref<64x576xbf16, #tpu.memory_space<vmem>>, vector<64x64xbf16>,
    %c0_110 = arith.constant 0 : index
    %c1_111 = arith.constant 1 : index
    %c1_112 = arith.constant 1 : index
    %c0_113 = arith.constant 0 : index
    %107 = vector.load %arg10[%c0_110, %c1_111, %c1_112, %c0_113] : memref<1x10x16x64xbf16, #tpu.memory_space<vmem>>, vector<1x8x8x64xbf16>
    %108 = vector.shape_cast %107 : vector<1x8x8x64xbf16> to vector<64x64xbf16>
    %c0_114 = arith.constant 0 : index
    %c256_115 = arith.constant 256 : index
    %109 = vector.load %arg11[%c0_114, %c256_115] : memref<64x576xbf16, #tpu.memory_space<vmem>>, vector<64x64xbf16>
    tpu.vector_store %arg11[%c0_114, %c256_115], %108 {strides = array<i32>} : memref<64x576xbf16, #tpu.memory_space<vmem>>, vector<64x64xbf16>,
    %c0_116 = arith.constant 0 : index
    %c1_117 = arith.constant 1 : index
    %c2_118 = arith.constant 2 : index
    %c0_119 = arith.constant 0 : index
    %110 = vector.load %arg10[%c0_116, %c1_117, %c2_118, %c0_119] : memref<1x10x16x64xbf16, #tpu.memory_space<vmem>>, vector<1x8x8x64xbf16>
    %111 = vector.shape_cast %110 : vector<1x8x8x64xbf16> to vector<64x64xbf16>
    %c0_120 = arith.constant 0 : index
    %c320_121 = arith.constant 320 : index
    %112 = vector.load %arg11[%c0_120, %c320_121] : memref<64x576xbf16, #tpu.memory_space<vmem>>, vector<64x64xbf16>
    tpu.vector_store %arg11[%c0_120, %c320_121], %111 {strides = array<i32>} : memref<64x576xbf16, #tpu.memory_space<vmem>>, vector<64x64xbf16>,
    %c0_122 = arith.constant 0 : index
    %c2_123 = arith.constant 2 : index
    %c0_124 = arith.constant 0 : index
    %c0_125 = arith.constant 0 : index
    %113 = vector.load %arg10[%c0_122, %c2_123, %c0_124, %c0_125] : memref<1x10x16x64xbf16, #tpu.memory_space<vmem>>, vector<1x8x8x64xbf16>
    %114 = vector.shape_cast %113 : vector<1x8x8x64xbf16> to vector<64x64xbf16>
    %c0_126 = arith.constant 0 : index
    %c384_127 = arith.constant 384 : index
    %115 = vector.load %arg11[%c0_126, %c384_127] : memref<64x576xbf16, #tpu.memory_space<vmem>>, vector<64x64xbf16>
    tpu.vector_store %arg11[%c0_126, %c384_127], %114 {strides = array<i32>} : memref<64x576xbf16, #tpu.memory_space<vmem>>, vector<64x64xbf16>,
    %c0_128 = arith.constant 0 : index
    %c2_129 = arith.constant 2 : index
    %c1_130 = arith.constant 1 : index
    %c0_131 = arith.constant 0 : index
    %116 = vector.load %arg10[%c0_128, %c2_129, %c1_130, %c0_131] : memref<1x10x16x64xbf16, #tpu.memory_space<vmem>>, vector<1x8x8x64xbf16>
    %117 = vector.shape_cast %116 : vector<1x8x8x64xbf16> to vector<64x64xbf16>
    %c0_132 = arith.constant 0 : index
    %c448_133 = arith.constant 448 : index
    %118 = vector.load %arg11[%c0_132, %c448_133] : memref<64x576xbf16, #tpu.memory_space<vmem>>, vector<64x64xbf16>
    tpu.vector_store %arg11[%c0_132, %c448_133], %117 {strides = array<i32>} : memref<64x576xbf16, #tpu.memory_space<vmem>>, vector<64x64xbf16>,
    %c0_134 = arith.constant 0 : index
    %c2_135 = arith.constant 2 : index
    %c2_136 = arith.constant 2 : index
    %c0_137 = arith.constant 0 : index
    %119 = vector.load %arg10[%c0_134, %c2_135, %c2_136, %c0_137] : memref<1x10x16x64xbf16, #tpu.memory_space<vmem>>, vector<1x8x8x64xbf16>
    %120 = vector.shape_cast %119 : vector<1x8x8x64xbf16> to vector<64x64xbf16>
    %c0_138 = arith.constant 0 : index
    %c512_139 = arith.constant 512 : index
    %121 = vector.load %arg11[%c0_138, %c512_139] : memref<64x576xbf16, #tpu.memory_space<vmem>>, vector<64x64xbf16>
    tpu.vector_store %arg11[%c0_138, %c512_139], %120 {strides = array<i32>} : memref<64x576xbf16, #tpu.memory_space<vmem>>, vector<64x64xbf16>,
    %c0_140 = arith.constant 0 : index
    %c0_141 = arith.constant 0 : index
    %122 = vector.load %arg11[%c0_140, %c0_141] : memref<64x576xbf16, #tpu.memory_space<vmem>>, vector<64x576xbf16>
    %c0_142 = arith.constant 0 : index
    %c0_143 = arith.constant 0 : index
    %123 = vector.load %arg7[%c0_142, %c0_143] : memref<576x64xbf16, #tpu.memory_space<vmem>>, vector<576x64xbf16>
    %cst_144 = arith.constant dense<0.000000e+00> : vector<64x64xf32>
    %124 = tpu.matmul %122, %123, %cst_144 {dimension_numbers = #tpu.dot_dimension_numbers<[1], [0], [0], [1], [0, 0, 1, 1], [], []>} : vector<64x576xbf16>, vector<576x64xbf16>, vector<64x64xf32> -> vector<64x64xf32>
    %125 = arith.addf %124, %3 : vector<64x64xf32>
    %126 = vector.shape_cast %125 : vector<64x64xf32> to vector<1x64x64xf32>
    %c0_145 = arith.constant 0 : index
    %c0_146 = arith.constant 0 : index
    %c0_147 = arith.constant 0 : index
    %127 = vector.load %arg9[%c0_145, %c0_146, %c0_147] : memref<1x64x64xf32, #tpu.memory_space<vmem>>, vector<1x64x64xf32>
    tpu.vector_store %arg9[%c0_145, %c0_146, %c0_147], %126 {strides = array<i32>} : memref<1x64x64xf32, #tpu.memory_space<vmem>>, vector<1x64x64xf32>,
    return
  }
  func.func @transform_0(%arg0: i32) -> (i32, i32, i32, i32) {
    %c0_i32 = arith.constant 0 : i32
    %c0_i32_0 = arith.constant 0 : i32
    %c0_i32_1 = arith.constant 0 : i32
    %c0_i32_2 = arith.constant 0 : i32
    return %arg0, %c0_i32, %c0_i32_0, %c0_i32_1 : i32, i32, i32, i32
  }
  func.func @transform_1(%arg0: i32) -> (i32, i32) {
    %c0_i32 = arith.constant 0 : i32
    %c0_i32_0 = arith.constant 0 : i32
    %c0_i32_1 = arith.constant 0 : i32
    return %c0_i32, %c0_i32_0 : i32, i32
  }
  func.func @transform_2(%arg0: i32) -> (i32, i32) {
    %c0_i32 = arith.constant 0 : i32
    %c0_i32_0 = arith.constant 0 : i32
    %c0_i32_1 = arith.constant 0 : i32
    return %c0_i32, %c0_i32_0 : i32, i32
  }
  func.func @transform_3(%arg0: i32) -> (i32, i32) {
    %c0_i32 = arith.constant 0 : i32
    %c0_i32_0 = arith.constant 0 : i32
    %c0_i32_1 = arith.constant 0 : i32
    return %c0_i32, %c0_i32_0 : i32, i32
  }
  func.func @transform_4(%arg0: i32) -> (i32, i32) {
    %c0_i32 = arith.constant 0 : i32
    %c0_i32_0 = arith.constant 0 : i32
    %c0_i32_1 = arith.constant 0 : i32
    return %c0_i32, %c0_i32_0 : i32, i32
  }
  func.func @transform_5(%arg0: i32) -> (i32, i32) {
    %c0_i32 = arith.constant 0 : i32
    %c0_i32_0 = arith.constant 0 : i32
    %c0_i32_1 = arith.constant 0 : i32
    return %c0_i32, %c0_i32_0 : i32, i32
  }
  func.func @transform_6(%arg0: i32) -> (i32, i32) {
    %c0_i32 = arith.constant 0 : i32
    %c0_i32_0 = arith.constant 0 : i32
    %c0_i32_1 = arith.constant 0 : i32
    return %c0_i32, %c0_i32_0 : i32, i32
  }
  func.func @transform_7(%arg0: i32) -> (i32, i32) {
    %c0_i32 = arith.constant 0 : i32
    %c0_i32_0 = arith.constant 0 : i32
    %c0_i32_1 = arith.constant 0 : i32
    return %c0_i32, %c0_i32_0 : i32, i32
  }
  func.func @transform_8(%arg0: i32) -> (i32, i32, i32) {
    %c0_i32 = arith.constant 0 : i32
    %c0_i32_0 = arith.constant 0 : i32
    %c0_i32_1 = arith.constant 0 : i32
    return %arg0, %c0_i32, %c0_i32_0 : i32, i32, i32
  }
}

</mosaic_0001>

<bundles_post_ra>
// kernel: resblock_pallas.1
= control target key start
LH: loop header
LB: loop body
LE: loop exit
PB: predicated region body
PF: predicated region fallthrough
CT: control target
= control target key end

     0   :  { %13 = vsyncpa [#allocation5], 0  ;;  %s6217_s0 = inlined_call_operand.vmem [shape: f32[2,8,8,64], index: 0, kind: input, shape index: {}]   ;;  %s6218_s1 = inlined_call_operand.vmem [shape: f32[1,64], index: 1, kind: input, shape index: {}]   ;;  %s6219_s2 = inlined_call_operand.vmem [shape: f32[1,64], index: 2, kind: input, shape index: {}]   ;;  %s6220_s3 = inlined_call_operand.vmem [shape: bf16[576,64], index: 3, kind: input, shape index: {}]   ;;  %s6221_s4 = inlined_call_operand.vmem [shape: f32[1,64], index: 4, kind: input, shape index: {}]   ;;  %s6222_s5 = inlined_call_operand.vmem [shape: f32[1,64], index: 5, kind: input, shape index: {}]   ;;  %s6223_s6 = inlined_call_operand.vmem [shape: bf16[576,64], index: 6, kind: input, shape index: {}]   ;;  %s6224_s7 = inlined_call_operand.vmem [shape: f32[64,64], index: 7, kind: input, shape index: {}]   ;;  %s6225_s8 = inlined_call_operand.hbm [shape: f32[2,64,64], index: 8, kind: output, shape index: {}]  }
   0x1   :  { %15 = vsyncpa [#allocation5 + $0x1], 0  ;;  %s5152_s27 = smov 0   ;;  %s5154_s28 = smov 0  }
   0x2   :  { %s5156_s29 = smov 0   ;;  %s5158_s30 = smov 0  }
   0x3 LB: > { %s5173_s9 = sadd.s32 4294967295, %s5096_s30   ;;  %s3991_s10 = sadd.s32 4294967294, %s5096_s30   ;;  %s5096_s30 = sphi %s5158_s30, %s6237_s30   ;;  %s5092_s29 = sphi %s5156_s29, %s6236_s29   ;;  %s5088_s28 = sphi %s5154_s28, %s6235_s28   ;;  %s5084_s27 = sphi %s5152_s27, %s6234_s27  }
   0x4   : > { %s5177_s11 = sadd.s32 1, %s5096_s30   ;;  %s201_s12 = sadd.s32 1, %s5092_s29 }
   0x5   : > { %s198_s13 = ssub.s32 %s5096_s30, %s5177_s11  ;;  %p211_p0 = scmp.ne.s32.totalorder %s5092_s29, %s5088_s28 }
   0x6   : > { %p199_p1 = scmp.eq.s32.totalorder %s198_s13, 0  ;;  %p212_p2 = scmp.eq.s32.totalorder %s5173_s9, 1 }
   0x7   : > { %p217_p3 = scmp.ne.s32.totalorder %s5088_s28, %s5084_s27  ;;  %p218_p4 = scmp.eq.s32.totalorder %s3991_s10, 1 }
   0x8   : > { %s5188_s14 = scalar_select %p199_p1, %s5092_s29, %s201_s12  }
   0x9   : > { %p5190_p5 = por %p212_p2, %p211_p0  ;;  %p5194_p6 = por %p218_p4, %p217_p3 }
   0xa   : > { %p3994_p7 = scmp.ge.s32.totalorder %s5096_s30, 1  ;;  %p265_p8 = scmp.lt.s32.totalorder %s5096_s30, 3 }
   0xc   : > { %p266_p9 = pnand %p3994_p7, %p265_p8 }
   0xd   : > { %v324_v0 = vld [vmem:[%s6224_s7] sm:$0xff] (!%p266_p9)  ;;  %v325_v1 = vld [vmem:[%s6224_s7 + $0x8] sm:$0xff] (!%p266_p9)  ;;  %v326_v2 = vld [vmem:[%s6224_s7 + $0x10] sm:$0xff] (!%p266_p9)  ;;  %v5098_v3 = vmov (!%p266_p9), 0.0|0.0   ;;  %vm5099_vm0 = vmmov (!%p266_p9), 0   ;;  %v5100_v6 = vmov (!%p266_p9), 0.0  }
   0xe   : > { %269 = sbr.rel (%p266_p9) target bundleno = 1446 (0x5a6), region = 52  ;;  %4663 = vmatprep.subr.bf16.mxu0 (!%p266_p9), %v5098_v3  ;;  %v5210_v4 = vpack.c.bf16 (!%p266_p9), %v325_v1, %v324_v0  ;;  %v327_v5 = vld [vmem:[%s6224_s7 + $0x18] sm:$0xff] (!%p266_p9)  ;;  %4609 = vmatprep.mubr.msk.f32.mxu0 (!%p266_p9), %vm5099_vm0, %v5100_v6  ;;  %p299_p10 = scmp.lt.s32.totalorder (!%p266_p9), %s5173_s9, 1  ;;  %v328_v7 = vld [vmem:[%s6224_s7 + $0x20] sm:$0xff] (!%p266_p9)  ;;  %v329_v8 = vld [vmem:[%s6224_s7 + $0x28] sm:$0xff] (!%p266_p9)  ;;  %vm305_vm1 = vcmask (!%p266_p9), 523264  }
   0xf   : > { %v5225_v9 = vpack.c.bf16 (!%p266_p9), %v327_v5, %v326_v2  ;;  %v330_v10 = vld [vmem:[%s6224_s7 + $0x30] sm:$0xff] (!%p266_p9)  ;;  %v331_v11 = vld [vmem:[%s6224_s7 + $0x38] sm:$0xff] (!%p266_p9)  ;;  %v5241_v12 = vpack.c.bf16 (!%p266_p9), %v329_v8, %v328_v7  ;;  %vm384_vm2 = vcmask (!%p266_p9), 1040384   ;;  %vm596_vm3 = vcmask (!%p266_p9), 520192   ;;  %s5103_s22 = smov (!%p266_p9), 64   ;;  %s296_s17 = sand.u32 (!%p266_p9), 1, %s5088_s28  }
  0x10   : > { %4665 = vmatpush3.bf16.msra.mxu0 (!%p266_p9), %v5210_v4  ;;  %v5243_v13 = vpack.c.bf16 (!%p266_p9), %v331_v11, %v330_v10  ;;  %vm597_vm4 = vsmask.f32 (!%p266_p9), 4354  ;;  %vm707_vm5 = vsmask.f32 (!%p266_p9), 3328  ;;  %vm708_vm6 = vsmask.f32 (!%p266_p9), 7440 }
  0x11   : > { %4666 = vmatprep.subr.bf16.mxu0 (!%p266_p9), %v5098_v3  ;;  %vm5406_vm7 = vmand (!%p266_p9), %vm596_vm3, %vm597_vm4  ;;  %vm899_vm8 = vcmask (!%p266_p9), 1042432   ;;  %vm900_vm9 = vcmask (!%p266_p9), 1046532   ;;  %vm846_vm12 = vcmask (!%p266_p9), 1048064   ;;  %s3995_s18 = sshll.u32 (!%p266_p9), %s296_s17, 6  ;;  %s5104_s26 = smov (!%p266_p9), [#allocation4]  }
  0x12   : > { %vm5461_vm10 = vmor (!%p266_p9), %vm707_vm5, %vm708_vm6  ;;  %s6145_s19 = scalar_lea.vmem (!%p266_p9), [#allocation4], %s3995_s18  ;;  %s5038_s10 = sshll.u32 (!%p266_p9), %s5104_s26, 4  ;;  %s5039_s10 = int_to_ptr.vmem [resolvable:$false] %s5038_s10 }
  0x13   : > { %vm5483_vm11 = vmor (!%p266_p9), %vm899_vm8, %vm900_vm9  ;;  %s5040_s12 = scalar_lea.vmem (!%p266_p9), %s5039_s10, 2048 }
  0x14   : > { %4668 = vmatpush3.bf16.msra.mxu0 (!%p266_p9), %v5225_v9 }
  0x15   : > { %s300_s20 = scalar_select %p299_p10, %s5173_s9, 1  ;;  %4669 = vmatprep.subr.bf16.mxu0 %v5098_v3 }
  0x17   : > { %s4397_s21 = sshll.u32 %s300_s20, 6  ;;  %s4398_s20 = sshll.u32 %s5173_s9, 10 }
  0x18   : > { %s5238_s24 = scalar_lea.vmem %s6217_s0, %s4397_s21  ;;  %4671 = vmatpush3.bf16.msra.mxu0 %v5241_v12  ;;  %s3929_s21 = sshll.u32 %s6145_s19, 4  ;;  %s6164_s21 = int_to_ptr.vmem [resolvable:$true] %s3929_s21 }
  0x19   : > { %v5246_v14 = vld [vmem:[%s5238_s24] sm:$0xff]  ;;  %v5249_v15 = vld [vmem:[%s5238_s24 + $0x8] sm:$0xff]  ;;  %v5252_v16 = vld [vmem:[%s5238_s24 + $0x10] sm:$0xff]  ;;  %4672 = vmatprep.subr.bf16.mxu0 %v5098_v3  ;;  %s6176_s9 = scalar_lea.sflag [#allocation5], %s296_s17  ;;  %s5034_s25 = scalar_lea.vmem %s6164_s21, 1024 }
  0x1a   : > { %v5256_v17 = vld [vmem:[%s5238_s24 + $0x18] sm:$0xff]  ;;  %v5259_v18 = vld [vmem:[%s5238_s24 + $0x20] sm:$0xff]  ;;  %v5262_v19 = vld [vmem:[%s5238_s24 + $0x28] sm:$0xff]  ;;  %v334_v20 = vsel %vm305_vm1, %v5246_v14, 0.0  ;;  %v335_v21 = vsel %vm305_vm1, %v5249_v15, 0.0  ;;  %v337_v22 = vsel %vm305_vm1, %v5252_v16, 0.0  ;;  %v355_v23 = vmul.f32 %v5246_v14, %v5246_v14  ;;  %p5035_p11 = scmp.ne.s32.totalorder %s6164_s21, %s5034_s25  ;;  %p5041_p0 = scmp.lt.s32.totalorder %s6164_s21, %s5039_s10 }
  0x1b   : > { %v5273_v24 = vld [vmem:[%s5238_s24 + $0x30] sm:$0xff]  ;;  %v5276_v25 = vld [vmem:[%s5238_s24 + $0x38] sm:$0xff]  ;;  %v336_v26 = vadd.f32 %v335_v21, %v334_v20  ;;  %v339_v27 = vsel %vm305_vm1, %v5256_v17, 0.0  ;;  %v341_v28 = vsel %vm305_vm1, %v5259_v18, 0.0  ;;  %v343_v29 = vsel %vm305_vm1, %v5262_v19, 0.0  ;;  %p5042_p1 = scmp.lt.s32.totalorder %s5040_s12, %s5034_s25 }
  0x1c   : > { %v345_v30 = vsel %vm305_vm1, %v5273_v24, 0.0  ;;  %v347_v31 = vsel %vm305_vm1, %v5276_v25, 0.0  ;;  %v356_v32 = vmul.f32 %v5249_v15, %v5249_v15  ;;  %v357_v33 = vmul.f32 %v5252_v16, %v5252_v16  ;;  %4674 = vmatpush3.bf16.msra.mxu0 %v5243_v13  ;;  %p5036_p12 = pnand %p5035_p11, %p5190_p5 }
  0x1d   : > { %v338_v34 = vadd.f32 %v337_v22, %v336_v26  ;;  %v358_v35 = vmul.f32 %v5256_v17, %v5256_v17  ;;  %v359_v36 = vmul.f32 %v5259_v18, %v5259_v18  ;;  %v360_v37 = vmul.f32 %v5262_v19, %v5262_v19  ;;  %v4786_v22 = vld [vmem:[%s6220_s3 + $0x40] sm:$0xff]   ;;  %v4788_v26 = vld [vmem:[%s6220_s3 + $0x48] sm:$0xff]   ;;  %p5043_p2 = por %p5042_p1, %p5041_p0 }
  0x1e   : > { %v361_v38 = vmul.f32 %v5273_v24, %v5273_v24  ;;  %v362_v39 = vmul.f32 %v5276_v25, %v5276_v25  ;;  %v363_v40 = vsel %vm305_vm1, %v355_v23, 0.0  ;;  %v364_v41 = vsel %vm305_vm1, %v356_v32, 0.0  ;;  %v4787_v23 = vld [vmem:[%s6220_s3] sm:$0xff]   ;;  %4408 = vmatprep.subr.bf16.mxu1 %v4786_v22  ;;  %v4791_v32 = vld [vmem:[%s6220_s3 + $0x10] sm:$0xff]   ;;  %p5037_p13 = pneg %p5036_p12 }
  0x1f   : > { %v340_v42 = vadd.f32 %v339_v27, %v338_v34  ;;  %v365_v43 = vadd.f32 %v364_v41, %v363_v40  ;;  %v366_v44 = vsel %vm305_vm1, %v357_v33, 0.0  ;;  %v368_v45 = vsel %vm305_vm1, %v358_v35, 0.0  ;;  %v4792_v27 = vld [vmem:[%s6220_s3 + $0xc0] sm:$0xff]   ;;  %4409 = vmatpush3.bf16.msra.mxu1 %v4787_v23  ;;  %v4794_v33 = vld [vmem:[%s6220_s3 + $0x58] sm:$0xff]  }
  0x20   : > { %v370_v46 = vsel %vm305_vm1, %v359_v36, 0.0  ;;  %v372_v47 = vsel %vm305_vm1, %v360_v37, 0.0  ;;  %v374_v48 = vsel %vm305_vm1, %v361_v38, 0.0  ;;  %v376_v49 = vsel %vm305_vm1, %v362_v39, 0.0  ;;  %4410 = vmatprep.subr.bf16.mxu1 %v4788_v26  ;;  %4448 = vmatprep.subr.bf16.mxu0 %v4792_v27  ;;  %v4795_v37 = vld [vmem:[%s6220_s3 + $0x18] sm:$0xff]   ;;  %p5044_p3 = pnand %p5043_p2, %p5037_p13 }
  0x21   : > { %v342_v50 = vadd.f32 %v341_v28, %v340_v42  ;;  %v367_v51 = vadd.f32 %v366_v44, %v365_v43  ;;  %v5101_v21 = vmov 0   ;;  %v4793_v28 = vld [vmem:[%s6220_s3 + $0x80] sm:$0xff]   ;;  %v5102_v42 = vmov 1966171168  }
  0x22   : > { %309 = vst.msk [vmem:[#allocation2 + $0x18] sm:$0xff] %vm305_vm1, %v5101_v21  ;;  %310 = vst.msk [vmem:[#allocation2 + $0x20] sm:$0xff] %vm305_vm1, %v5101_v21  ;;  %v469_v43 = vunpack.c.l.s4 %v5102_v42  ;;  %v471_v44 = vlaneseq }
  0x23   : > { %v344_v52 = vadd.f32 %v343_v29, %v342_v50  ;;  %v369_v53 = vadd.f32 %v368_v45, %v367_v51  ;;  %306 = vst.msk [vmem:[#allocation2] sm:$0xff] %vm305_vm1, %v5101_v21  ;;  %307 = vst.msk [vmem:[#allocation2 + $0x8] sm:$0xff] %vm305_vm1, %v5101_v21  ;;  %v4789_v29 = vld [vmem:[%s6220_s3 + $0x8] sm:$0xff]  }
  0x24   : > { %308 = vst.msk [vmem:[#allocation2 + $0x10] sm:$0xff] %vm305_vm1, %v5101_v21  ;;  %311 = vst.msk [vmem:[#allocation2 + $0x28] sm:$0xff] %vm305_vm1, %v5101_v21  ;;  %4411 = vmatpush3.bf16.msra.mxu1 %v4789_v29  ;;  %v470_v45 = vunpack.c.0.s8 %v469_v43 }
  0x25   : > { %v346_v54 = vadd.f32 %v345_v30, %v344_v52  ;;  %v371_v55 = vadd.f32 %v370_v46, %v369_v53  ;;  %312 = vst.msk [vmem:[#allocation2 + $0x30] sm:$0xff] %vm305_vm1, %v5101_v21  ;;  %313 = vst.msk [vmem:[#allocation2 + $0x38] sm:$0xff] %vm305_vm1, %v5101_v21  ;;  %v4796_v30 = vld [vmem:[%s6220_s3 + $0xc8] sm:$0xff]   ;;  %v472_v46 = vshrl.u32 %v471_v44, 7 }
  0x26   : > { %314 = vst.msk [vmem:[#allocation2 + $0x40] sm:$0xff] %vm305_vm1, %v5101_v21  ;;  %315 = vst.msk [vmem:[#allocation2 + $0x48] sm:$0xff] %vm305_vm1, %v5101_v21 }
  0x27   : > { %v348_v56 = vadd.f32 %v347_v31, %v346_v54  ;;  %v373_v57 = vadd.f32 %v372_v47, %v371_v55  ;;  %v4790_v31 = vld [vmem:[%s6220_s3 + $0x50] sm:$0xff]  }
  0x28   : > { %4412 = vmatprep.subr.bf16.mxu1 %v4790_v31 }
  0x29   : > { %v349_v58 = vrot.slane %v348_v56, 4  ;;  %v375_v59 = vadd.f32 %v374_v48, %v373_v57  ;;  %4413 = vmatpush3.bf16.msra.mxu1 %v4791_v32  ;;  %v5358_v48 = vsub.s32 %v470_v45, %v472_v46  ;;  %v332_v57 = vld [vmem:[%s6218_s1] sm:$0x1] }
  0x2a   : > { %4414 = vmatprep.subr.bf16.mxu1 %v4794_v33  ;;  %v659_v47 = vld [vmem:[#allocation2] sm:$0x1f] }
  0x2b   : > { %v350_v60 = vadd.f32 %v349_v58, %v348_v56  ;;  %v377_v61 = vadd.f32 %v376_v49, %v375_v59  ;;  %v4003_v49 = vcombine.low %v659_v47, %v659_v47  ;;  %v5369_v59 = vsub.s32 0, %v472_v46 }
  0x2d   : > { %v351_v62 = vrot.slane %v350_v60, 2  ;;  %v378_v63 = vrot.slane %v377_v61, 4  ;;  %4415 = vmatpush3.bf16.msra.mxu1 %v4795_v37  ;;  %v5360_v51 = vld [vmem:[#allocation2 + $0x48] sm:$0x1f]  ;;  %v711_v53 = vshrl.u32 %v4003_v49, 16  ;;  %v714_v54 = vshll.u32 %v4003_v49, 16 }
  0x2e   : > { %v4121_v56 = vcombine.low %v5360_v51, %v5360_v51  ;;  %v4122_v21 = vcombine.high %v5360_v51, %v5360_v51 }
  0x2f   : > { %v352_v0 = vadd.f32 %v351_v62, %v350_v60  ;;  %v379_v1 = vadd.f32 %v378_v63, %v377_v61  ;;  %v5371_v60 = vrot.slane %v711_v53, 4  ;;  %v5373_v61 = vrot.slane %v714_v54, 5 }
  0x30   : > { %v4004_v63 = vcombine.high %v659_v47, %v659_v47 }
  0x31   : > { %v353_v2 = vrot.slane %v352_v0, 1  ;;  %v380_v5 = vrot.slane %v379_v1, 2 }
  0x33   : > { %v381_v7 = vadd.f32 %v380_v5, %v379_v1  ;;  %v354_v8 = vadd.f32 %v353_v2, %v352_v0  ;;  %v1470_v0 = vshrl.u32 %v4121_v56, 16  ;;  %v333_v1 = vld [vmem:[%s6219_s2] sm:$0x1]  ;;  %v1473_v2 = vshll.u32 %v4121_v56, 16 }
  0x35   : > { %v382_v10 = vrot.slane %v381_v7, 1  ;;  %v5387_v22 = vrot.slane %v1470_v0, 4  ;;  %v5390_v26 = vrot.slane %v1473_v2, 5 }
  0x37   : > { %v383_v11 = vadd.f32 %v382_v10, %v381_v7  ;;  %v717_v10 = vor.u32 %v5373_v61, %v5371_v60  ;;  %v4813_v61 = vld [vmem:[%s6220_s3 + $0x98] sm:$0xff]  }
  0x39   : > { %v385_v20 = vsel %vm384_vm2, %v354_v8, %v383_v11  ;;  %v5379_v8 = vld [vmem:[#allocation2] sm:$0x1e]  ;;  %v718_v51 = vrot.slane %v717_v10, 4  ;;  %v4814_v10 = vld [vmem:[%s6220_s3 + $0x70] sm:$0xff]  }
  0x3a   : > { %4610 = vmatmul.mubr.msk.f32.vlgmr.msra.gmra.mrb[0].mxu0 %vm305_vm1, %v385_v20  ;;  %v5383_v20 = vshll.u32 %v4004_v63, 16  ;;  %v4023_v27 = vcombine.low %v5379_v8, %v5379_v8 }
  0x3b   : > { %4449 = vmatpush3.bf16.msra.mxu0 %v4793_v28  ;;  %v4024_v28 = vcombine.high %v5379_v8, %v5379_v8 }
  0x3c   : > { %4450 = vmatprep.subr.bf16.mxu0 %v4796_v30 }
  0x3d   : > { %v5473_v60 = vrot.slane %v4024_v28, 5 }
 0x10d   : > { %v455_v34 = vpop.f32.mrb[0].mxu0 }
 0x10e   : > { %v459_v35 = vmul.f32 %v455_v34, %v455_v34  ;;  %v4611_v36 = vpop.f32.mrb[1].mxu0 }
 0x110   : > { %v461_v38 = vrot.slane %v459_v35, 7 }
 0x112   : > { %v463_v39 = vsub.f32 %v455_v34, %v461_v38 }
 0x114   : > { %v464_v40 = vmax.f32 %v463_v39, 0.0 }
 0x116   : > { %v465_v41 = vadd.f32 1e-05, %v464_v40 }
 0x118   : > { %5022 = vrsqrt.f32 %v465_v41 }
 0x122   : > { %v5023_v50 = vpop.eup %5022 }
 0x123   : > { %v474_v52 = vrot.slane %v5023_v50, %v5358_v48 }
 0x125   : > { %v475_v55 = vcombine.high %v474_v52, %v474_v52 }
 0x127   : > { %v482_v58 = vrot.slane %v475_v55, %v5358_v48 }
 0x129   : > { %v484_v62 = vmul.f32 %v482_v58, %v332_v57 }
 0x12b   : > { %v485_v5 = vmul.f32 %v484_v62, %v455_v34  ;;  %v491_v7 = vrot.slane %v484_v62, %v5369_v59 }
 0x12d   : > { %v486_v11 = vsub.f32 %v333_v1, %v485_v5  ;;  %v493_v23 = vmul.f32 %v491_v7, %v5246_v14  ;;  %v494_v29 = vmul.f32 %v491_v7, %v5249_v15  ;;  %v495_v30 = vmul.f32 %v491_v7, %v5252_v16 }
 0x12e   : > { %v496_v31 = vmul.f32 %v491_v7, %v5256_v17  ;;  %v497_v33 = vmul.f32 %v491_v7, %v5259_v18  ;;  %v498_v14 = vmul.f32 %v491_v7, %v5262_v19  ;;  %v499_v34 = vmul.f32 %v491_v7, %v5273_v24 }
 0x12f   : > { %v505_v32 = vrot.slane %v486_v11, %v5369_v59  ;;  %v500_v35 = vmul.f32 %v491_v7, %v5276_v25 }
 0x131   : > { %v507_v36 = vadd.f32 %v505_v32, %v493_v23  ;;  %v508_v37 = vadd.f32 %v505_v32, %v494_v29  ;;  %v509_v38 = vadd.f32 %v505_v32, %v495_v30  ;;  %v510_v15 = vadd.f32 %v505_v32, %v496_v31  ;;  %v605_v23 = vld [vmem:[#allocation2 + $0x18] sm:$0x1f]  ;;  %v608_v29 = vld [vmem:[#allocation2 + $0x20] sm:$0x1f] }
 0x132   : > { %v511_v39 = vadd.f32 %v505_v32, %v497_v33  ;;  %v512_v16 = vadd.f32 %v505_v32, %v498_v14  ;;  %v513_v40 = vadd.f32 %v505_v32, %v499_v34  ;;  %v514_v17 = vadd.f32 %v505_v32, %v500_v35  ;;  %v599_v14 = vld [vmem:[#allocation2 + $0x8] sm:$0x1f]  ;;  %v602_v34 = vld [vmem:[#allocation2 + $0x10] sm:$0x1f] }
 0x133   : > { %v515_v41 = vmax.f32 %v507_v36, 0.0  ;;  %v516_v42 = vmax.f32 %v508_v37, 0.0  ;;  %v517_v43 = vmax.f32 %v509_v38, 0.0  ;;  %v518_v18 = vmax.f32 %v510_v15, 0.0 }
 0x134   : > { %v519_v44 = vmax.f32 %v511_v39, 0.0  ;;  %v520_v19 = vmax.f32 %v512_v16, 0.0  ;;  %v521_v45 = vmax.f32 %v513_v40, 0.0  ;;  %v522_v24 = vmax.f32 %v514_v17, 0.0  ;;  %v611_v39 = vld [vmem:[#allocation2 + $0x28] sm:$0x1f] }
 0x135   : > { %v523_v46 = vpack.c.bf16 %v515_v41, %v515_v41  ;;  %v524_v25 = vpack.c.bf16 %v516_v42, %v516_v42  ;;  %v525_v47 = vpack.c.bf16 %v517_v43, %v517_v43  ;;  %v526_v49 = vpack.c.bf16 %v518_v18, %v518_v18  ;;  %v614_v16 = vld [vmem:[#allocation2 + $0x30] sm:$0x1f]  ;;  %v4805_v43 = vld [vmem:[%s6220_s3 + $0x88] sm:$0xff]   ;;  %v4806_v18 = vld [vmem:[%s6220_s3 + $0x60] sm:$0xff]  }
 0x136   : > { %v527_v50 = vpack.c.bf16 %v519_v44, %v519_v44  ;;  %v528_v52 = vpack.c.bf16 %v520_v19, %v520_v19  ;;  %v529_v53 = vpack.c.bf16 %v521_v45, %v521_v45  ;;  %v530_v54 = vpack.c.bf16 %v522_v24, %v522_v24  ;;  %v4807_v44 = vld [vmem:[%s6220_s3 + $0x20] sm:$0xff]   ;;  %4451 = vmatpush3.bf16.msra.mxu0 %v4805_v43 }
 0x137   : > { %v532_v55 = vshrl.u32 %v523_v46, 16  ;;  %v535_v56 = vshll.u32 %v523_v46, 16  ;;  %v539_v57 = vshrl.u32 %v524_v25, 16  ;;  %v542_v58 = vshll.u32 %v524_v25, 16  ;;  %v617_v25 = vld [vmem:[#allocation2 + $0x38] sm:$0x1f]  ;;  %4416 = vmatprep.subr.bf16.mxu1 %v4806_v18 }
 0x138   : > { %v546_v62 = vshrl.u32 %v525_v47, 16  ;;  %v549_v63 = vshll.u32 %v525_v47, 16  ;;  %v553_v0 = vshrl.u32 %v526_v49, 16  ;;  %v556_v1 = vshll.u32 %v526_v49, 16  ;;  %v4808_v47 = vld [vmem:[%s6220_s3 + $0xd0] sm:$0xff]   ;;  %v4810_v49 = vld [vmem:[%s6220_s3 + $0x68] sm:$0xff]   ;;  %4417 = vmatpush3.bf16.msra.mxu1 %v4807_v44 }
 0x139   : > { %v534_v2 = vrot.slane %v532_v55, 7  ;;  %v541_v5 = vrot.slane %v539_v57, 7  ;;  %v560_v7 = vshrl.u32 %v527_v50, 16  ;;  %v563_v11 = vshll.u32 %v527_v50, 16  ;;  %v620_v55 = vld [vmem:[#allocation2 + $0x40] sm:$0x1f]  ;;  %4452 = vmatprep.subr.bf16.mxu0 %v4808_v47  ;;  %4418 = vmatprep.subr.bf16.mxu1 %v4810_v49 }
 0x13a   : > { %v548_v30 = vrot.slane %v546_v62, 7  ;;  %v555_v31 = vrot.slane %v553_v0, 7  ;;  %v567_v32 = vshrl.u32 %v528_v52, 16  ;;  %v570_v33 = vshll.u32 %v528_v52, 16  ;;  %v1518_v57 = vld [vmem:[#allocation2 + $0x48] sm:$0x1e] }
 0x13b   : > { %v562_v35 = vrot.slane %v560_v7, 7  ;;  %v574_v36 = vshrl.u32 %v529_v53, 16  ;;  %v577_v37 = vshll.u32 %v529_v53, 16  ;;  %v581_v38 = vshrl.u32 %v530_v54, 16 }
 0x13c   : > { %v569_v40 = vrot.slane %v567_v32, 7  ;;  %v584_v17 = vshll.u32 %v530_v54, 16  ;;  %v551_v41 = vor.u32 %v549_v63, %v548_v30  ;;  %v558_v42 = vor.u32 %v556_v1, %v555_v31  ;;  %v4812_v1 = vld [vmem:[%s6220_s3 + $0xd8] sm:$0xff]  }
 0x13d   : > { %v576_v19 = vrot.slane %v574_v36, 7  ;;  %v583_v45 = vrot.slane %v581_v38, 7  ;;  %v537_v24 = vor.u32 %v535_v56, %v534_v2  ;;  %v544_v46 = vor.u32 %v542_v58, %v541_v5  ;;  %v4809_v56 = vld [vmem:[%s6220_s3 + $0x90] sm:$0xff]  }
 0x13e   : > { %v606_v50 = vsel %vm5406_vm7, %v551_v41, %v605_v23  ;;  %v609_v52 = vsel %vm5406_vm7, %v558_v42, %v608_v29  ;;  %v565_v53 = vor.u32 %v563_v11, %v562_v35  ;;  %v572_v54 = vor.u32 %v570_v33, %v569_v40  ;;  %v4811_v23 = vld [vmem:[%s6220_s3 + $0x28] sm:$0xff]   ;;  %4453 = vmatpush3.bf16.msra.mxu0 %v4809_v56 }
 0x13f   : > { %607 = vst [vmem:[#allocation2 + $0x18] sm:$0x1f] %v606_v50  ;;  %610 = vst [vmem:[#allocation2 + $0x20] sm:$0x1f] %v609_v52  ;;  %v600_v58 = vsel %vm5406_vm7, %v537_v24, %v599_v14  ;;  %v603_v62 = vsel %vm5406_vm7, %v544_v46, %v602_v34  ;;  %v579_v63 = vor.u32 %v577_v37, %v576_v19  ;;  %v1479_v11 = vshll.u32 %v4122_v21, 16 }
 0x140   : > { %v586_v0 = vor.u32 %v584_v17, %v583_v45  ;;  %601 = vst [vmem:[#allocation2 + $0x8] sm:$0x1f] %v600_v58  ;;  %604 = vst [vmem:[#allocation2 + $0x10] sm:$0x1f] %v603_v62  ;;  %v612_v2 = vsel %vm5406_vm7, %v565_v53, %v611_v39  ;;  %v615_v5 = vsel %vm5406_vm7, %v572_v54, %v614_v16  ;;  %v722_v21 = vrot.slane %v5383_v20, 5 }
 0x141   : > { %v1476_v7 = vor.u32 %v5390_v26, %v5387_v22  ;;  %613 = vst [vmem:[#allocation2 + $0x28] sm:$0x1f] %v612_v2  ;;  %616 = vst [vmem:[#allocation2 + $0x30] sm:$0x1f] %v615_v5  ;;  %v618_v29 = vsel %vm5406_vm7, %v579_v63, %v617_v25  ;;  %v4141_v22 = vcombine.low %v1518_v57, %v1518_v57  ;;  %4454 = vmatprep.subr.bf16.mxu0 %v4812_v1 }
 0x142   : > { %v621_v30 = vsel %vm5406_vm7, %v586_v0, %v620_v55  ;;  %v4142_v26 = vcombine.high %v1518_v57, %v1518_v57  ;;  %619 = vst [vmem:[#allocation2 + $0x38] sm:$0x1f] %v618_v29  ;;  %v1481_v33 = vrot.slane %v1479_v11, 5  ;;  %v5468_v14 = vrot.slane %v4023_v27, 9  ;;  %4419 = vmatpush3.bf16.msra.mxu1 %v4811_v23  ;;  %4455 = vmatpush3.bf16.msra.mxu0 %v4813_v61  ;;  %v4817_v23 = vld [vmem:[%s6220_s3 + $0x30] sm:$0xff]  }
 0x143   : > { %622 = vst [vmem:[#allocation2 + $0x40] sm:$0x1f] %v621_v30  ;;  %v1477_v32 = vrot.slane %v1476_v7, 4  ;;  %v5487_v27 = vrot.slane %v4141_v22, 9  ;;  %4420 = vmatprep.subr.bf16.mxu1 %v4814_v10  ;;  %v5494_v38 = vsel %vm5461_vm10, %v718_v51, %v722_v21 }
 0x144   : > { %v5489_v8 = vrot.slane %v4142_v26, 5  ;;  %v905_v16 = vsel %vm5483_vm11, %v5468_v14, %v5473_v60 }
 0x145   : > { %v5498_v39 = vsel %vm5461_vm10, %v1477_v32, %v1481_v33 }
 0x146   : > { %v4734_v28 = vld [vmem:[#allocation2 + $0x18] ss:$8 sps:$4 sm:$0xff]   ;;  %4421 = vmatpush3.bf16.msra.mxu1 %v4817_v23 }
 0x147   : > { %v4735_v34 = vld [vmem:[#allocation2 + $0x8] ss:$8 sps:$4 sm:$0xff]   ;;  %984 = vrot.lane.b32.xlu1 %v4734_v28, %s5103_s22  ;;  %v662_v36 = vld [vmem:[#allocation2 + $0x18] sm:$0x1f] }
 0x148   : > { %v661_v35 = vld [vmem:[#allocation2 + $0x10] sm:$0x1f]  ;;  %v660_v37 = vld [vmem:[#allocation2 + $0x8] sm:$0x1f]  ;;  %982 = vrot.lane.b32.xlu0 %v4735_v34, %s5103_s22  ;;  %v4009_v41 = vcombine.low %v662_v36, %v662_v36  ;;  %v4010_v42 = vcombine.high %v662_v36, %v662_v36  ;;  %v1324_v54 = vld [vmem:[#allocation2 + $0x18] sm:$0x1f] }
 0x149   : > { %v4007_v40 = vcombine.low %v661_v35, %v661_v35  ;;  %v4008_v17 = vcombine.high %v661_v35, %v661_v35  ;;  %v1323_v43 = vld [vmem:[#allocation2 + $0x10] sm:$0x1f]  ;;  %v4005_v18 = vcombine.low %v660_v37, %v660_v37  ;;  %v4006_v44 = vcombine.high %v660_v37, %v660_v37  ;;  %v1178_v35 = vld [vmem:[#allocation2 + $0x8] sm:$0x1e] }
 0x14a   : > { %v4107_v19 = vcombine.low %v1323_v43, %v1323_v43  ;;  %v4108_v45 = vcombine.high %v1323_v43, %v1323_v43  ;;  %v753_v47 = vshrl.u32 %v4009_v41, 16  ;;  %v756_v49 = vshll.u32 %v4009_v41, 16  ;;  %v1179_v41 = vld [vmem:[#allocation2 + $0x10] sm:$0x1e] }
 0x14b   : > { %v739_v24 = vshrl.u32 %v4007_v40, 16  ;;  %v742_v46 = vshll.u32 %v4007_v40, 16  ;;  %v748_v25 = vshll.u32 %v4008_v17, 16  ;;  %v762_v50 = vshll.u32 %v4010_v42, 16  ;;  %v4818_v42 = vld [vmem:[%s6220_s3 + $0xe0] sm:$0xff]  }
 0x14c   : > { %v725_v52 = vshrl.u32 %v4005_v18, 16  ;;  %v728_v53 = vshll.u32 %v4005_v18, 16  ;;  %v755_v58 = vrot.slane %v753_v47, 4  ;;  %v758_v62 = vrot.slane %v756_v49, 5  ;;  %4456 = vmatprep.subr.bf16.mxu0 %v4818_v42 }
 0x14d   : > { %v741_v55 = vrot.slane %v739_v24, 4  ;;  %v744_v56 = vrot.slane %v742_v46, 5  ;;  %v750_v57 = vrot.slane %v748_v25, 5  ;;  %v764_v63 = vrot.slane %v762_v50, 5  ;;  %v4819_v24 = vld [vmem:[%s6220_s3 + $0xa0] sm:$0xff]   ;;  %v4820_v50 = vld [vmem:[%s6220_s3 + $0x78] sm:$0xff]  }
 0x14e   : > { %v727_v0 = vrot.slane %v725_v52, 4  ;;  %v730_v1 = vrot.slane %v728_v53, 5  ;;  %v734_v5 = vshll.u32 %v4006_v44, 16  ;;  %v4109_v7 = vcombine.low %v1324_v54, %v1324_v54  ;;  %4457 = vmatpush3.bf16.msra.mxu0 %v4819_v24  ;;  %4422 = vmatprep.subr.bf16.mxu1 %v4820_v50 }
 0x14f   : > { %v745_v2 = vor.u32 %v744_v56, %v741_v55  ;;  %v4110_v11 = vcombine.high %v1324_v54, %v1324_v54  ;;  %v759_v29 = vor.u32 %v758_v62, %v755_v58  ;;  %v1372_v22 = vshrl.u32 %v4107_v19, 16  ;;  %v664_v56 = vld [vmem:[#allocation2 + $0x28] sm:$0x1f] }
 0x150   : > { %v731_v30 = vor.u32 %v730_v1, %v727_v0  ;;  %v1375_v26 = vshll.u32 %v4107_v19, 16  ;;  %v736_v21 = vrot.slane %v734_v5, 5  ;;  %v1381_v32 = vshll.u32 %v4108_v45, 16  ;;  %v663_v45 = vld [vmem:[#allocation2 + $0x20] sm:$0x1f] }
 0x151   : > { %v746_v51 = vrot.slane %v745_v2, 4  ;;  %v1386_v33 = vshrl.u32 %v4109_v7, 16  ;;  %v760_v61 = vrot.slane %v759_v29, 4  ;;  %v1374_v28 = vrot.slane %v1372_v22, 4  ;;  %v4748_v1 = vld [vmem:[#allocation2 + $0x28] ss:$8 sps:$4 sm:$0xff]  }
 0x152   : > { %v732_v10 = vrot.slane %v731_v30, 4  ;;  %v1377_v34 = vrot.slane %v1375_v26, 5  ;;  %v1383_v37 = vrot.slane %v1381_v32, 5  ;;  %v1389_v17 = vshll.u32 %v4109_v7, 16  ;;  %v1325_v22 = vld [vmem:[#allocation2 + $0x20] sm:$0x1f] }
 0x153   : > { %v751_v36 = vsel %vm5461_vm10, %v746_v51, %v750_v57  ;;  %v1388_v40 = vrot.slane %v1386_v33, 4  ;;  %v765_v43 = vsel %vm5461_vm10, %v760_v61, %v764_v63  ;;  %v1395_v19 = vshll.u32 %v4110_v11, 16  ;;  %v4826_v63 = vld [vmem:[%s6220_s3 + $0x38] sm:$0xff]   ;;  %v1326_v26 = vld [vmem:[#allocation2 + $0x28] sm:$0x1f] }
 0x154   : > { %v737_v18 = vsel %vm5461_vm10, %v732_v10, %v736_v21  ;;  %v1378_v44 = vor.u32 %v1377_v34, %v1374_v28  ;;  %v4020_v46 = vcombine.low %v751_v36, %v765_v43  ;;  %v1391_v47 = vrot.slane %v1389_v17, 5  ;;  %4423 = vmatpush3.bf16.msra.mxu1 %v4826_v63  ;;  %v5533_v61 = vld [vmem:[#allocation2 + $0x18] sm:$0x1e]  ;;  %v4827_v10 = vld [vmem:[%s6220_s3 + $0xe8] sm:$0xff]  }
 0x155   : > { %v4019_v25 = vcombine.low %v5494_v38, %v737_v18  ;;  %v4075_v49 = vcombine.low %v1178_v35, %v1178_v35  ;;  %v1397_v53 = vrot.slane %v1395_v19, 5  ;;  %v4076_v54 = vcombine.high %v1178_v35, %v1178_v35  ;;  %v4816_v43 = vld [vmem:[#allocation2] ss:$8 sps:$4 sm:$0xff]   ;;  %4458 = vmatprep.subr.bf16.mxu0 %v4827_v10 }
 0x156   : > { %v1379_v52 = vrot.slane %v1378_v44, 4  ;;  %v4077_v55 = vcombine.low %v1179_v41, %v1179_v41  ;;  %836 = vrot.lane.b32.xlu1 %v4020_v46, %s5103_s22  ;;  %v1392_v57 = vor.u32 %v1391_v47, %v1388_v40  ;;  %v4078_v58 = vcombine.high %v1179_v41, %v1179_v41  ;;  %655 = vst.msk [vmem:[#allocation3] sm:$0xff] %vm305_vm1, %v4816_v43  ;;  %v4834_v10 = vld [vmem:[#allocation2 + $0x20] ss:$8 sps:$4 sm:$0xff]  }
 0x157   : > { %834 = vrot.lane.b32.xlu0 %v4019_v25, %s5103_s22  ;;  %v4091_v38 = vrot.slane %v4075_v49, 9  ;;  %v4011_v62 = vcombine.low %v663_v45, %v663_v45  ;;  %v1228_v2 = vrot.slane %v4076_v54, 5  ;;  %v4012_v7 = vcombine.high %v663_v45, %v663_v45  ;;  %v4821_v49 = vld [vmem:[#allocation2 + $0x10] ss:$8 sps:$4 sm:$0xff]   ;;  %v1181_v54 = vld [vmem:[#allocation2 + $0x20] sm:$0x1e] }
 0x158   : > { %v1384_v0 = vsel %vm5461_vm10, %v1379_v52, %v1383_v37  ;;  %v4092_v5 = vrot.slane %v4077_v55, 9  ;;  %v1393_v11 = vrot.slane %v1392_v57, 4  ;;  %v1232_v23 = vrot.slane %v4078_v58, 5  ;;  %v4815_v37 = vld [vmem:[#allocation2 + $0x10] ss:$8 sps:$4 sm:$0xff]   ;;  %v5554_v57 = vld [vmem:[%s6220_s3 + $0x100] sm:$0xff]  }
 0x159   : > { %v4013_v29 = vcombine.low %v664_v56, %v664_v56  ;;  %v4014_v30 = vcombine.high %v664_v56, %v664_v56  ;;  %v1229_v51 = vsel %vm5483_vm11, %v4091_v38, %v1228_v2  ;;  %v767_v21 = vshrl.u32 %v4011_v62, 16  ;;  %656 = vst.msk [vmem:[#allocation3 + $0x28] sm:$0xff] %vm305_vm1, %v4815_v37  ;;  %v4828_v56 = vld [vmem:[%s6220_s3 + $0xa8] sm:$0xff]   ;;  %1319 = vst.msk [vmem:[#allocation3 + $0x18] sm:$0xff] %vm305_vm1, %v4821_v49 }
 0x15a   : > { %v770_v32 = vshll.u32 %v4011_v62, 16  ;;  %v776_v33 = vshll.u32 %v4012_v7, 16  ;;  %v1398_v28 = vsel %vm5461_vm10, %v1393_v11, %v1397_v53  ;;  %v1233_v34 = vsel %vm5483_vm11, %v4092_v5, %v1232_v23  ;;  %4459 = vmatpush3.bf16.msra.mxu0 %v4828_v56  ;;  %4612 = vmatprep.subr.bf16.mxu1 %v5554_v57  ;;  %657 = vst.msk [vmem:[#allocation3 + $0x50] sm:$0xff] %vm305_vm1, %v4834_v10  ;;  %v4848_v56 = vld [vmem:[#allocation2 + $0x30] ss:$8 sps:$4 sm:$0xff]  }
 0x15b   : > { %986 = vrot.lane.b32.xlu0 %v4748_v1, %s5103_s22  ;;  %v781_v35 = vshrl.u32 %v4013_v29, 16  ;;  %v784_v36 = vshll.u32 %v4013_v29, 16  ;;  %v4123_v40 = vcombine.low %v1384_v0, %v1398_v28  ;;  %v4099_v17 = vcombine.low %v1229_v51, %v1233_v34  ;;  %v665_v0 = vld [vmem:[#allocation2 + $0x30] sm:$0x1f]  ;;  %658 = vst.msk [vmem:[#allocation3 + $0x78] sm:$0xff] %vm305_vm1, %v4848_v56 }
 0x15c   : > { %v769_v41 = vrot.slane %v767_v21, 4  ;;  %v772_v42 = vrot.slane %v770_v32, 5  ;;  %v778_v18 = vrot.slane %v776_v33, 5  ;;  %v790_v45 = vshll.u32 %v4014_v30, 16  ;;  %v4836_v28 = vld [vmem:[%s6220_s3 + $0xb0] sm:$0xff]  }
 0x15d   : > { %v783_v44 = vrot.slane %v781_v35, 4  ;;  %v786_v19 = vrot.slane %v784_v36, 5  ;;  %1495 = vrot.lane.b32.xlu1 %v4123_v40, %s5103_s22  ;;  %v4111_v46 = vcombine.low %v1325_v22, %v1325_v22  ;;  %v4112_v25 = vcombine.high %v1325_v22, %v1325_v22  ;;  %v666_v22 = vld [vmem:[#allocation2 + $0x38] sm:$0x1f]  ;;  %v4837_v40 = vld [vmem:[#allocation2 + $0x20] ss:$8 sps:$4 sm:$0xff]  }
 0x15e   : > { %v773_v24 = vor.u32 %v772_v42, %v769_v41  ;;  %v4113_v47 = vcombine.low %v1326_v26, %v1326_v26  ;;  %v792_v52 = vrot.slane %v790_v45, 5  ;;  %v4114_v53 = vcombine.high %v1326_v26, %v1326_v26  ;;  %v4835_v26 = vld [vmem:[%s6220_s3 + $0xf0] sm:$0xff]   ;;  %1320 = vst.msk [vmem:[#allocation3 + $0x40] sm:$0xff] %vm305_vm1, %v4837_v40  ;;  %v1328_v10 = vld [vmem:[#allocation2 + $0x38] sm:$0x1f] }
 0x15f   : > { %v787_v50 = vor.u32 %v786_v19, %v783_v44  ;;  %v4079_v55 = vcombine.low %v5533_v61, %v5533_v61  ;;  %v1400_v38 = vshrl.u32 %v4111_v46, 16  ;;  %v1403_v62 = vshll.u32 %v4111_v46, 16  ;;  %4460 = vmatprep.subr.bf16.mxu0 %v4835_v26  ;;  %v4859_v40 = vld [vmem:[#allocation2 + $0x40] ss:$8 sps:$4 sm:$0xff]  }
 0x160   : > { %v774_v58 = vrot.slane %v773_v24, 4  ;;  %v1409_v63 = vshll.u32 %v4112_v25, 16  ;;  %v1414_v2 = vshrl.u32 %v4113_v47, 16  ;;  %v1417_v5 = vshll.u32 %v4113_v47, 16  ;;  %4461 = vmatpush3.bf16.msra.mxu0 %v4836_v28  ;;  %v4843_v24 = vld [vmem:[%s6220_s3 + $0xb8] sm:$0xff]   ;;  %1322 = vst.msk [vmem:[#allocation3 + $0x90] sm:$0xff] %vm305_vm1, %v4859_v40 }
 0x161   : > { %v788_v1 = vrot.slane %v787_v50, 4  ;;  %v1423_v7 = vshll.u32 %v4114_v53, 16  ;;  %1270 = vrot.lane.b32.xlu1 %v4099_v17, %s5103_s22  ;;  %v1402_v23 = vrot.slane %v1400_v38, 4  ;;  %v1405_v29 = vrot.slane %v1403_v62, 5  ;;  %v4761_v25 = vld [vmem:[#allocation2 + $0x38] ss:$8 sps:$4 sm:$0xff]  }
 0x162   : > { %v779_v11 = vsel %vm5461_vm10, %v774_v58, %v778_v18  ;;  %v1411_v30 = vrot.slane %v1409_v63, 5  ;;  %v1416_v21 = vrot.slane %v1414_v2, 4  ;;  %v1419_v32 = vrot.slane %v1417_v5, 5  ;;  %v4842_v18 = vld [vmem:[%s6220_s3 + $0xf8] sm:$0xff]  }
 0x163   : > { %v793_v51 = vsel %vm5461_vm10, %v788_v1, %v792_v52  ;;  %v1425_v33 = vrot.slane %v1423_v7, 5  ;;  %v1406_v35 = vor.u32 %v1405_v29, %v1402_v23  ;;  %v4080_v36 = vcombine.high %v5533_v61, %v5533_v61  ;;  %4462 = vmatprep.subr.bf16.mxu0 %v4842_v18  ;;  %v1183_v1 = vld [vmem:[#allocation2 + $0x30] sm:$0x1e] }
 0x164   : > { %v4021_v34 = vcombine.low %v779_v11, %v793_v51  ;;  %v4081_v37 = vcombine.low %v1181_v54, %v1181_v54  ;;  %v1420_v17 = vor.u32 %v1419_v32, %v1416_v21  ;;  %v4082_v41 = vcombine.high %v1181_v54, %v1181_v54  ;;  %4463 = vmatpush3.bf16.msra.mxu0 %v4843_v24  ;;  %v1327_v23 = vld [vmem:[#allocation2 + $0x30] sm:$0x1f] }
 0x165   : > { %v4093_v42 = vrot.slane %v4079_v55, 9  ;;  %v4015_v43 = vcombine.low %v665_v0, %v665_v0  ;;  %v1407_v44 = vrot.slane %v1406_v35, 4  ;;  %v1236_v19 = vrot.slane %v4080_v36, 5  ;;  %4675 = vmatprep.subr.bf16.mxu0 %v5098_v3  ;;  %v4854_v28 = vld [vmem:[#allocation2 + $0x30] ss:$8 sps:$4 sm:$0xff]  }
 0x166   : > { %838 = vrot.lane.b32.xlu0 %v4021_v34, %s5103_s22  ;;  %v4094_v45 = vrot.slane %v4081_v37, 9  ;;  %v4016_v61 = vcombine.high %v665_v0, %v665_v0  ;;  %v1421_v46 = vrot.slane %v1420_v17, 4  ;;  %v1240_v47 = vrot.slane %v4082_v41, 5  ;;  %v1182_v0 = vld [vmem:[#allocation2 + $0x28] sm:$0x1e]  ;;  %1321 = vst.msk [vmem:[#allocation3 + $0x68] sm:$0xff] %vm305_vm1, %v4854_v28 }
 0x167   : > { %v4017_v49 = vcombine.low %v666_v22, %v666_v22  ;;  %v4018_v50 = vcombine.high %v666_v22, %v666_v22  ;;  %v1412_v52 = vsel %vm5461_vm10, %v1407_v44, %v1411_v30  ;;  %v1237_v53 = vsel %vm5483_vm11, %v4093_v42, %v1236_v19 }
 0x168   : > { %v795_v54 = vshrl.u32 %v4015_v43, 16  ;;  %v798_v55 = vshll.u32 %v4015_v43, 16  ;;  %v1426_v58 = vsel %vm5461_vm10, %v1421_v46, %v1425_v33  ;;  %v1241_v38 = vsel %vm5483_vm11, %v4094_v45, %v1240_v47 }
 0x169   : > { %v804_v62 = vshll.u32 %v4016_v61, 16  ;;  %v809_v63 = vshrl.u32 %v4017_v49, 16  ;;  %v4124_v2 = vcombine.low %v1412_v52, %v1426_v58  ;;  %v4100_v5 = vcombine.low %v1237_v53, %v1241_v38  ;;  %v1184_v53 = vld [vmem:[#allocation2 + $0x38] sm:$0x1e]  ;;  %v1185_v38 = vld [vmem:[#allocation2 + $0x40] sm:$0x1e] }
 0x16a   : > { %988 = vrot.lane.b32.xlu0 %v4761_v25, %s5103_s22  ;;  %v797_v7 = vrot.slane %v795_v54, 4  ;;  %v800_v11 = vrot.slane %v798_v55, 5  ;;  %v812_v22 = vshll.u32 %v4017_v49, 16  ;;  %v818_v26 = vshll.u32 %v4018_v50, 16 }
 0x16b   : > { %v806_v29 = vrot.slane %v804_v62, 5  ;;  %v811_v30 = vrot.slane %v809_v63, 4  ;;  %1497 = vrot.lane.b32.xlu1 %v4124_v2, %s5103_s22  ;;  %v4083_v21 = vcombine.low %v1182_v0, %v1182_v0  ;;  %v4084_v32 = vcombine.high %v1182_v0, %v1182_v0  ;;  %v1329_v2 = vld [vmem:[#allocation2 + $0x40] sm:$0x1f] }
 0x16c   : > { %v801_v51 = vor.u32 %v800_v11, %v797_v7  ;;  %v4085_v33 = vcombine.low %v1183_v1, %v1183_v1  ;;  %v814_v34 = vrot.slane %v812_v22, 5  ;;  %v820_v35 = vrot.slane %v818_v26, 5 }
 0x16d   : > { %v4086_v36 = vcombine.high %v1183_v1, %v1183_v1  ;;  %v4115_v37 = vcombine.low %v1327_v23, %v1327_v23  ;;  %v4095_v41 = vrot.slane %v4083_v21, 9  ;;  %v1244_v42 = vrot.slane %v4084_v32, 5 }
 0x16e   : > { %v802_v17 = vrot.slane %v801_v51, 4  ;;  %v4096_v43 = vrot.slane %v4085_v33, 9  ;;  %v815_v18 = vor.u32 %v814_v34, %v811_v30  ;;  %v4116_v19 = vcombine.high %v1327_v23, %v1327_v23 }
 0x16f   : > { %v1248_v44 = vrot.slane %v4086_v36, 5  ;;  %v4117_v45 = vcombine.low %v1328_v10, %v1328_v10  ;;  %1272 = vrot.lane.b32.xlu1 %v4100_v5, %s5103_s22  ;;  %v1245_v24 = vsel %vm5483_vm11, %v4095_v41, %v1244_v42  ;;  %v4118_v46 = vcombine.high %v1328_v10, %v1328_v10  ;;  %v853_v10 = vld [vmem:[#allocation2 + $0x10] sm:$0x1e] }
 0x170   : > { %v807_v61 = vsel %vm5461_vm10, %v802_v17, %v806_v29  ;;  %v1428_v25 = vshrl.u32 %v4115_v37, 16  ;;  %v816_v47 = vrot.slane %v815_v18, 4  ;;  %v1431_v50 = vshll.u32 %v4115_v37, 16 }
 0x171   : > { %v1249_v49 = vsel %vm5483_vm11, %v4096_v43, %v1248_v44  ;;  %v1437_v52 = vshll.u32 %v4116_v19, 16  ;;  %v1442_v56 = vshrl.u32 %v4117_v45, 16  ;;  %v1445_v58 = vshll.u32 %v4117_v45, 16  ;;  %v854_v44 = vld [vmem:[#allocation2 + $0x18] sm:$0x1e] }
 0x172   : > { %v4101_v54 = vcombine.low %v1245_v24, %v1249_v49  ;;  %v1430_v55 = vrot.slane %v1428_v25, 4  ;;  %v821_v62 = vsel %vm5461_vm10, %v816_v47, %v820_v35  ;;  %v1433_v63 = vrot.slane %v1431_v50, 5  ;;  %v852_v25 = vld [vmem:[#allocation2 + $0x8] sm:$0x1e]  ;;  %v855_v47 = vld [vmem:[#allocation2 + $0x20] sm:$0x1e] }
 0x173   : > { %v1439_v0 = vrot.slane %v1437_v52, 5  ;;  %v1451_v1 = vshll.u32 %v4118_v46, 16  ;;  %v4022_v5 = vcombine.low %v807_v61, %v821_v62  ;;  %v1444_v7 = vrot.slane %v1442_v56, 4 }
 0x174   : > { %1274 = vrot.lane.b32.xlu1 %v4101_v54, %s5103_s22  ;;  %v1447_v11 = vrot.slane %v1445_v58, 5  ;;  %v4087_v23 = vcombine.low %v1184_v53, %v1184_v53  ;;  %v1434_v29 = vor.u32 %v1433_v63, %v1430_v55  ;;  %v4088_v22 = vcombine.high %v1184_v53, %v1184_v53 }
 0x175   : > { %v1453_v30 = vrot.slane %v1451_v1, 5  ;;  %v4089_v26 = vcombine.low %v1185_v38, %v1185_v38  ;;  %840 = vrot.lane.b32.xlu0 %v4022_v5, %s5103_s22  ;;  %v4090_v21 = vcombine.high %v1185_v38, %v1185_v38  ;;  %v4119_v33 = vcombine.low %v1329_v2, %v1329_v2  ;;  %v856_v38 = vld [vmem:[#allocation2 + $0x28] sm:$0x1e] }
 0x176   : > { %v1448_v51 = vor.u32 %v1447_v11, %v1444_v7  ;;  %v4097_v32 = vrot.slane %v4087_v23, 9  ;;  %v1435_v28 = vrot.slane %v1434_v29, 4  ;;  %v1252_v34 = vrot.slane %v4088_v22, 5 }
 0x177   : > { %v4098_v35 = vrot.slane %v4089_v26, 9  ;;  %v4120_v36 = vcombine.high %v1329_v2, %v1329_v2  ;;  %v1256_v40 = vrot.slane %v4090_v21, 5  ;;  %v1456_v17 = vshrl.u32 %v4119_v33, 16  ;;  %v999_v26 = vld [vmem:[#allocation2 + $0x10] sm:$0x1f] }
 0x178   : > { %v1449_v37 = vrot.slane %v1448_v51, 4  ;;  %v1459_v41 = vshll.u32 %v4119_v33, 16  ;;  %v1440_v42 = vsel %vm5461_vm10, %v1435_v28, %v1439_v0  ;;  %v1253_v43 = vsel %vm5483_vm11, %v4097_v32, %v1252_v34 }
 0x179   : > { %v1465_v18 = vshll.u32 %v4120_v36, 16  ;;  %v4027_v19 = vcombine.low %v853_v10, %v853_v10  ;;  %v1257_v61 = vsel %vm5483_vm11, %v4098_v35, %v1256_v40  ;;  %v1458_v24 = vrot.slane %v1456_v17, 4 }
 0x17a   : > { %v1454_v45 = vsel %vm5461_vm10, %v1449_v37, %v1453_v30  ;;  %v1461_v46 = vrot.slane %v1459_v41, 5  ;;  %v4102_v50 = vcombine.low %v1253_v43, %v1257_v61  ;;  %v4028_v53 = vcombine.high %v853_v10, %v853_v10  ;;  %v998_v10 = vld [vmem:[#allocation2 + $0x8] sm:$0x1f]  ;;  %v857_v37 = vld [vmem:[#allocation2 + $0x30] sm:$0x1e] }
 0x17b   : > { %v4125_v49 = vcombine.low %v1440_v42, %v1454_v45  ;;  %v1467_v52 = vrot.slane %v1465_v18, 5  ;;  %v4029_v55 = vcombine.low %v854_v44, %v854_v44  ;;  %v4030_v56 = vcombine.high %v854_v44, %v854_v44 }
 0x17c   : > { %v1462_v54 = vor.u32 %v1461_v46, %v1458_v24  ;;  %v4041_v58 = vrot.slane %v4027_v19, 9  ;;  %1276 = vrot.lane.b32.xlu1 %v4102_v50, %s5103_s22  ;;  %v912_v62 = vrot.slane %v4028_v53, 5  ;;  %v4025_v63 = vcombine.low %v852_v25, %v852_v25  ;;  %v1000_v53 = vld [vmem:[#allocation2 + $0x18] sm:$0x1f] }
 0x17d   : > { %1499 = vrot.lane.b32.xlu0 %v4125_v49, %s5103_s22  ;;  %v4026_v0 = vcombine.high %v852_v25, %v852_v25  ;;  %v4031_v1 = vcombine.low %v855_v47, %v855_v47  ;;  %v4042_v5 = vrot.slane %v4029_v55, 9  ;;  %v916_v7 = vrot.slane %v4030_v56, 5 }
 0x17e   : > { %v1463_v2 = vrot.slane %v1462_v54, 4  ;;  %v4032_v11 = vcombine.high %v855_v47, %v855_v47  ;;  %v913_v23 = vsel %vm5483_vm11, %v4041_v58, %v912_v62  ;;  %v4040_v29 = vrot.slane %v4025_v63, 9 }
 0x17f   : > { %v908_v30 = vrot.slane %v4026_v0, 5  ;;  %v4033_v22 = vcombine.low %v856_v38, %v856_v38  ;;  %v917_v21 = vsel %vm5483_vm11, %v4042_v5, %v916_v7  ;;  %v4034_v32 = vcombine.high %v856_v38, %v856_v38  ;;  %v1001_v38 = vld [vmem:[#allocation2 + $0x20] sm:$0x1f] }
 0x180   : > { %v1468_v51 = vsel %vm5461_vm10, %v1463_v2, %v1467_v52  ;;  %v4043_v33 = vrot.slane %v4031_v1, 9  ;;  %v4048_v34 = vcombine.low %v913_v23, %v917_v21  ;;  %v920_v36 = vrot.slane %v4032_v11, 5 }
 0x181   : > { %v4126_v28 = vcombine.low %v1468_v51, %v5498_v39  ;;  %v909_v35 = vsel %vm5483_vm11, %v4040_v29, %v908_v30  ;;  %v4044_v17 = vrot.slane %v4033_v22, 9  ;;  %v924_v41 = vrot.slane %v4034_v32, 5 }
 0x182   : > { %v4047_v40 = vcombine.low %v905_v16, %v909_v35  ;;  %v4057_v42 = vcombine.low %v999_v26, %v999_v26  ;;  %951 = vst.msk [vmem:[#allocation3 + $0x30] sm:$0xff] %vm305_vm1, %v4048_v34  ;;  %v921_v39 = vsel %vm5483_vm11, %v4043_v33, %v920_v36  ;;  %v4058_v43 = vcombine.high %v999_v26, %v999_v26  ;;  %v858_v16 = vld [vmem:[#allocation2 + $0x38] sm:$0x1e]  ;;  %v1002_v35 = vld [vmem:[#allocation2 + $0x28] sm:$0x1f] }
 0x183   : > { %1501 = vrot.lane.b32.xlu0 %v4126_v28, %s5103_s22  ;;  %v4055_v18 = vcombine.low %v998_v10, %v998_v10  ;;  %v4056_v44 = vcombine.high %v998_v10, %v998_v10  ;;  %v925_v19 = vsel %vm5483_vm11, %v4044_v17, %v924_v41  ;;  %v4035_v45 = vcombine.low %v857_v37, %v857_v37  ;;  %v1003_v41 = vld [vmem:[#allocation2 + $0x30] sm:$0x1f] }
 0x184   : > { %950 = vst.msk [vmem:[#allocation3 + $0x8] sm:$0xff] %vm305_vm1, %v4047_v40  ;;  %v1061_v14 = vshrl.u32 %v4057_v42, 16  ;;  %v1064_v60 = vshll.u32 %v4057_v42, 16  ;;  %v4049_v61 = vcombine.low %v921_v39, %v925_v19  ;;  %v1070_v24 = vshll.u32 %v4058_v43, 16 }
 0x185   : > { %v1047_v46 = vshrl.u32 %v4055_v18, 16  ;;  %v1050_v25 = vshll.u32 %v4055_v18, 16  ;;  %v1056_v50 = vshll.u32 %v4056_v44, 16  ;;  %v4036_v52 = vcombine.high %v857_v37, %v857_v37 }
 0x186   : > { %v1063_v47 = vrot.slane %v1061_v14, 4  ;;  %v1066_v49 = vrot.slane %v1064_v60, 5  ;;  %952 = vst.msk [vmem:[#allocation3 + $0x58] sm:$0xff] %vm305_vm1, %v4049_v61  ;;  %v1072_v54 = vrot.slane %v1070_v24, 5  ;;  %v4037_v58 = vcombine.low %v858_v16, %v858_v16 }
 0x187   : > { %v1049_v55 = vrot.slane %v1047_v46, 4  ;;  %v1052_v56 = vrot.slane %v1050_v25, 5  ;;  %v1058_v63 = vrot.slane %v1056_v50, 5  ;;  %v4038_v0 = vcombine.high %v858_v16, %v858_v16 }
 0x188   : > { %v1067_v62 = vor.u32 %v1066_v49, %v1063_v47  ;;  %v4045_v1 = vrot.slane %v4035_v45, 9  ;;  %v928_v5 = vrot.slane %v4036_v52, 5  ;;  %v4046_v7 = vrot.slane %v4037_v58, 9 }
 0x189   : > { %v1053_v2 = vor.u32 %v1052_v56, %v1049_v55  ;;  %v4059_v11 = vcombine.low %v1000_v53, %v1000_v53  ;;  %v932_v29 = vrot.slane %v4038_v0, 5  ;;  %v4060_v30 = vcombine.high %v1000_v53, %v1000_v53  ;;  %v1004_v55 = vld [vmem:[#allocation2 + $0x38] sm:$0x1f] }
 0x18a   : > { %v1068_v23 = vrot.slane %v1067_v62, 4  ;;  %v4061_v22 = vcombine.low %v1001_v38, %v1001_v38  ;;  %v929_v51 = vsel %vm5483_vm11, %v4045_v1, %v928_v5  ;;  %v4062_v21 = vcombine.high %v1001_v38, %v1001_v38 }
 0x18b   : > { %v1054_v26 = vrot.slane %v1053_v2, 4  ;;  %v1075_v32 = vshrl.u32 %v4059_v11, 16  ;;  %v933_v10 = vsel %vm5483_vm11, %v4046_v7, %v932_v29  ;;  %v1078_v28 = vshll.u32 %v4059_v11, 16 }
 0x18c   : > { %v1073_v33 = vsel %vm5461_vm10, %v1068_v23, %v1072_v54  ;;  %v1084_v34 = vshll.u32 %v4060_v30, 16  ;;  %v4050_v37 = vcombine.low %v929_v51, %v933_v10  ;;  %v1089_v17 = vshrl.u32 %v4061_v22, 16 }
 0x18d   : > { %v1059_v36 = vsel %vm5461_vm10, %v1054_v26, %v1058_v63  ;;  %v1077_v40 = vrot.slane %v1075_v32, 4  ;;  %v1080_v39 = vrot.slane %v1078_v28, 5  ;;  %v1092_v18 = vshll.u32 %v4061_v22, 16  ;;  %v1005_v63 = vld [vmem:[#allocation2 + $0x40] sm:$0x1f] }
 0x18e   : > { %v4071_v42 = vcombine.low %v1059_v36, %v1073_v33  ;;  %v1086_v43 = vrot.slane %v1084_v34, 5  ;;  %953 = vst.msk [vmem:[#allocation3 + $0x80] sm:$0xff] %vm305_vm1, %v4050_v37  ;;  %v1091_v44 = vrot.slane %v1089_v17, 4  ;;  %v1098_v19 = vshll.u32 %v4062_v21, 16  ;;  %v1511_v37 = vld [vmem:[#allocation2 + $0x10] sm:$0x1e] }
 0x18f   : > { %v4063_v14 = vcombine.low %v1002_v35, %v1002_v35  ;;  %v4064_v60 = vcombine.high %v1002_v35, %v1002_v35  ;;  %v1081_v16 = vor.u32 %v1080_v39, %v1077_v40  ;;  %v1094_v45 = vrot.slane %v1092_v18, 5  ;;  %v1512_v39 = vld [vmem:[#allocation2 + $0x18] sm:$0x1e] }
 0x190   : > { %1174 = vst.msk [vmem:[#allocation3 + $0x10] sm:$0xff] %vm305_vm1, %v4071_v42  ;;  %v4065_v61 = vcombine.low %v1003_v41, %v1003_v41  ;;  %v4066_v24 = vcombine.high %v1003_v41, %v1003_v41  ;;  %v1100_v46 = vrot.slane %v1098_v19, 5  ;;  %v4067_v23 = vcombine.low %v1004_v55, %v1004_v55 }
 0x191   : > { %v1103_v25 = vshrl.u32 %v4063_v14, 16  ;;  %v1106_v47 = vshll.u32 %v4063_v14, 16  ;;  %v1112_v49 = vshll.u32 %v4064_v60, 16  ;;  %v1082_v50 = vrot.slane %v1081_v16, 4  ;;  %v1513_v14 = vld [vmem:[#allocation2 + $0x20] sm:$0x1e] }
 0x192   : > { %v1095_v52 = vor.u32 %v1094_v45, %v1091_v44  ;;  %v1117_v53 = vshrl.u32 %v4065_v61, 16  ;;  %v1120_v54 = vshll.u32 %v4065_v61, 16  ;;  %v1126_v62 = vshll.u32 %v4066_v24, 16 }
 0x193   : > { %v1105_v56 = vrot.slane %v1103_v25, 4  ;;  %v1108_v58 = vrot.slane %v1106_v47, 5  ;;  %v1114_v38 = vrot.slane %v1112_v49, 5  ;;  %v1087_v0 = vsel %vm5461_vm10, %v1082_v50, %v1086_v43  ;;  %v1514_v49 = vld [vmem:[#allocation2 + $0x28] sm:$0x1e] }
 0x194   : > { %v1096_v1 = vrot.slane %v1095_v52, 4  ;;  %v1119_v2 = vrot.slane %v1117_v53, 4  ;;  %v1122_v5 = vrot.slane %v1120_v54, 5  ;;  %v1128_v11 = vrot.slane %v1126_v62, 5 }
 0x195   : > { %v1109_v7 = vor.u32 %v1108_v58, %v1105_v56  ;;  %v4068_v29 = vcombine.high %v1004_v55, %v1004_v55  ;;  %v4069_v26 = vcombine.low %v1005_v63, %v1005_v63  ;;  %v4070_v51 = vcombine.high %v1005_v63, %v1005_v63 }
 0x196   : > { %v1101_v30 = vsel %vm5461_vm10, %v1096_v1, %v1100_v46  ;;  %v1123_v22 = vor.u32 %v1122_v5, %v1119_v2  ;;  %v1131_v33 = vshrl.u32 %v4067_v23, 16  ;;  %v1134_v10 = vshll.u32 %v4067_v23, 16  ;;  %v1515_v2 = vld [vmem:[#allocation2 + $0x30] sm:$0x1e]  ;;  %v1516_v5 = vld [vmem:[#allocation2 + $0x38] sm:$0x1e] }
 0x197   : > { %v4072_v21 = vcombine.low %v1087_v0, %v1101_v30  ;;  %v1110_v32 = vrot.slane %v1109_v7, 4  ;;  %v1140_v34 = vshll.u32 %v4068_v29, 16  ;;  %v1145_v35 = vshrl.u32 %v4069_v26, 16  ;;  %v1517_v30 = vld [vmem:[#allocation2 + $0x40] sm:$0x1e] }
 0x198   : > { %v1124_v28 = vrot.slane %v1123_v22, 4  ;;  %v1148_v36 = vshll.u32 %v4069_v26, 16  ;;  %v1133_v17 = vrot.slane %v1131_v33, 4  ;;  %v1136_v41 = vrot.slane %v1134_v10, 5 }
 0x199   : > { %1175 = vst.msk [vmem:[#allocation3 + $0x38] sm:$0xff] %vm305_vm1, %v4072_v21  ;;  %v1115_v40 = vsel %vm5461_vm10, %v1110_v32, %v1114_v38  ;;  %v1154_v42 = vshll.u32 %v4070_v51, 16  ;;  %v1142_v18 = vrot.slane %v1140_v34, 5  ;;  %v1147_v44 = vrot.slane %v1145_v35, 4 }
 0x19a   : > { %v1129_v43 = vsel %vm5461_vm10, %v1124_v28, %v1128_v11  ;;  %v1150_v19 = vrot.slane %v1148_v36, 5  ;;  %v1137_v16 = vor.u32 %v1136_v41, %v1133_v17  ;;  %v4127_v61 = vcombine.low %v1511_v37, %v1511_v37 }
 0x19b   : > { %v4073_v60 = vcombine.low %v1115_v40, %v1129_v43  ;;  %v1156_v45 = vrot.slane %v1154_v42, 5  ;;  %v4128_v46 = vcombine.high %v1511_v37, %v1511_v37  ;;  %v4129_v25 = vcombine.low %v1512_v39, %v1512_v39 }
 0x19c   : > { %v1151_v24 = vor.u32 %v1150_v19, %v1147_v44  ;;  %v4130_v47 = vcombine.high %v1512_v39, %v1512_v39  ;;  %v1138_v50 = vrot.slane %v1137_v16, 4  ;;  %v4143_v52 = vrot.slane %v4127_v61, 9 }
 0x19d   : > { %1176 = vst.msk [vmem:[#allocation3 + $0x60] sm:$0xff] %vm305_vm1, %v4073_v60  ;;  %v4131_v53 = vcombine.low %v1513_v14, %v1513_v14  ;;  %v4132_v54 = vcombine.high %v1513_v14, %v1513_v14  ;;  %v1561_v56 = vrot.slane %v4128_v46, 5  ;;  %v4144_v58 = vrot.slane %v4129_v25, 9 }
 0x19e   : > { %v1152_v55 = vrot.slane %v1151_v24, 4  ;;  %v1565_v38 = vrot.slane %v4130_v47, 5  ;;  %v1143_v62 = vsel %vm5461_vm10, %v1138_v50, %v1142_v18  ;;  %v4133_v63 = vcombine.low %v1514_v49, %v1514_v49 }
 0x19f   : > { %v4134_v0 = vcombine.high %v1514_v49, %v1514_v49  ;;  %v4145_v1 = vrot.slane %v4131_v53, 9  ;;  %v1562_v11 = vsel %vm5483_vm11, %v4143_v52, %v1561_v56  ;;  %v1569_v29 = vrot.slane %v4132_v54, 5  ;;  %v4849_v49 = vld [vmem:[%s6220_s3 + $0x108] sm:$0xff]   ;;  %v4860_v54 = vld [vmem:[%s6220_s3 + $0x110] sm:$0xff]  }
 0x1a0   : > { %v1157_v7 = vsel %vm5461_vm10, %v1152_v55, %v1156_v45  ;;  %v1566_v23 = vsel %vm5483_vm11, %v4144_v58, %v1565_v38  ;;  %v4146_v51 = vrot.slane %v4133_v63, 9  ;;  %v4135_v33 = vcombine.low %v1515_v2, %v1515_v2  ;;  %v4861_v58 = vld [vmem:[%s6220_s3 + $0x118] sm:$0xff]  }
 0x1a1   : > { %v4074_v22 = vcombine.low %v1143_v62, %v1157_v7  ;;  %v4151_v26 = vcombine.low %v1562_v11, %v1566_v23  ;;  %v1573_v21 = vrot.slane %v4134_v0, 5  ;;  %v1570_v32 = vsel %vm5483_vm11, %v4145_v1, %v1569_v29 }
 0x1a2   : > { %v4136_v10 = vcombine.high %v1515_v2, %v1515_v2  ;;  %v4137_v28 = vcombine.low %v1516_v5, %v1516_v5  ;;  %v4138_v35 = vcombine.high %v1516_v5, %v1516_v5  ;;  %v4139_v36 = vcombine.low %v1517_v30, %v1517_v30 }
 0x1a3   : > { %1177 = vst.msk [vmem:[#allocation3 + $0x88] sm:$0xff] %vm305_vm1, %v4074_v22  ;;  %1607 = vst.msk [vmem:[#allocation3 + $0x20] sm:$0xff] %vm305_vm1, %v4151_v26  ;;  %v1574_v34 = vsel %vm5483_vm11, %v4146_v51, %v1573_v21  ;;  %v4140_v37 = vcombine.high %v1517_v30, %v1517_v30  ;;  %v4147_v17 = vrot.slane %v4135_v33, 9  ;;  %v1590_v44 = vsel %vm5483_vm11, %v5487_v27, %v5489_v8 }
 0x1a4   : > { %v4152_v40 = vcombine.low %v1570_v32, %v1574_v34  ;;  %v1577_v41 = vrot.slane %v4136_v10, 5  ;;  %v4148_v42 = vrot.slane %v4137_v28, 9  ;;  %v1581_v39 = vrot.slane %v4138_v35, 5 }
 0x1a5   : > { %v4149_v43 = vrot.slane %v4139_v36, 9  ;;  %v1585_v18 = vrot.slane %v4140_v37, 5 }
 0x1a6   : > { %1608 = vst.msk [vmem:[#allocation3 + $0x48] sm:$0xff] %vm305_vm1, %v4152_v40  ;;  %v1578_v19 = vsel %vm5483_vm11, %v4147_v17, %v1577_v41  ;;  %v1582_v14 = vsel %vm5483_vm11, %v4148_v42, %v1581_v39 }
 0x1a7   : > { %v1586_v60 = vsel %vm5483_vm11, %v4149_v43, %v1585_v18  ;;  %v4153_v16 = vcombine.low %v1578_v19, %v1582_v14 }
 0x1a8   : > { %v4154_v45 = vcombine.low %v1586_v60, %v1590_v44 }
 0x1a9   : > { %1609 = vst.msk [vmem:[#allocation3 + $0x70] sm:$0xff] %vm305_vm1, %v4153_v16 }
 0x1aa   : > { %1610 = vst.msk [vmem:[#allocation3 + $0x98] sm:$0xff] %vm305_vm1, %v4154_v45 }
 0x1ad   : > { %v1620_v51 = vld [vmem:[#allocation3 + $0x48] sm:$0xff] }
 0x1b1   : > { %v1630_v33 = vld [vmem:[#allocation3 + $0x98] sm:$0xff] }
 0x1b9   : > { %v985_v61 = vpop.permute.xlu1 %984 }
 0x1ba   : > { %995 = vst.msk [vmem:[#allocation3 + $0x30] sm:$0xff] %vm846_vm12, %v985_v61  ;;  %v983_v27 = vpop.permute.xlu0 %982 }
 0x1bb   : > { %994 = vst.msk [vmem:[#allocation3 + $0x8] sm:$0xff] %vm846_vm12, %v983_v27 }
 0x1c1   : > { %v1617_v52 = vld [vmem:[#allocation3 + $0x30] sm:$0xff] }
 0x1c2   : > { %v1612_v8 = vld [vmem:[#allocation3 + $0x8] sm:$0xff] }
 0x1c3   : > { %1963 = vmatprep.mubr.bf16.mxu1 %v1612_v8 }
 0x1c8   : > { %v837_v24 = vpop.permute.xlu1 %836 }
 0x1c9   : > { %v835_v46 = vpop.permute.xlu0 %834  ;;  %848 = vst.msk [vmem:[#allocation3 + $0x28] sm:$0xff] %vm846_vm12, %v837_v24 }
 0x1ca   : > { %847 = vst.msk [vmem:[#allocation3] sm:$0xff] %vm846_vm12, %v835_v46 }
 0x1cd   : > { %v987_v25 = vpop.permute.xlu0 %986 }
 0x1ce   : > { %996 = vst.msk [vmem:[#allocation3 + $0x58] sm:$0xff] %vm846_vm12, %v987_v25 }
 0x1cf   : > { %v1496_v47 = vpop.permute.xlu1 %1495 }
 0x1d0   : > { %1507 = vst.msk [vmem:[#allocation3 + $0x18] sm:$0xff] %vm846_vm12, %v1496_v47 }
 0x1d1   : > { %v1611_v50 = vld [vmem:[#allocation3] sm:$0xff] }
 0x1d2   : > { %1964 = vmatmul.mubr.bf16.vlgmr.msra.gmra.mrb[0].mxu1 %v1611_v50 }
 0x1d3   : > { %4613 = vmatpush3.bf16.msra.mxu1 %v5554_v57  ;;  %1971 = vmatprep.mubr.bf16.mxu1 %v1617_v52  ;;  %v1271_v53 = vpop.permute.xlu1 %1270  ;;  %v1616_v57 = vld [vmem:[#allocation3 + $0x28] sm:$0xff] }
 0x1d4   : > { %4614 = vmatprep.subr.bf16.mxu1 %v4849_v49  ;;  %1282 = vst.msk [vmem:[#allocation3 + $0x10] sm:$0xff] %vm846_vm12, %v1271_v53 }
 0x1d5   : > { %v1622_v38 = vld [vmem:[#allocation3 + $0x58] sm:$0xff] }
 0x1d7   : > { %4615 = vmatpush3.bf16.msra.mxu1 %v4849_v49  ;;  %v1614_v56 = vld [vmem:[#allocation3 + $0x18] sm:$0xff] }
 0x1d8   : > { %v839_v55 = vpop.permute.xlu0 %838  ;;  %4616 = vmatprep.subr.bf16.mxu1 %v4860_v54  ;;  %2028 = vmatprep.mubr.bf16.mxu0 %v1614_v56 }
 0x1d9   : > { %849 = vst.msk [vmem:[#allocation3 + $0x50] sm:$0xff] %vm846_vm12, %v839_v55 }
 0x1da   : > { %1972 = vmatmul.mubr.bf16.gmra.mrb[4].mxu1 %v1616_v57 }
 0x1db   : > { %1979 = vmatprep.mubr.bf16.mxu1 %v1622_v38  ;;  %4617 = vmatpush3.bf16.msra.mxu1 %v4860_v54  ;;  %v1613_v63 = vld [vmem:[#allocation3 + $0x10] sm:$0xff] }
 0x1dc   : > { %v989_v62 = vpop.permute.xlu0 %988  ;;  %4618 = vmatprep.subr.bf16.mxu1 %v4861_v58  ;;  %2029 = vmatmul.mubr.bf16.vlgmr.msra.gmra.mrb[4].mxu0 %v1613_v63 }
 0x1dd   : > { %997 = vst.msk [vmem:[#allocation3 + $0x80] sm:$0xff] %vm846_vm12, %v989_v62  ;;  %v1498_v0 = vpop.permute.xlu1 %1497  ;;  %4677 = vmatpush3.bf16.msra.mxu0 %v5210_v4 }
 0x1de   : > { %1508 = vst.msk [vmem:[#allocation3 + $0x40] sm:$0xff] %vm846_vm12, %v1498_v0  ;;  %4678 = vmatprep.subr.bf16.mxu0 %v5098_v3 }
 0x1df   : > { %4619 = vmatpush3.bf16.msra.mxu1 %v4861_v58 }
 0x1e0   : > { %v1621_v1 = vld [vmem:[#allocation3 + $0x50] sm:$0xff] }
 0x1e1   : > { %v1273_v2 = vpop.permute.xlu1 %1272  ;;  %4680 = vmatpush3.bf16.msra.mxu0 %v5225_v9 }
 0x1e2   : > { %1980 = vmatmul.mubr.bf16.gmra.mrb[8].mxu1 %v1621_v1  ;;  %1283 = vst.msk [vmem:[#allocation3 + $0x38] sm:$0xff] %vm846_vm12, %v1273_v2  ;;  %4681 = vmatprep.subr.bf16.mxu0 %v5098_v3 }
 0x1e4   : > { %v1627_v5 = vld [vmem:[#allocation3 + $0x80] sm:$0xff] }
 0x1e5   : > { %1987 = vmatprep.mubr.bf16.mxu1 %v1627_v5  ;;  %v1619_v11 = vld [vmem:[#allocation3 + $0x40] sm:$0xff]  ;;  %4683 = vmatpush3.bf16.msra.mxu0 %v5241_v12 }
 0x1e6   : > { %v1275_v7 = vpop.permute.xlu1 %1274  ;;  %2036 = vmatprep.mubr.bf16.mxu0 %v1619_v11  ;;  %4684 = vmatprep.subr.bf16.mxu0 %v5098_v3  ;;  %v1615_v12 = vld [vmem:[#allocation3 + $0x20] sm:$0xff] }
 0x1e7   : > { %1284 = vst.msk [vmem:[#allocation3 + $0x60] sm:$0xff] %vm846_vm12, %v1275_v7  ;;  %v841_v4 = vpop.permute.xlu0 %840 }
 0x1e8   : > { %850 = vst.msk [vmem:[#allocation3 + $0x78] sm:$0xff] %vm846_vm12, %v841_v4 }
 0x1e9   : > { %v1618_v23 = vld [vmem:[#allocation3 + $0x38] sm:$0xff]  ;;  %4686 = vmatpush3.bf16.msra.mxu0 %v5243_v13  ;;  %v1625_v13 = vld [vmem:[#allocation3 + $0x70] sm:$0xff] }
 0x1ea   : > { %2037 = vmatmul.mubr.bf16.gmra.mrb[8].mxu0 %v1618_v23 }
 0x1ee   : > { %v1277_v29 = vpop.permute.xlu1 %1276  ;;  %v1623_v26 = vld [vmem:[#allocation3 + $0x60] sm:$0xff] }
 0x1ef   : > { %v1500_v9 = vpop.permute.xlu0 %1499  ;;  %1285 = vst.msk [vmem:[#allocation3 + $0x88] sm:$0xff] %vm846_vm12, %v1277_v29  ;;  %v1626_v30 = vld [vmem:[#allocation3 + $0x78] sm:$0xff] }
 0x1f0   : > { %1509 = vst.msk [vmem:[#allocation3 + $0x68] sm:$0xff] %vm846_vm12, %v1500_v9  ;;  %1988 = vmatmul.mubr.bf16.gmra.mrb[12].mxu1 %v1626_v30 }
 0x1f1   : > { %4620 = vmatprep.mubr.msk.bf16.mxu1 %vm305_vm1, %v1615_v12 }
 0x1f5   : > { %v1502_v22 = vpop.permute.xlu0 %1501 }
 0x1f6   : > { %1510 = vst.msk [vmem:[#allocation3 + $0x90] sm:$0xff] %vm846_vm12, %v1502_v22  ;;  %v1628_v32 = vld [vmem:[#allocation3 + $0x88] sm:$0xff] }
 0x1f7   : > { %v1624_v3 = vld [vmem:[#allocation3 + $0x68] sm:$0xff] }
 0x1f8   : > { %2044 = vmatprep.mubr.bf16.mxu0 %v1624_v3  ;;  %4621 = vmatmul.mubr.msk.bf16.vlgmr.msra.gmra.mrb[16].mxu1 %vm305_vm1, %v1620_v51 }
 0x1f9   : > { %2045 = vmatmul.mubr.bf16.gmra.mrb[12].mxu0 %v1623_v26  ;;  %4624 = vmatprep.mubr.msk.bf16.mxu1 %vm305_vm1, %v1625_v13 }
 0x1fd   : > { %v1629_v21 = vld [vmem:[#allocation3 + $0x90] sm:$0xff] }
 0x1fe   : > { %2052 = vmatprep.mubr.bf16.mxu0 %v1629_v21 }
 0x200   : > { %4625 = vmatmul.mubr.msk.bf16.gmra.mrb[20].mxu1 %vm305_vm1, %v1630_v33 }
 0x201   : > { %2053 = vmatmul.mubr.bf16.gmra.mrb[16].mxu0 %v1628_v32 }
 0x202   : > { %4644 = vmatprep.mubr.msk.f32.mxu0 %vm5099_vm0, %v5100_v6 }
 0x2a5   : > { %v4424_v10 = vpop.f32.mrb[0].mxu1 }
 0x2a6   : > { %v4425_v28 = vpop.f32.mrb[1].mxu1 }
 0x2a7   : > { %v4426_v34 = vadd.f32 %v4425_v28, %v4424_v10  ;;  %v4427_v35 = vpop.f32.mrb[2].mxu1 }
 0x2a8   : > { %v4428_v36 = vpop.f32.mrb[3].mxu1 }
 0x2a9   : > { %v4429_v37 = vadd.f32 %v4428_v36, %v4427_v35 }
 0x2ad   : > { %v4430_v40 = vpop.f32.mrb[4].mxu1 }
 0x2ae   : > { %v4431_v17 = vpop.f32.mrb[5].mxu1 }
 0x2af   : > { %v4432_v41 = vadd.f32 %v4431_v17, %v4430_v40  ;;  %v4433_v42 = vpop.f32.mrb[6].mxu1  ;;  %v4464_v39 = vpop.f32.mrb[4].mxu0 }
 0x2b0   : > { %v4434_v43 = vpop.f32.mrb[7].mxu1  ;;  %v4465_v18 = vpop.f32.mrb[5].mxu0 }
 0x2b1   : > { %v4435_v44 = vadd.f32 %v4434_v43, %v4433_v42  ;;  %v4466_v19 = vadd.f32 %v4465_v18, %v4464_v39  ;;  %v4467_v14 = vpop.f32.mrb[6].mxu0 }
 0x2b2   : > { %v4468_v60 = vpop.f32.mrb[7].mxu0 }
 0x2b3   : > { %v4469_v16 = vadd.f32 %v4468_v60, %v4467_v14  ;;  %v2031_v45 = vadd.f32 %v4466_v19, %v4426_v34 }
 0x2b5   : > { %v4436_v6 = vpop.f32.mrb[8].mxu1  ;;  %v2034_v27 = vadd.f32 %v4469_v16, %v4429_v37 }
 0x2b6   : > { %v4437_v61 = vpop.f32.mrb[9].mxu1 }
 0x2b7   : > { %v4438_v8 = vadd.f32 %v4437_v61, %v4436_v6  ;;  %v4439_v24 = vpop.f32.mrb[10].mxu1 }
 0x2b8   : > { %v4440_v46 = vpop.f32.mrb[11].mxu1 }
 0x2b9   : > { %v4441_v25 = vadd.f32 %v4440_v46, %v4439_v24 }
 0x2bd   : > { %v4470_v47 = vpop.f32.mrb[8].mxu0 }
 0x2be   : > { %v4471_v49 = vpop.f32.mrb[9].mxu0 }
 0x2bf   : > { %v4472_v50 = vadd.f32 %v4471_v49, %v4470_v47  ;;  %v4473_v52 = vpop.f32.mrb[10].mxu0 }
 0x2c0   : > { %v4474_v53 = vpop.f32.mrb[11].mxu0 }
 0x2c1   : > { %v4475_v54 = vadd.f32 %v4474_v53, %v4473_v52  ;;  %v2039_v55 = vadd.f32 %v4472_v50, %v4432_v41 }
 0x2c3   : > { %v4442_v56 = vpop.f32.mrb[12].mxu1  ;;  %v2042_v58 = vadd.f32 %v4475_v54, %v4435_v44 }
 0x2c4   : > { %v4443_v57 = vpop.f32.mrb[13].mxu1 }
 0x2c5   : > { %v4444_v38 = vadd.f32 %v4443_v57, %v4442_v56  ;;  %v4445_v62 = vpop.f32.mrb[14].mxu1 }
 0x2c6   : > { %v4446_v63 = vpop.f32.mrb[15].mxu1 }
 0x2c7   : > { %v4447_v0 = vadd.f32 %v4446_v63, %v4445_v62 }
 0x2cb   : > { %v4622_v2 = vpop.f32.mrb[16].mxu1 }
 0x2cc   : > { %v4476_v1 = vpop.f32.mrb[12].mxu0  ;;  %v5723_v7 = vadd.f32 %v4622_v2, %v2039_v55  ;;  %v2095_v11 = vpop.f32.mrb[17].mxu1 }
 0x2cd   : > { %v4477_v5 = vpop.f32.mrb[13].mxu0  ;;  %v5725_v9 = vadd.f32 %v2095_v11, %v2031_v45  ;;  %v4623_v29 = vpop.f32.mrb[18].mxu1 }
 0x2ce   : > { %v4478_v4 = vadd.f32 %v4477_v5, %v4476_v1  ;;  %v4479_v23 = vpop.f32.mrb[14].mxu0  ;;  %v5727_v12 = vadd.f32 %v4623_v29, %v2042_v58  ;;  %v2098_v22 = vpop.f32.mrb[19].mxu1  ;;  %v2151_v13 = vmul.f32 %v5723_v7, %v5723_v7  ;;  %v2131_v37 = vsel %vm305_vm1, %v5723_v7, 0.0 }
 0x2cf   : > { %v4480_v30 = vpop.f32.mrb[15].mxu0  ;;  %v2149_v26 = vmul.f32 %v5725_v9, %v5725_v9  ;;  %v5731_v51 = vadd.f32 %v2098_v22, %v2034_v27  ;;  %v2128_v32 = vsel %vm305_vm1, %v5725_v9, 0.0 }
 0x2d0   : > { %v4481_v3 = vadd.f32 %v4480_v30, %v4479_v23  ;;  %v2047_v21 = vadd.f32 %v4478_v4, %v4438_v8  ;;  %v2152_v34 = vmul.f32 %v5727_v12, %v5727_v12  ;;  %v2160_v44 = vsel %vm305_vm1, %v2151_v13, 0.0 }
 0x2d1   : > { %v2129_v33 = vsel %vm305_vm1, %v5731_v51, 0.0  ;;  %v2150_v10 = vmul.f32 %v5731_v51, %v5731_v51  ;;  %v2157_v40 = vsel %vm305_vm1, %v2149_v26, 0.0  ;;  %v2133_v60 = vsel %vm305_vm1, %v5727_v12, 0.0 }
 0x2d2   : > { %v2050_v28 = vadd.f32 %v4481_v3, %v4441_v25  ;;  %v2130_v35 = vadd.f32 %v2129_v33, %v2128_v32  ;;  %v2162_v6 = vsel %vm305_vm1, %v2152_v34, 0.0 }
 0x2d3   : > { %v2158_v17 = vsel %vm305_vm1, %v2150_v10, 0.0  ;;  %v4626_v41 = vpop.f32.mrb[20].mxu1 }
 0x2d4   : > { %v4482_v36 = vpop.f32.mrb[16].mxu0  ;;  %v2132_v39 = vadd.f32 %v2131_v37, %v2130_v35  ;;  %v2159_v43 = vadd.f32 %v2158_v17, %v2157_v40  ;;  %v2111_v18 = vpop.f32.mrb[21].mxu1 }
 0x2d5   : > { %v4483_v42 = vpop.f32.mrb[17].mxu0  ;;  %v5750_v16 = vadd.f32 %v2111_v18, %v2047_v21  ;;  %v4627_v45 = vpop.f32.mrb[22].mxu1  ;;  %v4936_v18 = vld [vmem:[%s6223_s6 + $0xc0] sm:$0xff]  }
 0x2d6   : > { %v4484_v19 = vadd.f32 %v4483_v42, %v4482_v36  ;;  %v4485_v14 = vpop.f32.mrb[18].mxu0  ;;  %v2161_v27 = vadd.f32 %v2160_v44, %v2159_v43  ;;  %v2134_v8 = vadd.f32 %v2133_v60, %v2132_v39  ;;  %v2114_v24 = vpop.f32.mrb[23].mxu1  ;;  %v4930_v42 = vld [vmem:[%s6223_s6 + $0x40] sm:$0xff]   ;;  %v4932_v43 = vld [vmem:[%s6223_s6 + $0x48] sm:$0xff]   ;;  %v4934_v60 = vld [vmem:[%s6223_s6 + $0x50] sm:$0xff]   ;;  %4545 = vmatprep.subr.bf16.mxu0 %v4936_v18 }
 0x2d7   : > { %v4486_v61 = vpop.f32.mrb[19].mxu0  ;;  %v2135_v47 = vsel %vm305_vm1, %v5750_v16, 0.0  ;;  %v2153_v49 = vmul.f32 %v5750_v16, %v5750_v16  ;;  %v5757_v53 = vadd.f32 %v2114_v24, %v2050_v28  ;;  %v4931_v39 = vld [vmem:[%s6223_s6] sm:$0xff]   ;;  %4505 = vmatprep.subr.bf16.mxu1 %v4930_v42 }
 0x2d8   : > { %v4487_v46 = vadd.f32 %v4486_v61, %v4485_v14  ;;  %v2055_v25 = vadd.f32 %v4484_v19, %v4444_v38  ;;  %v2136_v50 = vadd.f32 %v2135_v47, %v2134_v8  ;;  %v2163_v52 = vadd.f32 %v2162_v6, %v2161_v27  ;;  %v4937_v44 = vld [vmem:[%s6223_s6 + $0x80] sm:$0xff]   ;;  %4506 = vmatpush3.bf16.msra.mxu1 %v4931_v39  ;;  %v4933_v19 = vld [vmem:[%s6223_s6 + $0x8] sm:$0xff]   ;;  %v4935_v6 = vld [vmem:[%s6223_s6 + $0x10] sm:$0xff]  }
 0x2d9   : > { %v2164_v55 = vsel %vm305_vm1, %v2153_v49, 0.0  ;;  %v2137_v57 = vsel %vm305_vm1, %v5757_v53, 0.0  ;;  %v2154_v38 = vmul.f32 %v5757_v53, %v5757_v53  ;;  %v4940_v14 = vld [vmem:[%s6223_s6 + $0xc8] sm:$0xff]   ;;  %4507 = vmatprep.subr.bf16.mxu1 %v4932_v43  ;;  %v4938_v8 = vld [vmem:[%s6223_s6 + $0x58] sm:$0xff]  }
 0x2da   : > { %v5759_v54 = vadd.f32 %v4626_v41, %v2055_v25  ;;  %v2058_v56 = vadd.f32 %v4487_v46, %v4447_v0  ;;  %v2165_v58 = vadd.f32 %v2164_v55, %v2163_v52  ;;  %v2138_v1 = vadd.f32 %v2137_v57, %v2136_v50  ;;  %v4939_v46 = vld [vmem:[%s6223_s6 + $0x18] sm:$0xff]   ;;  %v2448_v50 = vld [vmem:[#allocation2] sm:$0x1f] }
 0x2db   : > { %v2166_v5 = vsel %vm305_vm1, %v2154_v38, 0.0  ;;  %v4200_v52 = vcombine.low %v2448_v50, %v2448_v50 }
 0x2dc   : > { %v2155_v62 = vmul.f32 %v5759_v54, %v5759_v54  ;;  %v5768_v63 = vadd.f32 %v4627_v45, %v2058_v56  ;;  %v2139_v2 = vsel %vm305_vm1, %v5759_v54, 0.0  ;;  %v2167_v23 = vadd.f32 %v2166_v5, %v2165_v58  ;;  %4508 = vmatpush3.bf16.msra.mxu1 %v4933_v19  ;;  %v3111_v58 = vld [vmem:[#allocation2 + $0x48] sm:$0x1f] }
 0x2dd   : > { %v2140_v11 = vadd.f32 %v2139_v2, %v2138_v1  ;;  %4509 = vmatprep.subr.bf16.mxu1 %v4934_v60  ;;  %v2497_v38 = vshrl.u32 %v4200_v52, 16  ;;  %v2126_v1 = vld [vmem:[%s6221_s4] sm:$0x1]  ;;  %v4318_v2 = vcombine.low %v3111_v58, %v3111_v58 }
 0x2de   : > { %v2156_v0 = vmul.f32 %v5768_v63, %v5768_v63  ;;  %v2141_v4 = vsel %vm305_vm1, %v5768_v63, 0.0  ;;  %v2168_v29 = vsel %vm305_vm1, %v2155_v62, 0.0  ;;  %v2500_v62 = vshll.u32 %v4200_v52, 16 }
 0x2df   : > { %v2142_v30 = vadd.f32 %v2141_v4, %v2140_v11  ;;  %v2169_v22 = vadd.f32 %v2168_v29, %v2167_v23  ;;  %v4201_v11 = vcombine.high %v2448_v50, %v2448_v50  ;;  %v5819_v4 = vrot.slane %v2497_v38, 4  ;;  %v2127_v29 = vld [vmem:[%s6222_s5] sm:$0x1] }
 0x2e0   : > { %v2170_v3 = vsel %vm305_vm1, %v2156_v0, 0.0  ;;  %4510 = vmatpush3.bf16.msra.mxu1 %v4935_v6  ;;  %v5821_v23 = vrot.slane %v2500_v62, 5 }
 0x2e1   : > { %v2143_v26 = vrot.slane %v2142_v30, 4  ;;  %v2171_v13 = vadd.f32 %v2170_v3, %v2169_v22  ;;  %4511 = vmatprep.subr.bf16.mxu1 %v4938_v8  ;;  %v3251_v22 = vshrl.u32 %v4318_v2, 16  ;;  %v3254_v3 = vshll.u32 %v4318_v2, 16 }
 0x2e3   : > { %v2144_v21 = vadd.f32 %v2143_v26, %v2142_v30  ;;  %v2172_v32 = vrot.slane %v2171_v13, 4  ;;  %v4319_v30 = vcombine.high %v3111_v58, %v3111_v58 }
 0x2e4   : > { %4512 = vmatpush3.bf16.msra.mxu1 %v4939_v46 }
 0x2e5   : > { %v2145_v33 = vrot.slane %v2144_v21, 2  ;;  %v2173_v10 = vadd.f32 %v2172_v32, %v2171_v13  ;;  %v5829_v32 = vshll.u32 %v4201_v11, 16 }
 0x2e7   : > { %v2146_v28 = vadd.f32 %v2145_v33, %v2144_v21  ;;  %v2174_v34 = vrot.slane %v2173_v10, 2 }
 0x2e9   : > { %v2147_v35 = vrot.slane %v2146_v28, 1  ;;  %v2175_v36 = vadd.f32 %v2174_v34, %v2173_v10  ;;  %v5832_v10 = vrot.slane %v3251_v22, 4  ;;  %v5836_v34 = vshll.u32 %v4319_v30, 16 }
 0x2eb   : > { %v2176_v37 = vrot.slane %v2175_v36, 1  ;;  %v2148_v40 = vadd.f32 %v2147_v35, %v2146_v28  ;;  %v5834_v28 = vrot.slane %v3254_v3, 5  ;;  %v3262_v15 = vrot.slane %v5836_v34, 5 }
 0x2ed   : > { %v2177_v17 = vadd.f32 %v2176_v37, %v2175_v36 }
 0x2ef   : > { %v2178_v41 = vsel %vm384_vm2, %v2148_v40, %v2177_v17 }
 0x2f0   : > { %4645 = vmatmul.mubr.msk.f32.vlgmr.msra.gmra.mrb[2].mxu0 %vm305_vm1, %v2178_v41 }
 0x2f1   : > { %4546 = vmatpush3.bf16.msra.mxu0 %v4937_v44 }
 0x2f2   : > { %4547 = vmatprep.subr.bf16.mxu0 %v4940_v14 }
 0x3c3   : > { %v2248_v45 = vpop.f32.mrb[2].mxu0 }
 0x3c4   : > { %v2252_v61 = vmul.f32 %v2248_v45, %v2248_v45  ;;  %v4646_v27 = vpop.f32.mrb[3].mxu0 }
 0x3c6   : > { %v2254_v24 = vrot.slane %v2252_v61, 7 }
 0x3c8   : > { %v2256_v25 = vsub.f32 %v2248_v45, %v2254_v24 }
 0x3ca   : > { %v2257_v47 = vmax.f32 %v2256_v25, 0.0 }
 0x3cc   : > { %v2258_v49 = vadd.f32 1e-05, %v2257_v47 }
 0x3ce   : > { %5024 = vrsqrt.f32 %v2258_v49 }
 0x3d8   : > { %v5025_v55 = vpop.eup %5024 }
 0x3d9   : > { %v2267_v56 = vrot.slane %v5025_v55, %v5358_v48 }
 0x3db   : > { %v2268_v57 = vcombine.high %v2267_v56, %v2267_v56 }
 0x3dd   : > { %v2275_v5 = vrot.slane %v2268_v57, %v5358_v48  ;;  %v2503_v48 = vor.u32 %v5821_v23, %v5819_v4 }
 0x3df   : > { %v2277_v0 = vmul.f32 %v2275_v5, %v2126_v1 }
 0x3e1   : > { %v2278_v26 = vmul.f32 %v2277_v0, %v2248_v45  ;;  %v2284_v13 = vrot.slane %v2277_v0, %v5369_v59 }
 0x3e3   : > { %v2279_v21 = vsub.f32 %v2127_v29, %v2278_v26  ;;  %v2286_v33 = vmul.f32 %v2284_v13, %v5725_v9  ;;  %v2287_v35 = vmul.f32 %v2284_v13, %v5731_v51  ;;  %v2288_v36 = vmul.f32 %v2284_v13, %v5723_v7 }
 0x3e4   : > { %v2289_v37 = vmul.f32 %v2284_v13, %v5727_v12  ;;  %v2290_v17 = vmul.f32 %v2284_v13, %v5750_v16  ;;  %v2291_v41 = vmul.f32 %v2284_v13, %v5757_v53  ;;  %v2292_v9 = vmul.f32 %v2284_v13, %v5759_v54 }
 0x3e5   : > { %v2298_v40 = vrot.slane %v2279_v21, %v5369_v59  ;;  %v2293_v42 = vmul.f32 %v2284_v13, %v5768_v63  ;;  %v2388_v21 = vld [vmem:[#allocation2 + $0x8] sm:$0x1f] }
 0x3e7   : > { %v2300_v39 = vadd.f32 %v2298_v40, %v2286_v33  ;;  %v2301_v43 = vadd.f32 %v2298_v40, %v2287_v35  ;;  %v2302_v18 = vadd.f32 %v2298_v40, %v2288_v36  ;;  %v2303_v44 = vadd.f32 %v2298_v40, %v2289_v37  ;;  %v2391_v33 = vld [vmem:[#allocation2 + $0x10] sm:$0x1f]  ;;  %v4945_v35 = vld [vmem:[%s6223_s6 + $0x88] sm:$0xff]   ;;  %v4946_v36 = vld [vmem:[%s6223_s6 + $0x60] sm:$0xff]  }
 0x3e8   : > { %v2304_v19 = vadd.f32 %v2298_v40, %v2290_v17  ;;  %v2305_v51 = vadd.f32 %v2298_v40, %v2291_v41  ;;  %v2306_v14 = vadd.f32 %v2298_v40, %v2292_v9  ;;  %v2307_v7 = vadd.f32 %v2298_v40, %v2293_v42  ;;  %v4947_v37 = vld [vmem:[%s6223_s6 + $0x20] sm:$0xff]   ;;  %v2394_v42 = vld [vmem:[#allocation2 + $0x18] sm:$0x1f]  ;;  %4548 = vmatpush3.bf16.msra.mxu0 %v4945_v35 }
 0x3e9   : > { %v2308_v60 = vmax.f32 %v2300_v39, 0.0  ;;  %v2309_v12 = vmax.f32 %v2301_v43, 0.0  ;;  %v2310_v45 = vmax.f32 %v2302_v18, 0.0  ;;  %v2311_v59 = vmax.f32 %v2303_v44, 0.0  ;;  %v4948_v39 = vld [vmem:[%s6223_s6 + $0xd0] sm:$0xff]   ;;  %4513 = vmatprep.subr.bf16.mxu1 %v4946_v36 }
 0x3ea   : > { %v2312_v6 = vmax.f32 %v2304_v19, 0.0  ;;  %v2313_v16 = vmax.f32 %v2305_v51, 0.0  ;;  %v2314_v61 = vmax.f32 %v2306_v14, 0.0  ;;  %v2315_v53 = vmax.f32 %v2307_v7, 0.0  ;;  %v2636_v51 = vld [vmem:[#allocation2] sm:$0x1e]  ;;  %4514 = vmatpush3.bf16.msra.mxu1 %v4947_v37  ;;  %4549 = vmatprep.subr.bf16.mxu0 %v4948_v39 }
 0x3eb   : > { %v2316_v27 = vpack.c.bf16 %v2308_v60, %v2308_v60  ;;  %v2317_v54 = vpack.c.bf16 %v2309_v12, %v2309_v12  ;;  %v2318_v8 = vpack.c.bf16 %v2310_v45, %v2310_v45  ;;  %v2319_v63 = vpack.c.bf16 %v2311_v59, %v2311_v59  ;;  %v2397_v45 = vld [vmem:[#allocation2 + $0x20] sm:$0x1f]  ;;  %v2400_v59 = vld [vmem:[#allocation2 + $0x28] sm:$0x1f] }
 0x3ec   : > { %v2320_v24 = vpack.c.bf16 %v2312_v6, %v2312_v6  ;;  %v2321_v46 = vpack.c.bf16 %v2313_v16, %v2313_v16  ;;  %v2322_v25 = vpack.c.bf16 %v2314_v61, %v2314_v61  ;;  %v5846_v47 = vpack.c.bf16 %v2315_v53, %v2315_v53  ;;  %v2403_v6 = vld [vmem:[#allocation2 + $0x30] sm:$0x1f] }
 0x3ed   : > { %v2325_v49 = vshrl.u32 %v2316_v27, 16  ;;  %v2328_v50 = vshll.u32 %v2316_v27, 16  ;;  %v2332_v52 = vshrl.u32 %v2317_v54, 16  ;;  %v2335_v55 = vshll.u32 %v2317_v54, 16  ;;  %v4953_v54 = vld [vmem:[%s6223_s6 + $0x90] sm:$0xff]  }
 0x3ee   : > { %v2339_v56 = vshrl.u32 %v2318_v8, 16  ;;  %v2342_v58 = vshll.u32 %v2318_v8, 16  ;;  %v2346_v57 = vshrl.u32 %v2319_v63, 16  ;;  %v2349_v38 = vshll.u32 %v2319_v63, 16  ;;  %v4954_v8 = vld [vmem:[%s6223_s6 + $0x68] sm:$0xff]   ;;  %4550 = vmatpush3.bf16.msra.mxu0 %v4953_v54 }
 0x3ef   : > { %v2327_v62 = vrot.slane %v2325_v49, 7  ;;  %v2334_v1 = vrot.slane %v2332_v52, 7  ;;  %v2353_v2 = vshrl.u32 %v2320_v24, 16  ;;  %v2356_v5 = vshll.u32 %v2320_v24, 16  ;;  %v4955_v63 = vld [vmem:[%s6223_s6 + $0x28] sm:$0xff]   ;;  %4515 = vmatprep.subr.bf16.mxu1 %v4954_v8 }
 0x3f0   : > { %v2341_v0 = vrot.slane %v2339_v56, 7  ;;  %v2348_v11 = vrot.slane %v2346_v57, 7  ;;  %v2360_v29 = vshrl.u32 %v2321_v46, 16  ;;  %v2363_v30 = vshll.u32 %v2321_v46, 16  ;;  %v2406_v46 = vld [vmem:[#allocation2 + $0x38] sm:$0x1f]  ;;  %4516 = vmatpush3.bf16.msra.mxu1 %v4955_v63 }
 0x3f1   : > { %v2330_v22 = vor.u32 %v2328_v50, %v2327_v62  ;;  %v2337_v3 = vor.u32 %v2335_v55, %v2334_v1  ;;  %v2355_v26 = vrot.slane %v2353_v2, 7  ;;  %v2367_v13 = vshrl.u32 %v2322_v25, 16  ;;  %v4956_v50 = vld [vmem:[%s6223_s6 + $0xd8] sm:$0xff]   ;;  %v2409_v56 = vld [vmem:[#allocation2 + $0x40] sm:$0x1f] }
 0x3f2   : > { %v2344_v40 = vor.u32 %v2342_v58, %v2341_v0  ;;  %v2351_v17 = vor.u32 %v2349_v38, %v2348_v11  ;;  %v2362_v41 = vrot.slane %v2360_v29, 7  ;;  %v2370_v9 = vshll.u32 %v2322_v25, 16  ;;  %4551 = vmatprep.subr.bf16.mxu0 %v4956_v50  ;;  %v4957_v57 = vld [vmem:[%s6223_s6 + $0x98] sm:$0xff]   ;;  %v4958_v38 = vld [vmem:[%s6223_s6 + $0x70] sm:$0xff]   ;;  %v5902_v62 = vld [vmem:[#allocation2 + $0x48] sm:$0x1e] }
 0x3f3   : > { %v2358_v43 = vor.u32 %v2356_v5, %v2355_v26  ;;  %v2369_v18 = vrot.slane %v2367_v13, 7  ;;  %v2374_v44 = vshrl.u32 %v5846_v47, 16  ;;  %v2377_v19 = vshll.u32 %v5846_v47, 16  ;;  %4552 = vmatpush3.bf16.msra.mxu0 %v4957_v57  ;;  %4517 = vmatprep.subr.bf16.mxu1 %v4958_v38 }
 0x3f4   : > { %v2365_v14 = vor.u32 %v2363_v30, %v2362_v41  ;;  %v2389_v7 = vsel %vm5406_vm7, %v2330_v22, %v2388_v21  ;;  %v2392_v60 = vsel %vm5406_vm7, %v2337_v3, %v2391_v33  ;;  %v2395_v12 = vsel %vm5406_vm7, %v2344_v40, %v2394_v42 }
 0x3f5   : > { %v2372_v16 = vor.u32 %v2370_v9, %v2369_v18  ;;  %v2376_v61 = vrot.slane %v2374_v44, 7  ;;  %v2398_v53 = vsel %vm5406_vm7, %v2351_v17, %v2397_v45  ;;  %v2401_v27 = vsel %vm5406_vm7, %v2358_v43, %v2400_v59  ;;  %2390 = vst [vmem:[#allocation2 + $0x8] sm:$0x1f] %v2389_v7  ;;  %2393 = vst [vmem:[#allocation2 + $0x10] sm:$0x1f] %v2392_v60 }
 0x3f6   : > { %2396 = vst [vmem:[#allocation2 + $0x18] sm:$0x1f] %v2395_v12  ;;  %v2404_v24 = vsel %vm5406_vm7, %v2365_v14, %v2403_v6  ;;  %2399 = vst [vmem:[#allocation2 + $0x20] sm:$0x1f] %v2398_v53  ;;  %v3257_v25 = vor.u32 %v5834_v28, %v5832_v10  ;;  %v4220_v47 = vcombine.low %v2636_v51, %v2636_v51  ;;  %v2504_v28 = vrot.slane %v2503_v48, 4 }
 0x3f7   : > { %2402 = vst [vmem:[#allocation2 + $0x28] sm:$0x1f] %v2401_v27  ;;  %v4221_v49 = vcombine.high %v2636_v51, %v2636_v51  ;;  %v2379_v52 = vor.u32 %v2377_v19, %v2376_v61  ;;  %v2407_v55 = vsel %vm5406_vm7, %v2372_v16, %v2406_v46  ;;  %2405 = vst [vmem:[#allocation2 + $0x30] sm:$0x1f] %v2404_v24  ;;  %v2508_v58 = vrot.slane %v5829_v32, 5  ;;  %v4961_v27 = vld [vmem:[%s6223_s6 + $0x30] sm:$0xff]  }
 0x3f8   : > { %2408 = vst [vmem:[#allocation2 + $0x38] sm:$0x1f] %v2407_v55  ;;  %v3258_v1 = vrot.slane %v3257_v25, 4  ;;  %v5905_v2 = vrot.slane %v4220_v47, 9  ;;  %v4338_v48 = vcombine.low %v5902_v62, %v5902_v62  ;;  %v4339_v35 = vcombine.high %v5902_v62, %v5902_v62  ;;  %4518 = vmatpush3.bf16.msra.mxu1 %v4961_v27  ;;  %v4987_v62 = vld [vmem:[%s6223_s6 + $0xb8] sm:$0xff]  }
 0x3f9   : > { %v2410_v10 = vsel %vm5406_vm7, %v2379_v52, %v2409_v56  ;;  %v5907_v4 = vrot.slane %v4221_v49, 5  ;;  %v5914_v11 = vsel %vm5461_vm10, %v2504_v28, %v2508_v58 }
 0x3fa   : > { %2411 = vst [vmem:[#allocation2 + $0x40] sm:$0x1f] %v2410_v10  ;;  %v5918_v34 = vsel %vm5461_vm10, %v3258_v1, %v3262_v15  ;;  %v5926_v36 = vrot.slane %v4338_v48, 9  ;;  %v4962_v15 = vld [vmem:[%s6223_s6 + $0xe0] sm:$0xff]  }
 0x3fb   : > { %v2687_v29 = vsel %vm5483_vm11, %v5905_v2, %v5907_v4  ;;  %4553 = vmatprep.subr.bf16.mxu0 %v4962_v15 }
 0x3fc   : > { %v4878_v23 = vld [vmem:[#allocation2 + $0x8] ss:$8 sps:$4 sm:$0xff]  }
 0x3fd   : > { %2764 = vrot.lane.b32.xlu0 %v4878_v23, %s5103_s22  ;;  %v3104_v32 = vld [vmem:[#allocation2 + $0x10] sm:$0x1f]  ;;  %v3105_v5 = vld [vmem:[#allocation2 + $0x18] sm:$0x1f]  ;;  %v2449_v0 = vld [vmem:[#allocation2 + $0x8] sm:$0x1f] }
 0x3fe   : > { %v4304_v30 = vcombine.low %v3104_v32, %v3104_v32  ;;  %v4305_v22 = vcombine.high %v3104_v32, %v3104_v32  ;;  %v4306_v3 = vcombine.low %v3105_v5, %v3105_v5  ;;  %v4307_v26 = vcombine.high %v3105_v5, %v3105_v5  ;;  %v4879_v13 = vld [vmem:[#allocation2 + $0x18] ss:$8 sps:$4 sm:$0xff]   ;;  %v2450_v18 = vld [vmem:[#allocation2 + $0x10] sm:$0x1f]  ;;  %v3107_v1 = vld [vmem:[#allocation2 + $0x28] sm:$0x1f] }
 0x3ff   : > { %v4202_v21 = vcombine.low %v2449_v0, %v2449_v0  ;;  %v4203_v33 = vcombine.high %v2449_v0, %v2449_v0  ;;  %v2451_v7 = vld [vmem:[#allocation2 + $0x18] sm:$0x1f]  ;;  %v4204_v61 = vcombine.low %v2450_v18, %v2450_v18  ;;  %v4205_v53 = vcombine.high %v2450_v18, %v2450_v18  ;;  %v3106_v10 = vld [vmem:[#allocation2 + $0x20] sm:$0x1f]  ;;  %v2960_v0 = vld [vmem:[#allocation2 + $0x8] sm:$0x1e] }
 0x400   : > { %v3153_v37 = vshrl.u32 %v4304_v30, 16  ;;  %v3156_v40 = vshll.u32 %v4304_v30, 16  ;;  %v3162_v17 = vshll.u32 %v4305_v22, 16  ;;  %v3167_v41 = vshrl.u32 %v4306_v3, 16 }
 0x401   : > { %2766 = vrot.lane.b32.xlu0 %v4879_v13, %s5103_s22  ;;  %v3170_v9 = vshll.u32 %v4306_v3, 16  ;;  %v3176_v42 = vshll.u32 %v4307_v26, 16  ;;  %v2511_v39 = vshrl.u32 %v4202_v21, 16  ;;  %v2514_v43 = vshll.u32 %v4202_v21, 16  ;;  %v4963_v13 = vld [vmem:[%s6223_s6 + $0xa0] sm:$0xff]  }
 0x402   : > { %v3155_v44 = vrot.slane %v3153_v37, 4  ;;  %v3158_v19 = vrot.slane %v3156_v40, 5  ;;  %v3164_v51 = vrot.slane %v3162_v17, 5  ;;  %v3169_v14 = vrot.slane %v3167_v41, 4  ;;  %v4964_v17 = vld [vmem:[%s6223_s6 + $0x78] sm:$0xff]   ;;  %4554 = vmatpush3.bf16.msra.mxu0 %v4963_v13 }
 0x403   : > { %v3172_v60 = vrot.slane %v3170_v9, 5  ;;  %v3178_v12 = vrot.slane %v3176_v42, 5  ;;  %v2513_v45 = vrot.slane %v2511_v39, 4  ;;  %v2516_v59 = vrot.slane %v2514_v43, 5  ;;  %v4970_v43 = vld [vmem:[%s6223_s6 + $0x38] sm:$0xff]   ;;  %4519 = vmatprep.subr.bf16.mxu1 %v4964_v17 }
 0x404   : > { %v3159_v6 = vor.u32 %v3158_v19, %v3155_v44  ;;  %v2520_v16 = vshll.u32 %v4203_v33, 16  ;;  %v4206_v63 = vcombine.low %v2451_v7, %v2451_v7  ;;  %v4207_v24 = vcombine.high %v2451_v7, %v2451_v7  ;;  %4520 = vmatpush3.bf16.msra.mxu1 %v4970_v43 }
 0x405   : > { %v3173_v54 = vor.u32 %v3172_v60, %v3169_v14  ;;  %v2517_v8 = vor.u32 %v2516_v59, %v2513_v45  ;;  %v2525_v47 = vshrl.u32 %v4204_v61, 16  ;;  %v2528_v49 = vshll.u32 %v4204_v61, 16  ;;  %v2961_v14 = vld [vmem:[#allocation2 + $0x10] sm:$0x1e]  ;;  %v2452_v59 = vld [vmem:[#allocation2 + $0x20] sm:$0x1f] }
 0x406   : > { %v3160_v46 = vrot.slane %v3159_v6, 4  ;;  %v2522_v25 = vrot.slane %v2520_v16, 5  ;;  %v2534_v55 = vshll.u32 %v4205_v53, 16  ;;  %v2539_v56 = vshrl.u32 %v4206_v63, 16  ;;  %v4971_v6 = vld [vmem:[%s6223_s6 + $0xe8] sm:$0xff]  }
 0x407   : > { %v3174_v50 = vrot.slane %v3173_v54, 4  ;;  %v2518_v52 = vrot.slane %v2517_v8, 4  ;;  %v2527_v58 = vrot.slane %v2525_v47, 4  ;;  %v2530_v57 = vrot.slane %v2528_v49, 5  ;;  %v2453_v54 = vld [vmem:[#allocation2 + $0x28] sm:$0x1f]  ;;  %4555 = vmatprep.subr.bf16.mxu0 %v4971_v6 }
 0x408   : > { %v3165_v28 = vsel %vm5461_vm10, %v3160_v46, %v3164_v51  ;;  %v2542_v38 = vshll.u32 %v4206_v63, 16  ;;  %v2536_v32 = vrot.slane %v2534_v55, 5  ;;  %v2541_v5 = vrot.slane %v2539_v56, 4  ;;  %v4960_v55 = vld [vmem:[#allocation2] ss:$8 sps:$4 sm:$0xff]  }
 0x409   : > { %v3179_v23 = vsel %vm5461_vm10, %v3174_v50, %v3178_v12  ;;  %v2523_v48 = vsel %vm5461_vm10, %v2518_v52, %v2522_v25  ;;  %v2531_v3 = vor.u32 %v2530_v57, %v2527_v58  ;;  %v2548_v21 = vshll.u32 %v4207_v24, 16  ;;  %v4959_v25 = vld [vmem:[#allocation2 + $0x10] ss:$8 sps:$4 sm:$0xff]   ;;  %v4972_v56 = vld [vmem:[%s6223_s6 + $0xa8] sm:$0xff]   ;;  %2444 = vst.msk [vmem:[#allocation3] sm:$0xff] %vm305_vm1, %v4960_v55 }
 0x40a   : > { %v4320_v30 = vcombine.low %v3165_v28, %v3179_v23  ;;  %v4216_v22 = vcombine.low %v5914_v11, %v2523_v48  ;;  %v2544_v26 = vrot.slane %v2542_v38, 5  ;;  %v4308_v33 = vcombine.low %v3106_v10, %v3106_v10  ;;  %v4888_v11 = vld [vmem:[#allocation2 + $0x28] ss:$8 sps:$4 sm:$0xff]   ;;  %3100 = vst.msk [vmem:[#allocation3 + $0x18] sm:$0xff] %vm305_vm1, %v4959_v25  ;;  %4556 = vmatpush3.bf16.msra.mxu0 %v4972_v56 }
 0x40b   : > { %v4309_v37 = vcombine.high %v3106_v10, %v3106_v10  ;;  %v4310_v40 = vcombine.low %v3107_v1, %v3107_v1  ;;  %v2532_v41 = vrot.slane %v2531_v3, 4  ;;  %v4311_v42 = vcombine.high %v3107_v1, %v3107_v1  ;;  %v4979_v3 = vld [vmem:[%s6223_s6 + $0xf0] sm:$0xff]  }
 0x40c   : > { %3276 = vrot.lane.b32.xlu0 %v4320_v30, %s5103_s22  ;;  %2620 = vrot.lane.b32.xlu1 %v4216_v22, %s5103_s22  ;;  %v2545_v9 = vor.u32 %v2544_v26, %v2541_v5  ;;  %v4272_v39 = vcombine.low %v2960_v0, %v2960_v0  ;;  %v2550_v18 = vrot.slane %v2548_v21, 5  ;;  %v3181_v44 = vshrl.u32 %v4308_v33, 16  ;;  %v4969_v30 = vld [vmem:[#allocation2 + $0x10] ss:$8 sps:$4 sm:$0xff]   ;;  %v5972_v22 = vld [vmem:[%s6223_s6 + $0x100] sm:$0xff]  }
 0x40d   : > { %v3184_v19 = vshll.u32 %v4308_v33, 16  ;;  %v3190_v51 = vshll.u32 %v4309_v37, 16  ;;  %v2537_v7 = vsel %vm5461_vm10, %v2532_v41, %v2536_v32  ;;  %v3195_v12 = vshrl.u32 %v4310_v40, 16  ;;  %v3108_v41 = vld [vmem:[#allocation2 + $0x30] sm:$0x1f]  ;;  %2445 = vst.msk [vmem:[#allocation3 + $0x28] sm:$0xff] %vm305_vm1, %v4969_v30  ;;  %4647 = vmatprep.subr.bf16.mxu1 %v5972_v22  ;;  %4557 = vmatprep.subr.bf16.mxu0 %v4979_v3 }
 0x40e   : > { %v2546_v60 = vrot.slane %v2545_v9, 4  ;;  %v3198_v45 = vshll.u32 %v4310_v40, 16  ;;  %v3183_v16 = vrot.slane %v3181_v44, 4  ;;  %v3204_v27 = vshll.u32 %v4311_v42, 16  ;;  %v4974_v9 = vld [vmem:[#allocation2 + $0x20] ss:$8 sps:$4 sm:$0xff]  }
 0x40f   : > { %v3186_v61 = vrot.slane %v3184_v19, 5  ;;  %v3192_v53 = vrot.slane %v3190_v51, 5  ;;  %v3197_v63 = vrot.slane %v3195_v12, 4  ;;  %v4273_v46 = vcombine.high %v2960_v0, %v2960_v0  ;;  %v3109_v44 = vld [vmem:[#allocation2 + $0x38] sm:$0x1f]  ;;  %v4980_v19 = vld [vmem:[%s6223_s6 + $0xb0] sm:$0xff]  }
 0x410   : > { %2768 = vrot.lane.b32.xlu0 %v4888_v11, %s5103_s22  ;;  %v2551_v8 = vsel %vm5461_vm10, %v2546_v60, %v2550_v18  ;;  %v3200_v24 = vrot.slane %v3198_v45, 5  ;;  %v3206_v50 = vrot.slane %v3204_v27, 5  ;;  %v4274_v52 = vcombine.low %v2961_v14, %v2961_v14  ;;  %v4986_v51 = vld [vmem:[%s6223_s6 + $0xf8] sm:$0xff]   ;;  %3101 = vst.msk [vmem:[#allocation3 + $0x40] sm:$0xff] %vm305_vm1, %v4974_v9  ;;  %4558 = vmatpush3.bf16.msra.mxu0 %v4980_v19 }
 0x411   : > { %v4217_v47 = vcombine.low %v2537_v7, %v2551_v8  ;;  %v3187_v49 = vor.u32 %v3186_v61, %v3183_v16  ;;  %v4275_v28 = vcombine.high %v2961_v14, %v2961_v14  ;;  %v4288_v58 = vrot.slane %v4272_v39, 9  ;;  %v4901_v45 = vld [vmem:[#allocation2 + $0x38] ss:$8 sps:$4 sm:$0xff]   ;;  %4559 = vmatprep.subr.bf16.mxu0 %v4986_v51 }
 0x412   : > { %v3201_v10 = vor.u32 %v3200_v24, %v3197_v63  ;;  %v3010_v57 = vrot.slane %v4273_v46, 5  ;;  %v4289_v1 = vrot.slane %v4274_v52, 9  ;;  %v4208_v15 = vcombine.low %v2452_v59, %v2452_v59  ;;  %v2962_v63 = vld [vmem:[#allocation2 + $0x18] sm:$0x1e]  ;;  %v2963_v24 = vld [vmem:[#allocation2 + $0x20] sm:$0x1e] }
 0x413   : > { %2622 = vrot.lane.b32.xlu1 %v4217_v47, %s5103_s22  ;;  %v3188_v38 = vrot.slane %v3187_v49, 4  ;;  %v4209_v23 = vcombine.high %v2452_v59, %v2452_v59  ;;  %v3014_v5 = vrot.slane %v4275_v28, 5  ;;  %v4210_v0 = vcombine.low %v2453_v54, %v2453_v54  ;;  %v4985_v46 = vld [vmem:[#allocation2 + $0x20] ss:$8 sps:$4 sm:$0xff]  }
 0x414   : > { %v3202_v48 = vrot.slane %v3201_v10, 4  ;;  %v3011_v32 = vsel %vm5483_vm11, %v4288_v58, %v3010_v57  ;;  %v4211_v13 = vcombine.high %v2453_v54, %v2453_v54  ;;  %v2553_v21 = vshrl.u32 %v4208_v15, 16  ;;  %2446 = vst.msk [vmem:[#allocation3 + $0x50] sm:$0xff] %vm305_vm1, %v4985_v46  ;;  %4560 = vmatpush3.bf16.msra.mxu0 %v4987_v62 }
 0x415   : > { %v3193_v26 = vsel %vm5461_vm10, %v3188_v38, %v3192_v53  ;;  %v2556_v33 = vshll.u32 %v4208_v15, 16  ;;  %v3015_v40 = vsel %vm5483_vm11, %v4289_v1, %v3014_v5  ;;  %v2562_v17 = vshll.u32 %v4209_v23, 16  ;;  %v4988_v1 = vld [vmem:[#allocation2 + $0x30] ss:$8 sps:$4 sm:$0xff]  }
 0x416   : > { %v3207_v37 = vsel %vm5461_vm10, %v3202_v48, %v3206_v50  ;;  %v2567_v11 = vshrl.u32 %v4210_v0, 16  ;;  %v4296_v39 = vcombine.low %v3011_v32, %v3015_v40  ;;  %v2555_v43 = vrot.slane %v2553_v21, 4  ;;  %v3110_v50 = vld [vmem:[#allocation2 + $0x40] sm:$0x1f]  ;;  %3102 = vst.msk [vmem:[#allocation3 + $0x68] sm:$0xff] %vm305_vm1, %v4988_v1 }
 0x417   : > { %v4321_v42 = vcombine.low %v3193_v26, %v3207_v37  ;;  %v2558_v18 = vrot.slane %v2556_v33, 5  ;;  %v2570_v7 = vshll.u32 %v4210_v0, 16  ;;  %v2576_v60 = vshll.u32 %v4211_v13, 16  ;;  %v4994_v26 = vld [vmem:[#allocation2 + $0x40] ss:$8 sps:$4 sm:$0xff]  }
 0x418   : > { %v2569_v14 = vrot.slane %v2567_v11, 4  ;;  %v5995_v12 = vrot.slane %v4339_v35, 5  ;;  %3052 = vrot.lane.b32.xlu1 %v4296_v39, %s5103_s22  ;;  %v2564_v6 = vrot.slane %v2562_v17, 5  ;;  %v4312_v16 = vcombine.low %v3108_v41, %v3108_v41  ;;  %v4995_v40 = vld [vmem:[#allocation2 + $0x30] ss:$8 sps:$4 sm:$0xff]   ;;  %3103 = vst.msk [vmem:[#allocation3 + $0x90] sm:$0xff] %vm305_vm1, %v4994_v26 }
 0x419   : > { %3278 = vrot.lane.b32.xlu0 %v4321_v42, %s5103_s22  ;;  %v2559_v59 = vor.u32 %v2558_v18, %v2555_v43  ;;  %v4313_v61 = vcombine.high %v3108_v41, %v3108_v41  ;;  %v2572_v53 = vrot.slane %v2570_v7, 5  ;;  %v2578_v27 = vrot.slane %v2576_v60, 5  ;;  %v2454_v42 = vld [vmem:[#allocation2 + $0x30] sm:$0x1f]  ;;  %2447 = vst.msk [vmem:[#allocation3 + $0x78] sm:$0xff] %vm305_vm1, %v4995_v40 }
 0x41a   : > { %v4314_v54 = vcombine.low %v3109_v44, %v3109_v44  ;;  %v4315_v8 = vcombine.high %v3109_v44, %v3109_v44  ;;  %v3209_v25 = vshrl.u32 %v4312_v16, 16  ;;  %v3212_v47 = vshll.u32 %v4312_v16, 16  ;;  %v2455_v60 = vld [vmem:[#allocation2 + $0x38] sm:$0x1f]  ;;  %v2967_v26 = vld [vmem:[#allocation2 + $0x40] sm:$0x1e] }
 0x41b   : > { %v2560_v35 = vrot.slane %v2559_v59, 4  ;;  %v3218_v49 = vshll.u32 %v4313_v61, 16  ;;  %v2573_v52 = vor.u32 %v2572_v53, %v2569_v14  ;;  %v4276_v0 = vcombine.low %v2962_v63, %v2962_v63  ;;  %v2964_v61 = vld [vmem:[#allocation2 + $0x28] sm:$0x1e] }
 0x41c   : > { %v3223_v55 = vshrl.u32 %v4314_v54, 16  ;;  %v3226_v56 = vshll.u32 %v4314_v54, 16  ;;  %v3232_v10 = vshll.u32 %v4315_v8, 16  ;;  %v3211_v58 = vrot.slane %v3209_v25, 4 }
 0x41d   : > { %2770 = vrot.lane.b32.xlu0 %v4901_v45, %s5103_s22  ;;  %v2565_v28 = vsel %vm5461_vm10, %v2560_v35, %v2564_v6  ;;  %v3214_v57 = vrot.slane %v3212_v47, 5  ;;  %v3220_v38 = vrot.slane %v3218_v49, 5  ;;  %v2574_v15 = vrot.slane %v2573_v52, 4 }
 0x41e   : > { %v3225_v23 = vrot.slane %v3223_v55, 4  ;;  %v3228_v48 = vrot.slane %v3226_v56, 5  ;;  %v3234_v32 = vrot.slane %v3232_v10, 5  ;;  %v4277_v30 = vcombine.high %v2962_v63, %v2962_v63  ;;  %v2965_v10 = vld [vmem:[#allocation2 + $0x30] sm:$0x1e] }
 0x41f   : > { %v3215_v5 = vor.u32 %v3214_v57, %v3211_v58  ;;  %v4278_v3 = vcombine.low %v2963_v24, %v2963_v24  ;;  %v2579_v13 = vsel %vm5461_vm10, %v2574_v15, %v2578_v27  ;;  %v4279_v33 = vcombine.high %v2963_v24, %v2963_v24 }
 0x420   : > { %v3229_v21 = vor.u32 %v3228_v48, %v3225_v23  ;;  %v4316_v37 = vcombine.low %v3110_v50, %v3110_v50  ;;  %v4218_v17 = vcombine.low %v2565_v28, %v2579_v13  ;;  %v4290_v41 = vrot.slane %v4276_v0, 9 }
 0x421   : > { %v3216_v11 = vrot.slane %v3215_v5, 4  ;;  %v3018_v9 = vrot.slane %v4277_v30, 5  ;;  %v4291_v43 = vrot.slane %v4278_v3, 9  ;;  %v3022_v18 = vrot.slane %v4279_v33, 5 }
 0x422   : > { %v3230_v39 = vrot.slane %v3229_v21, 4  ;;  %v4317_v44 = vcombine.high %v3110_v50, %v3110_v50  ;;  %2624 = vrot.lane.b32.xlu1 %v4218_v17, %s5103_s22  ;;  %v3237_v14 = vshrl.u32 %v4316_v37, 16  ;;  %v3240_v7 = vshll.u32 %v4316_v37, 16 }
 0x423   : > { %v3221_v19 = vsel %vm5461_vm10, %v3216_v11, %v3220_v38  ;;  %v3019_v51 = vsel %vm5483_vm11, %v4290_v41, %v3018_v9  ;;  %v3023_v59 = vsel %vm5483_vm11, %v4291_v43, %v3022_v18  ;;  %v4212_v16 = vcombine.low %v2454_v42, %v2454_v42  ;;  %v2637_v18 = vld [vmem:[#allocation2 + $0x8] sm:$0x1e] }
 0x424   : > { %v3235_v45 = vsel %vm5461_vm10, %v3230_v39, %v3234_v32  ;;  %v3246_v6 = vshll.u32 %v4317_v44, 16  ;;  %v4297_v27 = vcombine.low %v3019_v51, %v3023_v59  ;;  %v3239_v54 = vrot.slane %v3237_v14, 4  ;;  %v2966_v32 = vld [vmem:[#allocation2 + $0x38] sm:$0x1e]  ;;  %v2638_v14 = vld [vmem:[#allocation2 + $0x10] sm:$0x1e] }
 0x425   : > { %v4322_v53 = vcombine.low %v3221_v19, %v3235_v45  ;;  %v3242_v8 = vrot.slane %v3240_v7, 5  ;;  %v4213_v24 = vcombine.high %v2454_v42, %v2454_v42  ;;  %v4214_v46 = vcombine.low %v2455_v60, %v2455_v60  ;;  %v2639_v7 = vld [vmem:[#allocation2 + $0x18] sm:$0x1e] }
 0x426   : > { %v3248_v63 = vrot.slane %v3246_v6, 5  ;;  %v4215_v62 = vcombine.high %v2455_v60, %v2455_v60  ;;  %3054 = vrot.lane.b32.xlu1 %v4297_v27, %s5103_s22  ;;  %v2581_v25 = vshrl.u32 %v4212_v16, 16  ;;  %v2584_v47 = vshll.u32 %v4212_v16, 16 }
 0x427   : > { %3280 = vrot.lane.b32.xlu0 %v4322_v53, %s5103_s22  ;;  %v3243_v35 = vor.u32 %v3242_v8, %v3239_v54  ;;  %v4280_v49 = vcombine.low %v2964_v61, %v2964_v61  ;;  %v2590_v50 = vshll.u32 %v4213_v24, 16  ;;  %v2595_v52 = vshrl.u32 %v4214_v46, 16 }
 0x428   : > { %v2598_v55 = vshll.u32 %v4214_v46, 16  ;;  %v2604_v56 = vshll.u32 %v4215_v62, 16  ;;  %v2583_v58 = vrot.slane %v2581_v25, 4  ;;  %v2586_v57 = vrot.slane %v2584_v47, 5  ;;  %v2640_v46 = vld [vmem:[#allocation2 + $0x20] sm:$0x1e] }
 0x429   : > { %v3244_v28 = vrot.slane %v3243_v35, 4  ;;  %v4281_v38 = vcombine.high %v2964_v61, %v2964_v61  ;;  %v2592_v1 = vrot.slane %v2590_v50, 5  ;;  %v2597_v15 = vrot.slane %v2595_v52, 4 }
 0x42a   : > { %v2600_v23 = vrot.slane %v2598_v55, 5  ;;  %v2606_v48 = vrot.slane %v2604_v56, 5  ;;  %v2587_v0 = vor.u32 %v2586_v57, %v2583_v58  ;;  %v4282_v30 = vcombine.low %v2965_v10, %v2965_v10 }
 0x42b   : > { %v3249_v5 = vsel %vm5461_vm10, %v3244_v28, %v3248_v63  ;;  %v4283_v3 = vcombine.high %v2965_v10, %v2965_v10  ;;  %v4292_v33 = vrot.slane %v4280_v49, 9  ;;  %v3026_v37 = vrot.slane %v4281_v38, 5  ;;  %v2641_v49 = vld [vmem:[#allocation2 + $0x28] sm:$0x1e] }
 0x42c   : > { %v4323_v13 = vcombine.low %v3249_v5, %v5918_v34  ;;  %v2601_v21 = vor.u32 %v2600_v23, %v2597_v15  ;;  %v2588_v40 = vrot.slane %v2587_v0, 4  ;;  %v4293_v17 = vrot.slane %v4282_v30, 9  ;;  %v2780_v10 = vld [vmem:[#allocation2 + $0x8] sm:$0x1f] }
 0x42d   : > { %v3030_v11 = vrot.slane %v4283_v3, 5  ;;  %v4284_v41 = vcombine.low %v2966_v32, %v2966_v32  ;;  %v3027_v42 = vsel %vm5483_vm11, %v4292_v33, %v3026_v37  ;;  %v4285_v39 = vcombine.high %v2966_v32, %v2966_v32  ;;  %v2781_v32 = vld [vmem:[#allocation2 + $0x10] sm:$0x1f] }
 0x42e   : > { %3282 = vrot.lane.b32.xlu0 %v4323_v13, %s5103_s22  ;;  %v2602_v9 = vrot.slane %v2601_v21, 4  ;;  %v4286_v43 = vcombine.low %v2967_v26, %v2967_v26  ;;  %v2593_v44 = vsel %vm5461_vm10, %v2588_v40, %v2592_v1  ;;  %v4287_v19 = vcombine.high %v2967_v26, %v2967_v26  ;;  %v2642_v26 = vld [vmem:[#allocation2 + $0x30] sm:$0x1e] }
 0x42f   : > { %v3031_v34 = vsel %vm5483_vm11, %v4293_v17, %v3030_v11  ;;  %v4294_v51 = vrot.slane %v4284_v41, 9  ;;  %v3034_v59 = vrot.slane %v4285_v39, 5  ;;  %v4222_v53 = vcombine.low %v2637_v18, %v2637_v18 }
 0x430   : > { %v2607_v60 = vsel %vm5461_vm10, %v2602_v9, %v2606_v48  ;;  %v4298_v45 = vcombine.low %v3027_v42, %v3031_v34  ;;  %v4295_v6 = vrot.slane %v4286_v43, 9  ;;  %v3038_v61 = vrot.slane %v4287_v19, 5  ;;  %v2643_v9 = vld [vmem:[#allocation2 + $0x38] sm:$0x1e] }
 0x431   : > { %v4219_v16 = vcombine.low %v2593_v44, %v2607_v60  ;;  %v4223_v27 = vcombine.high %v2637_v18, %v2637_v18  ;;  %v3035_v54 = vsel %vm5483_vm11, %v4294_v51, %v3034_v59  ;;  %v4224_v8 = vcombine.low %v2638_v14, %v2638_v14 }
 0x432   : > { %v4225_v63 = vcombine.high %v2638_v14, %v2638_v14  ;;  %v4226_v24 = vcombine.low %v2639_v7, %v2639_v7  ;;  %v3039_v62 = vsel %vm5483_vm11, %v4295_v6, %v3038_v61  ;;  %v4237_v35 = vrot.slane %v4222_v53, 9 }
 0x433   : > { %2626 = vrot.lane.b32.xlu1 %v4219_v16, %s5103_s22  ;;  %v2690_v25 = vrot.slane %v4223_v27, 5  ;;  %v4227_v47 = vcombine.high %v2639_v7, %v2639_v7  ;;  %v4299_v50 = vcombine.low %v3035_v54, %v3039_v62  ;;  %v4238_v52 = vrot.slane %v4224_v8, 9  ;;  %v2782_v7 = vld [vmem:[#allocation2 + $0x18] sm:$0x1f]  ;;  %v2783_v16 = vld [vmem:[#allocation2 + $0x20] sm:$0x1f] }
 0x434   : > { %v2694_v55 = vrot.slane %v4225_v63, 5  ;;  %v4239_v56 = vrot.slane %v4226_v24, 9  ;;  %v4228_v57 = vcombine.low %v2640_v46, %v2640_v46  ;;  %v4229_v38 = vcombine.high %v2640_v46, %v2640_v46 }
 0x435   : > { %v2691_v28 = vsel %vm5483_vm11, %v4237_v35, %v2690_v25  ;;  %v2698_v58 = vrot.slane %v4227_v47, 5  ;;  %v4230_v23 = vcombine.low %v2641_v49, %v2641_v49  ;;  %v4231_v48 = vcombine.high %v2641_v49, %v2641_v49 }
 0x436   : > { %v4244_v1 = vcombine.low %v2687_v29, %v2691_v28  ;;  %v2695_v15 = vsel %vm5483_vm11, %v4238_v52, %v2694_v55  ;;  %v4240_v0 = vrot.slane %v4228_v57, 9  ;;  %v2702_v30 = vrot.slane %v4229_v38, 5  ;;  %v2784_v57 = vld [vmem:[#allocation2 + $0x28] sm:$0x1f] }
 0x437   : > { %3056 = vrot.lane.b32.xlu1 %v4298_v45, %s5103_s22  ;;  %v2699_v5 = vsel %vm5483_vm11, %v4239_v56, %v2698_v58  ;;  %v4252_v3 = vcombine.low %v2780_v10, %v2780_v10  ;;  %v4241_v2 = vrot.slane %v4230_v23, 9  ;;  %v2706_v4 = vrot.slane %v4231_v48, 5  ;;  %v2785_v48 = vld [vmem:[#allocation2 + $0x30] sm:$0x1f] }
 0x438   : > { %2732 = vst.msk [vmem:[#allocation3 + $0x8] sm:$0xff] %vm305_vm1, %v4244_v1  ;;  %v4245_v13 = vcombine.low %v2695_v15, %v2699_v5  ;;  %v4253_v29 = vcombine.high %v2780_v10, %v2780_v10  ;;  %v2703_v21 = vsel %vm5483_vm11, %v4240_v0, %v2702_v30  ;;  %v4254_v33 = vcombine.low %v2781_v32, %v2781_v32 }
 0x439   : > { %v4255_v37 = vcombine.high %v2781_v32, %v2781_v32  ;;  %v2829_v40 = vshrl.u32 %v4252_v3, 16  ;;  %v2707_v17 = vsel %vm5483_vm11, %v4241_v2, %v2706_v4  ;;  %v2832_v11 = vshll.u32 %v4252_v3, 16 }
 0x43a   : > { %2733 = vst.msk [vmem:[#allocation3 + $0x30] sm:$0xff] %vm305_vm1, %v4245_v13  ;;  %v2838_v41 = vshll.u32 %v4253_v29, 16  ;;  %v4232_v42 = vcombine.low %v2642_v26, %v2642_v26  ;;  %v4246_v39 = vcombine.low %v2703_v21, %v2707_v17  ;;  %v2843_v18 = vshrl.u32 %v4254_v33, 16 }
 0x43b   : > { %3058 = vrot.lane.b32.xlu1 %v4299_v50, %s5103_s22  ;;  %v2831_v43 = vrot.slane %v2829_v40, 4  ;;  %v2846_v44 = vshll.u32 %v4254_v33, 16  ;;  %v2834_v34 = vrot.slane %v2832_v11, 5  ;;  %v2852_v51 = vshll.u32 %v4255_v37, 16 }
 0x43c   : > { %v2840_v19 = vrot.slane %v2838_v41, 5  ;;  %v4233_v14 = vcombine.high %v2642_v26, %v2642_v26  ;;  %2734 = vst.msk [vmem:[#allocation3 + $0x58] sm:$0xff] %vm305_vm1, %v4246_v39  ;;  %v2845_v60 = vrot.slane %v2843_v18, 4  ;;  %v4234_v59 = vcombine.low %v2643_v9, %v2643_v9 }
 0x43d   : > { %v2848_v45 = vrot.slane %v2846_v44, 5  ;;  %v4235_v6 = vcombine.high %v2643_v9, %v2643_v9  ;;  %v2835_v61 = vor.u32 %v2834_v34, %v2831_v43  ;;  %v2854_v53 = vrot.slane %v2852_v51, 5  ;;  %v2786_v43 = vld [vmem:[#allocation2 + $0x38] sm:$0x1f]  ;;  %v2787_v51 = vld [vmem:[#allocation2 + $0x40] sm:$0x1f] }
 0x43e   : > { %v4242_v27 = vrot.slane %v4232_v42, 9  ;;  %v2710_v54 = vrot.slane %v4233_v14, 5  ;;  %v4243_v63 = vrot.slane %v4234_v59, 9  ;;  %v4256_v46 = vcombine.low %v2782_v7, %v2782_v7 }
 0x43f   : > { %v2849_v8 = vor.u32 %v2848_v45, %v2845_v60  ;;  %v2714_v24 = vrot.slane %v4235_v6, 5  ;;  %v2836_v62 = vrot.slane %v2835_v61, 4  ;;  %v4257_v25 = vcombine.high %v2782_v7, %v2782_v7 }
 0x440   : > { %v2711_v35 = vsel %vm5483_vm11, %v4242_v27, %v2710_v54  ;;  %v4258_v47 = vcombine.low %v2783_v16, %v2783_v16  ;;  %v4259_v52 = vcombine.high %v2783_v16, %v2783_v16  ;;  %v2857_v55 = vshrl.u32 %v4256_v46, 16 }
 0x441   : > { %v2850_v49 = vrot.slane %v2849_v8, 4  ;;  %v2715_v50 = vsel %vm5483_vm11, %v4243_v63, %v2714_v24  ;;  %v2841_v56 = vsel %vm5461_vm10, %v2836_v62, %v2840_v19  ;;  %v2860_v28 = vshll.u32 %v4256_v46, 16 }
 0x442   : > { %v4247_v10 = vcombine.low %v2711_v35, %v2715_v50  ;;  %v2866_v58 = vshll.u32 %v4257_v25, 16  ;;  %v2859_v1 = vrot.slane %v2857_v55, 4  ;;  %v2871_v15 = vshrl.u32 %v4258_v47, 16  ;;  %v3292_v35 = vld [vmem:[#allocation2 + $0x10] sm:$0x1e] }
 0x443   : > { %v2855_v38 = vsel %vm5461_vm10, %v2850_v49, %v2854_v53  ;;  %v2874_v23 = vshll.u32 %v4258_v47, 16  ;;  %v2862_v5 = vrot.slane %v2860_v28, 5  ;;  %v2880_v30 = vshll.u32 %v4259_v52, 16  ;;  %v3293_v52 = vld [vmem:[#allocation2 + $0x18] sm:$0x1e] }
 0x444   : > { %v4268_v32 = vcombine.low %v2841_v56, %v2855_v38  ;;  %2735 = vst.msk [vmem:[#allocation3 + $0x80] sm:$0xff] %vm305_vm1, %v4247_v10  ;;  %v2868_v0 = vrot.slane %v2866_v58, 5  ;;  %v2873_v3 = vrot.slane %v2871_v15, 4  ;;  %v4260_v13 = vcombine.low %v2784_v57, %v2784_v57  ;;  %v3294_v58 = vld [vmem:[#allocation2 + $0x20] sm:$0x1e] }
 0x445   : > { %v2876_v26 = vrot.slane %v2874_v23, 5  ;;  %v4261_v2 = vcombine.high %v2784_v57, %v2784_v57  ;;  %v2863_v4 = vor.u32 %v2862_v5, %v2859_v1  ;;  %v2882_v29 = vrot.slane %v2880_v30, 5 }
 0x446   : > { %2956 = vst.msk [vmem:[#allocation3 + $0x10] sm:$0xff] %vm305_vm1, %v4268_v32  ;;  %v4262_v21 = vcombine.low %v2785_v48, %v2785_v48  ;;  %v4263_v33 = vcombine.high %v2785_v48, %v2785_v48  ;;  %v2885_v40 = vshrl.u32 %v4260_v13, 16  ;;  %v2888_v17 = vshll.u32 %v4260_v13, 16 }
 0x447   : > { %v2877_v37 = vor.u32 %v2876_v26, %v2873_v3  ;;  %v2894_v11 = vshll.u32 %v4261_v2, 16  ;;  %v2864_v41 = vrot.slane %v2863_v4, 4  ;;  %v4264_v16 = vcombine.low %v2786_v43, %v2786_v43 }
 0x448   : > { %v2899_v9 = vshrl.u32 %v4262_v21, 16  ;;  %v2902_v42 = vshll.u32 %v4262_v21, 16  ;;  %v2908_v39 = vshll.u32 %v4263_v33, 16  ;;  %v2887_v44 = vrot.slane %v2885_v40, 4 }
 0x449   : > { %v2878_v18 = vrot.slane %v2877_v37, 4  ;;  %v2890_v34 = vrot.slane %v2888_v17, 5  ;;  %v2896_v19 = vrot.slane %v2894_v11, 5  ;;  %v2869_v14 = vsel %vm5461_vm10, %v2864_v41, %v2868_v0  ;;  %v3295_v0 = vld [vmem:[#allocation2 + $0x28] sm:$0x1e] }
 0x44a   : > { %v2901_v7 = vrot.slane %v2899_v9, 4  ;;  %v2904_v60 = vrot.slane %v2902_v42, 5  ;;  %v2910_v45 = vrot.slane %v2908_v39, 5  ;;  %v4265_v61 = vcombine.high %v2786_v43, %v2786_v43  ;;  %v3296_v11 = vld [vmem:[#allocation2 + $0x30] sm:$0x1e] }
 0x44b   : > { %v2883_v59 = vsel %vm5461_vm10, %v2878_v18, %v2882_v29  ;;  %v2891_v6 = vor.u32 %v2890_v34, %v2887_v44  ;;  %v4266_v54 = vcombine.low %v2787_v51, %v2787_v51  ;;  %v4267_v8 = vcombine.high %v2787_v51, %v2787_v51  ;;  %v3297_v43 = vld [vmem:[#allocation2 + $0x38] sm:$0x1e]  ;;  %v3298_v51 = vld [vmem:[#allocation2 + $0x40] sm:$0x1e] }
 0x44c   : > { %v4269_v53 = vcombine.low %v2869_v14, %v2883_v59  ;;  %v2905_v27 = vor.u32 %v2904_v60, %v2901_v7  ;;  %v2913_v24 = vshrl.u32 %v4264_v16, 16  ;;  %v2916_v46 = vshll.u32 %v4264_v16, 16 }
 0x44d   : > { %v2892_v63 = vrot.slane %v2891_v6, 4  ;;  %v2922_v62 = vshll.u32 %v4265_v61, 16  ;;  %v2927_v47 = vshrl.u32 %v4266_v54, 16  ;;  %v2930_v49 = vshll.u32 %v4266_v54, 16 }
 0x44e   : > { %2957 = vst.msk [vmem:[#allocation3 + $0x38] sm:$0xff] %vm305_vm1, %v4269_v53  ;;  %v2906_v25 = vrot.slane %v2905_v27, 4  ;;  %v2936_v50 = vshll.u32 %v4267_v8, 16  ;;  %v2915_v56 = vrot.slane %v2913_v24, 4  ;;  %v2918_v10 = vrot.slane %v2916_v46, 5 }
 0x44f   : > { %v2897_v55 = vsel %vm5461_vm10, %v2892_v63, %v2896_v19  ;;  %v2924_v28 = vrot.slane %v2922_v62, 5  ;;  %v2929_v38 = vrot.slane %v2927_v47, 4  ;;  %v2932_v1 = vrot.slane %v2930_v49, 5 }
 0x450   : > { %v2911_v57 = vsel %vm5461_vm10, %v2906_v25, %v2910_v45  ;;  %v2938_v15 = vrot.slane %v2936_v50, 5  ;;  %v2919_v48 = vor.u32 %v2918_v10, %v2915_v56  ;;  %v4324_v32 = vcombine.low %v3292_v35, %v3292_v35 }
 0x451   : > { %v4270_v23 = vcombine.low %v2897_v55, %v2911_v57  ;;  %v4325_v5 = vcombine.high %v3292_v35, %v3292_v35  ;;  %v2933_v30 = vor.u32 %v2932_v1, %v2929_v38  ;;  %v4326_v3 = vcombine.low %v3293_v52, %v3293_v52  ;;  %v4993_v57 = vld [vmem:[%s6223_s6 + $0x108] sm:$0xff]  }
 0x452   : > { %v4327_v26 = vcombine.high %v3293_v52, %v3293_v52  ;;  %v4328_v13 = vcombine.low %v3294_v58, %v3294_v58  ;;  %v2920_v2 = vrot.slane %v2919_v48, 4  ;;  %v4340_v4 = vrot.slane %v4324_v32, 9 }
 0x453   : > { %2958 = vst.msk [vmem:[#allocation3 + $0x60] sm:$0xff] %vm305_vm1, %v4270_v23  ;;  %v3342_v29 = vrot.slane %v4325_v5, 5  ;;  %v4329_v21 = vcombine.high %v3294_v58, %v3294_v58  ;;  %v2934_v33 = vrot.slane %v2933_v30, 4  ;;  %v4341_v37 = vrot.slane %v4326_v3, 9  ;;  %v5000_v23 = vld [vmem:[%s6223_s6 + $0x110] sm:$0xff]   ;;  %v5005_v5 = vld [vmem:[%s6223_s6 + $0x118] sm:$0xff]  }
 0x454   : > { %v3346_v40 = vrot.slane %v4327_v26, 5  ;;  %v4330_v17 = vcombine.low %v3295_v0, %v3295_v0  ;;  %v2925_v41 = vsel %vm5461_vm10, %v2920_v2, %v2924_v28  ;;  %v4331_v42 = vcombine.high %v3295_v0, %v3295_v0 }
 0x455   : > { %v3343_v9 = vsel %vm5483_vm11, %v4340_v4, %v3342_v29  ;;  %v4342_v39 = vrot.slane %v4328_v13, 9  ;;  %v2939_v18 = vsel %vm5461_vm10, %v2934_v33, %v2938_v15  ;;  %v3350_v34 = vrot.slane %v4329_v21, 5 }
 0x456   : > { %v3347_v44 = vsel %vm5483_vm11, %v4341_v37, %v3346_v40  ;;  %v4343_v19 = vrot.slane %v4330_v17, 9  ;;  %v4271_v14 = vcombine.low %v2925_v41, %v2939_v18  ;;  %v3354_v60 = vrot.slane %v4331_v42, 5 }
 0x457   : > { %v4348_v7 = vcombine.low %v3343_v9, %v3347_v44  ;;  %v4332_v45 = vcombine.low %v3296_v11, %v3296_v11  ;;  %v3351_v59 = vsel %vm5483_vm11, %v4342_v39, %v3350_v34  ;;  %v4333_v6 = vcombine.high %v3296_v11, %v3296_v11 }
 0x458   : > { %v4334_v16 = vcombine.low %v3297_v43, %v3297_v43  ;;  %v4335_v61 = vcombine.high %v3297_v43, %v3297_v43  ;;  %2959 = vst.msk [vmem:[#allocation3 + $0x88] sm:$0xff] %vm305_vm1, %v4271_v14  ;;  %v3355_v31 = vsel %vm5483_vm11, %v4343_v19, %v3354_v60  ;;  %v4336_v27 = vcombine.low %v3298_v51, %v3298_v51 }
 0x459   : > { %3388 = vst.msk [vmem:[#allocation3 + $0x20] sm:$0xff] %vm305_vm1, %v4348_v7  ;;  %v4344_v53 = vrot.slane %v4332_v45, 9  ;;  %v4337_v54 = vcombine.high %v3298_v51, %v3298_v51  ;;  %v4349_v8 = vcombine.low %v3351_v59, %v3355_v31  ;;  %v3358_v63 = vrot.slane %v4333_v6, 5 }
 0x45a   : > { %v4345_v24 = vrot.slane %v4334_v16, 9  ;;  %v3362_v46 = vrot.slane %v4335_v61, 5  ;;  %v4346_v62 = vrot.slane %v4336_v27, 9  ;;  %v3371_v25 = vsel %vm5483_vm11, %v5926_v36, %v5995_v12 }
 0x45b   : > { %v3366_v35 = vrot.slane %v4337_v54, 5  ;;  %3389 = vst.msk [vmem:[#allocation3 + $0x48] sm:$0xff] %vm305_vm1, %v4349_v8  ;;  %v3359_v47 = vsel %vm5483_vm11, %v4344_v53, %v3358_v63  ;;  %v5026_v63 = vld [vmem:[%s5238_s24] sm:$0xff] }
 0x45c   : > { %v3363_v49 = vsel %vm5483_vm11, %v4345_v24, %v3362_v46 }
 0x45d   : > { %v4350_v50 = vcombine.low %v3359_v47, %v3363_v49  ;;  %v3367_v52 = vsel %vm5483_vm11, %v4346_v62, %v3366_v35 }
 0x45e   : > { %v4351_v55 = vcombine.low %v3367_v52, %v3371_v25  ;;  %v5027_v25 = vld [vmem:[%s5238_s24 + $0x8] sm:$0xff] }
 0x45f   : > { %3390 = vst.msk [vmem:[#allocation3 + $0x70] sm:$0xff] %vm305_vm1, %v4350_v50 }
 0x460   : > { %3391 = vst.msk [vmem:[#allocation3 + $0x98] sm:$0xff] %vm305_vm1, %v4351_v55  ;;  %v3396_v42 = vld [vmem:[#allocation3 + $0x20] sm:$0xff] }
 0x462   : > { %v3401_v18 = vld [vmem:[#allocation3 + $0x48] sm:$0xff] }
 0x466   : > { %v3406_v44 = vld [vmem:[#allocation3 + $0x70] sm:$0xff] }
 0x467   : > { %v3411_v19 = vld [vmem:[#allocation3 + $0x98] sm:$0xff] }
 0x46f   : > { %v2765_v56 = vpop.permute.xlu0 %2764 }
 0x470   : > { %2776 = vst.msk [vmem:[#allocation3 + $0x8] sm:$0xff] %vm846_vm12, %v2765_v56 }
 0x473   : > { %v2767_v36 = vpop.permute.xlu0 %2766 }
 0x474   : > { %2777 = vst.msk [vmem:[#allocation3 + $0x30] sm:$0xff] %vm846_vm12, %v2767_v36 }
 0x477   : > { %v3393_v12 = vld [vmem:[#allocation3 + $0x8] sm:$0xff] }
 0x478   : > { %3744 = vmatprep.mubr.bf16.mxu1 %v3393_v12 }
 0x47b   : > { %v3398_v15 = vld [vmem:[#allocation3 + $0x30] sm:$0xff] }
 0x47e   : > { %v3277_v10 = vpop.permute.xlu0 %3276  ;;  %v2621_v28 = vpop.permute.xlu1 %2620 }
 0x47f   : > { %3288 = vst.msk [vmem:[#allocation3 + $0x18] sm:$0xff] %vm846_vm12, %v3277_v10  ;;  %2632 = vst.msk [vmem:[#allocation3] sm:$0xff] %vm846_vm12, %v2621_v28 }
 0x482   : > { %v2769_v20 = vpop.permute.xlu0 %2768 }
 0x483   : > { %2778 = vst.msk [vmem:[#allocation3 + $0x58] sm:$0xff] %vm846_vm12, %v2769_v20 }
 0x485   : > { %v2623_v58 = vpop.permute.xlu1 %2622 }
 0x486   : > { %2633 = vst.msk [vmem:[#allocation3 + $0x28] sm:$0xff] %vm846_vm12, %v2623_v58  ;;  %v3392_v38 = vld [vmem:[#allocation3] sm:$0xff]  ;;  %v3395_v1 = vld [vmem:[#allocation3 + $0x18] sm:$0xff] }
 0x487   : > { %3745 = vmatmul.mubr.bf16.vlgmr.msra.gmra.mrb[24].mxu1 %v3392_v38  ;;  %3809 = vmatprep.mubr.bf16.mxu0 %v3395_v1 }
 0x488   : > { %4648 = vmatpush3.bf16.msra.mxu1 %v5972_v22  ;;  %3752 = vmatprep.mubr.bf16.mxu1 %v3398_v15 }
 0x489   : > { %4649 = vmatprep.subr.bf16.mxu1 %v4993_v57 }
 0x48a   : > { %v3053_v32 = vpop.permute.xlu1 %3052  ;;  %v3403_v30 = vld [vmem:[#allocation3 + $0x58] sm:$0xff] }
 0x48b   : > { %v3279_v48 = vpop.permute.xlu0 %3278  ;;  %3064 = vst.msk [vmem:[#allocation3 + $0x10] sm:$0xff] %vm846_vm12, %v3053_v32 }
 0x48c   : > { %3289 = vst.msk [vmem:[#allocation3 + $0x40] sm:$0xff] %vm846_vm12, %v3279_v48  ;;  %4650 = vmatpush3.bf16.msra.mxu1 %v4993_v57  ;;  %v5028_v57 = vld [vmem:[%s5238_s24 + $0x10] sm:$0xff]  ;;  %v5029_v48 = vld [vmem:[%s5238_s24 + $0x18] sm:$0xff] }
 0x48d   : > { %4651 = vmatprep.subr.bf16.mxu1 %v5000_v23  ;;  %v3397_v0 = vld [vmem:[#allocation3 + $0x28] sm:$0xff] }
 0x48f   : > { %v2771_v22 = vpop.permute.xlu0 %2770  ;;  %3753 = vmatmul.mubr.bf16.gmra.mrb[28].mxu1 %v3397_v0 }
 0x490   : > { %2779 = vst.msk [vmem:[#allocation3 + $0x80] sm:$0xff] %vm846_vm12, %v2771_v22  ;;  %3760 = vmatprep.mubr.bf16.mxu1 %v3403_v30  ;;  %4652 = vmatpush3.bf16.msra.mxu1 %v5000_v23 }
 0x491   : > { %4653 = vmatprep.subr.bf16.mxu1 %v5005_v5 }
 0x492   : > { %v3394_v3 = vld [vmem:[#allocation3 + $0x10] sm:$0xff] }
 0x493   : > { %v3400_v26 = vld [vmem:[#allocation3 + $0x40] sm:$0xff]  ;;  %3810 = vmatmul.mubr.bf16.vlgmr.msra.gmra.mrb[20].mxu0 %v3394_v3 }
 0x494   : > { %4654 = vmatpush3.bf16.msra.mxu1 %v5005_v5  ;;  %v2625_v13 = vpop.permute.xlu1 %2624  ;;  %3817 = vmatprep.mubr.bf16.mxu0 %v3400_v26 }
 0x495   : > { %2634 = vst.msk [vmem:[#allocation3 + $0x50] sm:$0xff] %vm846_vm12, %v2625_v13 }
 0x497   : > { %v3408_v21 = vld [vmem:[#allocation3 + $0x80] sm:$0xff] }
 0x498   : > { %v3055_v4 = vpop.permute.xlu1 %3054 }
 0x499   : > { %v3281_v2 = vpop.permute.xlu0 %3280  ;;  %3065 = vst.msk [vmem:[#allocation3 + $0x38] sm:$0xff] %vm846_vm12, %v3055_v4 }
 0x49a   : > { %3290 = vst.msk [vmem:[#allocation3 + $0x68] sm:$0xff] %vm846_vm12, %v3281_v2 }
 0x49c   : > { %v3402_v29 = vld [vmem:[#allocation3 + $0x50] sm:$0xff] }
 0x49d   : > { %3761 = vmatmul.mubr.bf16.gmra.mrb[32].mxu1 %v3402_v29 }
 0x49e   : > { %3768 = vmatprep.mubr.bf16.mxu1 %v3408_v21 }
 0x4a0   : > { %v3283_v33 = vpop.permute.xlu0 %3282  ;;  %v3399_v37 = vld [vmem:[#allocation3 + $0x38] sm:$0xff] }
 0x4a1   : > { %3291 = vst.msk [vmem:[#allocation3 + $0x90] sm:$0xff] %vm846_vm12, %v3283_v33  ;;  %v3405_v40 = vld [vmem:[#allocation3 + $0x68] sm:$0xff]  ;;  %3818 = vmatmul.mubr.bf16.gmra.mrb[24].mxu0 %v3399_v37  ;;  %v5030_v33 = vld [vmem:[%s5238_s24 + $0x20] sm:$0xff] }
 0x4a2   : > { %3825 = vmatprep.mubr.bf16.mxu0 %v3405_v40 }
 0x4a5   : > { %v2627_v17 = vpop.permute.xlu1 %2626 }
 0x4a6   : > { %2635 = vst.msk [vmem:[#allocation3 + $0x78] sm:$0xff] %vm846_vm12, %v2627_v17 }
 0x4a8   : > { %v3410_v43 = vld [vmem:[#allocation3 + $0x90] sm:$0xff] }
 0x4a9   : > { %v3057_v11 = vpop.permute.xlu1 %3056 }
 0x4aa   : > { %3066 = vst.msk [vmem:[#allocation3 + $0x60] sm:$0xff] %vm846_vm12, %v3057_v11 }
 0x4ad   : > { %v3059_v41 = vpop.permute.xlu1 %3058  ;;  %v3407_v9 = vld [vmem:[#allocation3 + $0x78] sm:$0xff] }
 0x4ae   : > { %3067 = vst.msk [vmem:[#allocation3 + $0x88] sm:$0xff] %vm846_vm12, %v3059_v41  ;;  %3769 = vmatmul.mubr.bf16.gmra.mrb[36].mxu1 %v3407_v9  ;;  %v5031_v41 = vld [vmem:[%s5238_s24 + $0x28] sm:$0xff] }
 0x4af   : > { %4655 = vmatprep.mubr.msk.bf16.mxu1 %vm305_vm1, %v3396_v42 }
 0x4b1   : > { %v3404_v39 = vld [vmem:[#allocation3 + $0x60] sm:$0xff] }
 0x4b2   : > { %3826 = vmatmul.mubr.bf16.gmra.mrb[28].mxu0 %v3404_v39 }
 0x4b3   : > { %3833 = vmatprep.mubr.bf16.mxu0 %v3410_v43 }
 0x4b5   : > { %v3409_v34 = vld [vmem:[#allocation3 + $0x88] sm:$0xff] }
 0x4b6   : > { %4656 = vmatmul.mubr.msk.bf16.vlgmr.msra.gmra.mrb[40].mxu1 %vm305_vm1, %v3401_v18 }
 0x4b7   : > { %4659 = vmatprep.mubr.msk.bf16.mxu1 %vm305_vm1, %v3406_v44 }
 0x4ba   : > { %3834 = vmatmul.mubr.bf16.gmra.mrb[32].mxu0 %v3409_v34 }
 0x4be   : > { %4660 = vmatmul.mubr.msk.bf16.gmra.mrb[44].mxu1 %vm305_vm1, %v3411_v19 }
 0x55a   : > { %v4521_v51 = vpop.f32.mrb[24].mxu1 }
 0x55b   : > { %v4522_v14 = vpop.f32.mrb[25].mxu1 }
 0x55c   : > { %v4523_v7 = vadd.f32 %v4522_v14, %v4521_v51  ;;  %v4524_v60 = vpop.f32.mrb[26].mxu1 }
 0x55d   : > { %v4525_v45 = vpop.f32.mrb[27].mxu1 }
 0x55e   : > { %v4526_v59 = vadd.f32 %v4525_v45, %v4524_v60  ;;  %v3747_v24 = vadd.f32 %v5026_v63, %v4523_v7 }
 0x560   : > { %v3750_v47 = vadd.f32 %v5027_v25, %v4526_v59 }
 0x562   : > { %v4527_v6 = vpop.f32.mrb[28].mxu1 }
 0x563   : > { %v4528_v16 = vpop.f32.mrb[29].mxu1 }
 0x564   : > { %v4529_v61 = vadd.f32 %v4528_v16, %v4527_v6  ;;  %v4530_v31 = vpop.f32.mrb[30].mxu1  ;;  %v5032_v6 = vld [vmem:[%s5238_s24 + $0x30] sm:$0xff] }
 0x565   : > { %v4531_v53 = vpop.f32.mrb[31].mxu1 }
 0x566   : > { %v4532_v27 = vadd.f32 %v4531_v53, %v4530_v31  ;;  %v4561_v54 = vpop.f32.mrb[20].mxu0  ;;  %v3755_v38 = vadd.f32 %v5028_v57, %v4529_v61 }
 0x567   : > { %v4562_v8 = vpop.f32.mrb[21].mxu0 }
 0x568   : > { %v4563_v46 = vadd.f32 %v4562_v8, %v4561_v54  ;;  %v4564_v62 = vpop.f32.mrb[22].mxu0  ;;  %v3758_v32 = vadd.f32 %v5029_v48, %v4532_v27  ;;  %v5033_v27 = vld [vmem:[%s5238_s24 + $0x38] sm:$0xff]  ;;  %s6162_s24 = scalar_lea.hbm %s6225_s8, %s4398_s20 }
 0x569   : > { %v4565_v35 = vpop.f32.mrb[23].mxu0 }
 0x56a   : > { %v4566_v49 = vadd.f32 %v4565_v35, %v4564_v62  ;;  %v3812_v50 = vadd.f32 %v4563_v46, %v3747_v24 }
 0x56c   : > { %v3815_v52 = vadd.f32 %v4566_v49, %v3750_v47 }
 0x570   : > { %v4533_v55 = vpop.f32.mrb[32].mxu1 }
 0x571   : > { %v4534_v56 = vpop.f32.mrb[33].mxu1 }
 0x572   : > { %v4535_v36 = vadd.f32 %v4534_v56, %v4533_v55  ;;  %v4536_v12 = vpop.f32.mrb[34].mxu1 }
 0x573   : > { %v4537_v10 = vpop.f32.mrb[35].mxu1 }
 0x574   : > { %v4567_v28 = vpop.f32.mrb[24].mxu0  ;;  %v4538_v20 = vadd.f32 %v4537_v10, %v4536_v12  ;;  %v3763_v37 = vadd.f32 %v5030_v33, %v4535_v36 }
 0x575   : > { %v4568_v58 = vpop.f32.mrb[25].mxu0 }
 0x576   : > { %v4569_v1 = vadd.f32 %v4568_v58, %v4567_v28  ;;  %v4570_v15 = vpop.f32.mrb[26].mxu0  ;;  %v3766_v9 = vadd.f32 %v5031_v41, %v4538_v20 }
 0x577   : > { %v4571_v23 = vpop.f32.mrb[27].mxu0 }
 0x578   : > { %v4572_v5 = vadd.f32 %v4571_v23, %v4570_v15  ;;  %v3820_v0 = vadd.f32 %v4569_v1, %v3755_v38 }
 0x57a   : > { %v3823_v22 = vadd.f32 %v4572_v5, %v3758_v32 }
 0x581   : > { %v4539_v30 = vpop.f32.mrb[36].mxu1 }
 0x582   : > { %v4540_v3 = vpop.f32.mrb[37].mxu1 }
 0x583   : > { %v4541_v26 = vadd.f32 %v4540_v3, %v4539_v30  ;;  %v4542_v13 = vpop.f32.mrb[38].mxu1 }
 0x584   : > { %v4543_v2 = vpop.f32.mrb[39].mxu1 }
 0x585   : > { %v4573_v4 = vpop.f32.mrb[28].mxu0  ;;  %v4544_v29 = vadd.f32 %v4543_v2, %v4542_v13  ;;  %v3771_v16 = vadd.f32 %v5032_v6, %v4541_v26 }
 0x586   : > { %v4574_v21 = vpop.f32.mrb[29].mxu0 }
 0x587   : > { %v4575_v40 = vadd.f32 %v4574_v21, %v4573_v4  ;;  %v4576_v17 = vpop.f32.mrb[30].mxu0  ;;  %v3774_v54 = vadd.f32 %v5033_v27, %v4544_v29 }
 0x588   : > { %v4577_v11 = vpop.f32.mrb[31].mxu0 }
 0x589   : > { %v4578_v42 = vadd.f32 %v4577_v11, %v4576_v17  ;;  %v4657_v39 = vpop.f32.mrb[40].mxu1  ;;  %v3828_v43 = vadd.f32 %v4575_v40, %v3763_v37 }
 0x58a   : > { %v3885_v18 = vadd.f32 %v4657_v39, %v3820_v0  ;;  %v3876_v44 = vpop.f32.mrb[41].mxu1 }
 0x58b   : > { %v3877_v34 = vadd.f32 %v3876_v44, %v3812_v50  ;;  %v4658_v19 = vpop.f32.mrb[42].mxu1  ;;  %v3831_v51 = vadd.f32 %v4578_v42, %v3766_v9 }
 0x58c   : > { %3909 = vst.msk [vmem:[%s6145_s19 + $0x10] sm:$0xff] %vm305_vm1, %v3885_v18  ;;  %v3888_v14 = vadd.f32 %v4658_v19, %v3823_v22  ;;  %v3879_v7 = vpop.f32.mrb[43].mxu1 }
 0x58d   : > { %v4579_v60 = vpop.f32.mrb[32].mxu0  ;;  %3907 = vst.msk [vmem:[%s6145_s19] sm:$0xff] %vm305_vm1, %v3877_v34  ;;  %v3880_v45 = vadd.f32 %v3879_v7, %v3815_v52 }
 0x58e   : > { %v4580_v59 = vpop.f32.mrb[33].mxu0  ;;  %3910 = vst.msk [vmem:[%s6145_s19 + $0x18] sm:$0xff] %vm305_vm1, %v3888_v14 }
 0x58f   : > { %v4581_v61 = vadd.f32 %v4580_v59, %v4579_v60  ;;  %v4582_v31 = vpop.f32.mrb[34].mxu0  ;;  %3908 = vst.msk [vmem:[%s6145_s19 + $0x8] sm:$0xff] %vm305_vm1, %v3880_v45 }
 0x590   : > { %v4583_v53 = vpop.f32.mrb[35].mxu0 }
 0x591   : > { %v4584_v8 = vadd.f32 %v4583_v53, %v4582_v31  ;;  %v3836_v63 = vadd.f32 %v4581_v61, %v3771_v16  ;;  %v4661_v24 = vpop.f32.mrb[44].mxu1 }
 0x592   : > { %v3892_v46 = vpop.f32.mrb[45].mxu1 }
 0x593   : > { %v3901_v62 = vadd.f32 %v4661_v24, %v3836_v63  ;;  %v3893_v35 = vadd.f32 %v3892_v46, %v3828_v43  ;;  %v3839_v25 = vadd.f32 %v4584_v8, %v3774_v54  ;;  %v4662_v47 = vpop.f32.mrb[46].mxu1 }
 0x594   : > { %v3895_v49 = vpop.f32.mrb[47].mxu1 }
 0x595   : > { %3913 = vst.msk [vmem:[%s6145_s19 + $0x30] sm:$0xff] %vm305_vm1, %v3901_v62  ;;  %3911 = vst.msk [vmem:[%s6145_s19 + $0x20] sm:$0xff] %vm305_vm1, %v3893_v35  ;;  %v3904_v50 = vadd.f32 %v4662_v47, %v3839_v25  ;;  %v3896_v52 = vadd.f32 %v3895_v49, %v3831_v51 }
 0x597   : > { %3914 = vst.msk [vmem:[%s6145_s19 + $0x38] sm:$0xff] %vm305_vm1, %v3904_v50  ;;  %3912 = vst.msk [vmem:[%s6145_s19 + $0x28] sm:$0xff] %vm305_vm1, %v3896_v52 }
 0x598   : > { %5047 = shalt.err (!%p5044_p3)
}
 0x599   : > { %s5048_s13 = scalar_lea.hbm %s6162_s24, 1024  ;;  %s5052_s19 = scalar_lea.hbm %s6225_s8, 2048 }
 0x59a   : > { %p5049_p4 = scmp.ne.s32.totalorder %s6162_s24, %s5048_s13  ;;  %p5053_p9 = scmp.lt.u32.totalorder %s6162_s24, %s6225_s8 }
 0x59b   : > { %p5054_p10 = scmp.lt.u32.totalorder %s5052_s19, %s5048_s13  ;;  %p5056_p12 = scmp.lt.u32.totalorder %s5048_s13, %s6162_s24 }
 0x59c   : > { %p5050_p7 = pnand %p5049_p4, %p5190_p5 }
 0x59d   : > { %p5055_p11 = por %p5054_p10, %p5053_p9 }
 0x59e   : > { %p5051_p8 = pneg %p5050_p7 }
 0x59f   : > { %p5057_p13 = por %p5056_p12, %p5055_p11 }
 0x5a1   : > { %p5058_p0 = pnand %p5057_p13, %p5051_p8 }
 0x5a3   : > { %5061 = shalt.err (!%p5058_p0)
}
 0x5a4   : > { %s5105_s22 = smov 128   ;;  %s5106_s25 = smov 8  }
 0x5a5   : > { %4687 = dma.vmem_to_hbm [thread:$0]  (%p5190_p5), %s6164_s21, 1024, %s6162_s24, %s6176_s9, %s5105_s22, %s5105_s22, %s5106_s25  }
 0x5a6 PF: > { %p4693_p1 = scmp.ge.s32.totalorder %s5096_s30, 2  ;;  %s3944_s26 = sand.u32 1, %s5084_s27  }
 0x5a7   : > { %s3945_s10 = scalar_lea.sflag [#allocation5], %s3944_s26 }
 0x5a8   : > { %p4690_p2 = pnand %p4693_p1, %p5194_p6 }
 0x5aa   : > { %5079 = dma.done.wait (!%p4690_p2), %s3945_s10, 1024  }
 0x5ab   : > { %5081 = vsyncadd (!%p4690_p2), %s3945_s10, 4294966272  ;;  %p18_p3 = scmp.ge.s32.totalorder %s5177_s11, 4   ;;  %s6234_s27 = smov %s5088_s28 }
 0x5ac   : > { %s6235_s28 = smov %s5092_s29  ;;  %s6236_s29 = smov %s5188_s14 }
 0x5ad   : > { %s6237_s30 = smov %s5177_s11  ;;  %20 = sbr.rel (!%p18_p3) target bundleno = 3 (0x3), region = 89 }
 0x5b4   :  { %3950 = vsyncpa [#allocation5], 1 }
 0x5b5   :  { %3952 = vsyncpa [#allocation5 + $0x1], 1 }

</bundles_post_ra>
